<compile_context>
chip_gen: v5e
topology: v5e:2x2
jax: 0.10.0
libtpu: 0.0.40
codegen_flags: <defaults>
</compile_context>

<pallas_src>
import functools

import jax
import jax.numpy as jnp
from jax import lax
from jax.experimental import pallas as pl
from jax.experimental.pallas import tpu as pltpu

# sigma list from the PyTorch module's mmd_loss (static -> betas baked into kernels)
_SIGMAS = (1e-06, 1e-05, 1e-04, 1e-03, 1e-02, 1e-01, 1.0, 5.0, 10.0, 15.0, 20.0,
           25.0, 30.0, 35.0, 100.0, 1000.0, 10000.0, 100000.0, 1000000.0)
_BETAS = tuple(1.0 / (2.0 * s) for s in _SIGMAS)


# ----------------------------------------------------------------------------
# In-kernel helpers (trace-time; all shapes static)
# ----------------------------------------------------------------------------
def _self_sq_dist(z):
    """Clamped pairwise squared distances of rows of z with itself; exact-zero diag.

    MXU Gram formulation; squared norms are read off the Gram diagonal with iota
    masks (one lane reduce + one sublane reduce, no transpose needed).
    """
    n = z.shape[0]
    gram = lax.dot_general(z, z, (((1,), (1,)), ((), ())),
                           preferred_element_type=jnp.float32)       # (n, n)
    ri = lax.broadcasted_iota(jnp.int32, (n, n), 0)
    ci = lax.broadcasted_iota(jnp.int32, (n, n), 1)
    eye = ri == ci
    diag = jnp.where(eye, gram, 0.0)
    row_norms = jnp.sum(diag, axis=1, keepdims=True)                  # (n, 1) ||z_i||^2
    col_norms = jnp.sum(diag, axis=0, keepdims=True)                  # (1, n) ||z_j||^2
    dist = jnp.maximum(row_norms + col_norms - 2.0 * gram, 0.0)       # clamp cancellation
    # Exact zeros on the diagonal: with beta up to 5e5 a tiny positive residual
    # would flip exp(-beta*d) from 1 to ~0 and change the loss.
    return jnp.where(eye, 0.0, dist)


def _multi_kernel_block_mean(dist):
    """mean_ij of sum_s exp(-beta_s * dist_ij); scalar accumulation (no matrix acc)."""
    total = jnp.float32(0.0)
    for beta in _BETAS:                 # static unrolled loop over the 19 sigmas (EUP)
        total = total + jnp.sum(jnp.exp(dist * (-beta)))
    return total * (1.0 / float(dist.shape[0] * dist.shape[1]))


def _mmd_cost(x, y):
    """maximum_mean_discrepancy(x, y) with the multi-sigma Gaussian kernel."""
    nx = x.shape[0]
    z = jnp.concatenate([x, y], axis=0)          # one Gram matmul for [x; y]
    d = _self_sq_dist(z)                         # (nx+ny, nx+ny), zero diag
    dxx = d[:nx, :nx]
    dyy = d[nx:, nx:]
    dxy = d[:nx, nx:]
    return (_multi_kernel_block_mean(dxx)
            + _multi_kernel_block_mean(dyy)
            - 2.0 * _multi_kernel_block_mean(dxy))


# ----------------------------------------------------------------------------
# Kernel 1: fully fused forward for UDA / SDA / CUDA / CSDA
#   distance matrix + within/between block selection + all MMD scalars
# ----------------------------------------------------------------------------
def _fused_forward_kernel(s_ref, t_ref, o_ref, *, instances, num_spk, cross):
    s = s_ref[...]                               # (B, D) f32
    t = t_ref[...]

    # TODO(synk): compute_distance_matrix is external to the PyTorch module;
    # assumed to be the torchreid-style pairwise *squared* Euclidean distance.
    s_dist = _self_sq_dist(s)                    # (B, B)
    t_dist = _self_sq_dist(t)

    inst = instances

    def blocks(dist):
        wc = jnp.concatenate(
            [dist[i * inst:(i + 1) * inst, i * inst:(i + 1) * inst]
             for i in range(num_spk)], axis=0)                        # (B, inst)
        bc = jnp.concatenate(
            [dist[i * inst:(i + 1) * inst, j * inst:(j + 1) * inst]
             for i in range(num_spk) for j in range(num_spk) if i < j],
            axis=0)                                                   # (npairs*inst, inst)
        return wc, bc

    wcs, bcs = blocks(s_dist)
    wct, bct = blocks(t_dist)

    losses = [_mmd_cost(wcs, wct), _mmd_cost(bcs, bct)]
    if cross:
        losses += [_mmd_cost(wcs, bct), _mmd_cost(bcs, wct)]
    for i, loss in enumerate(losses):
        o_ref[i] = loss


def fused_uda_losses(s, t, *, instances, num_spk, cross):
    num_losses = 4 if cross else 2
    kern = functools.partial(_fused_forward_kernel, instances=instances,
                             num_spk=num_spk, cross=cross)
    return pl.pallas_call(
        kern,
        out_shape=jax.ShapeDtypeStruct((num_losses,), jnp.float32),
        in_specs=[pl.BlockSpec(memory_space=pltpu.MemorySpace.VMEM),
                  pl.BlockSpec(memory_space=pltpu.MemorySpace.VMEM)],
        out_specs=pl.BlockSpec(memory_space=pltpu.MemorySpace.SMEM),
    )(s.astype(jnp.float32), t.astype(jnp.float32))


# ----------------------------------------------------------------------------
# Kernel 2: generic multi-sigma MMD cost for one (x, y) pair (emb_mmd, hard_sample)
# ----------------------------------------------------------------------------
def _mmd_pair_kernel(x_ref, y_ref, o_ref):
    o_ref[0] = _mmd_cost(x_ref[...], y_ref[...])


def mmd_loss(x, y):
    out = pl.pallas_call(
        _mmd_pair_kernel,
        out_shape=jax.ShapeDtypeStruct((1,), jnp.float32),
        in_specs=[pl.BlockSpec(memory_space=pltpu.MemorySpace.VMEM),
                  pl.BlockSpec(memory_space=pltpu.MemorySpace.VMEM)],
        out_specs=pl.BlockSpec(memory_space=pltpu.MemorySpace.SMEM),
    )(x.astype(jnp.float32), y.astype(jnp.float32))
    return out[0]


# ----------------------------------------------------------------------------
# Kernel 3: standalone pairwise squared Euclidean distance (hard_sample path)
# ----------------------------------------------------------------------------
def _sqdist_kernel(x_ref, y_ref, o_ref, *, zero_diag):
    x = x_ref[...]                                   # (n, d)
    y = y_ref[...]                                   # (m, d)
    n, d = x.shape
    m = y.shape[0]
    gram = lax.dot_general(x, y, (((1,), (1,)), ((), ())),
                           preferred_element_type=jnp.float32)        # (n, m)
    xn = jnp.sum(x * x, axis=1, keepdims=True)                        # (n, 1)
    # column norms as a (1, m) row via an MXU ones-matmul (avoids a transpose)
    yn = lax.dot_general(jnp.ones((1, d), jnp.float32), y * y,
                         (((1,), (1,)), ((), ())),
                         preferred_element_type=jnp.float32)          # (1, m)
    dist = jnp.maximum(xn + yn - 2.0 * gram, 0.0)
    if zero_diag:
        ri = lax.broadcasted_iota(jnp.int32, (n, m), 0)
        ci = lax.broadcasted_iota(jnp.int32, (n, m), 1)
        dist = jnp.where(ri == ci, 0.0, dist)
    o_ref[...] = dist


def pairwise_sq_dist(x, y, zero_diag=False):
    n, m = x.shape[0], y.shape[0]
    kern = functools.partial(_sqdist_kernel, zero_diag=zero_diag)
    return pl.pallas_call(
        kern,
        out_shape=jax.ShapeDtypeStruct((n, m), jnp.float32),
        in_specs=[pl.BlockSpec(memory_space=pltpu.MemorySpace.VMEM),
                  pl.BlockSpec(memory_space=pltpu.MemorySpace.VMEM)],
        out_specs=pl.BlockSpec(memory_space=pltpu.MemorySpace.VMEM),
    )(x.astype(jnp.float32), y.astype(jnp.float32))


# ----------------------------------------------------------------------------
# Module wrapper (mode dispatch; UDA/SDA/CUDA/CSDA are one pallas_call each)
# ----------------------------------------------------------------------------
class MaximumMeanDiscrepancy:
    def __init__(self, batch_size=32, instances=4, mode='UDA'):
        self.batch_size = batch_size
        self.instances = instances
        self.mode = mode

    def _within_between(self, dist):
        # JAX-level block selection, only used by the hard_sample path.
        inst = self.instances
        num_spk = self.batch_size // inst
        wc = jnp.concatenate(
            [dist[i * inst:(i + 1) * inst, i * inst:(i + 1) * inst]
             for i in range(num_spk)], axis=0)
        bc = jnp.concatenate(
            [dist[i * inst:(i + 1) * inst, j * inst:(j + 1) * inst]
             for i in range(num_spk) for j in range(num_spk) if i < j], axis=0)
        return wc, bc

    def __call__(self, source_features, target_features):
        s = jnp.squeeze(source_features, axis=2).astype(jnp.float32)   # (B, D)
        t = jnp.squeeze(target_features, axis=2).astype(jnp.float32)
        num_spk = self.batch_size // self.instances

        if self.mode == 'emb_mmd':
            return mmd_loss(s, t)

        if self.mode in ('UDA', 'SDA'):
            out = fused_uda_losses(s, t, instances=self.instances,
                                   num_spk=num_spk, cross=False)
            return out[0], out[1]

        if self.mode in ('CUDA', 'CSDA'):
            out = fused_uda_losses(s, t, instances=self.instances,
                                   num_spk=num_spk, cross=True)
            return out[0], out[1], out[2], out[3]

        if self.mode == 'hard_sample':
            # The 4 standard losses come from the single fused kernel; the hard-sample
            # row selection (top_k) has no clean Mosaic equivalent, so it is done at
            # the JAX level on Pallas-computed distance matrices, then 2 more kernels.
            out = fused_uda_losses(s, t, instances=self.instances,
                                   num_spk=num_spk, cross=True)
            s_dist = pairwise_sq_dist(s, s, zero_diag=True)
            t_dist = pairwise_sq_dist(t, t, zero_diag=True)
            wcs, bcs = self._within_between(s_dist)
            wct, bct = self._within_between(t_dist)

            def top_rows(m, largest):
                k = int(m.shape[0] * 0.2)
                scores = jnp.sum(m, axis=1)
                idx = lax.top_k(scores if largest else -scores, k)[1]
                return m[idx]

            wcs_h, wct_h = top_rows(wcs, True), top_rows(wct, True)
            bcs_h, bct_h = top_rows(bcs, False), top_rows(bct, False)
            return (out[0], out[1],
                    mmd_loss(wcs_h, wct_h), mmd_loss(bcs_h, bct_h),
                    out[2], out[3])

        raise ValueError(f'unknown mode: {self.mode}')


if __name__ == "__main__":
    # small, module-consistent shapes: batch=8 (num_spk=4 speakers x instances=2),
    # feature_size=32, inputs shaped (batch, feature, 1) as the module expects.
    batch_size, instances, feature_size = 8, 2, 32
    key = jax.random.PRNGKey(0)
    k1, k2 = jax.random.split(key)
    source = jax.random.normal(k1, (batch_size, feature_size, 1), dtype=jnp.float32)
    target = jax.random.normal(k2, (batch_size, feature_size, 1), dtype=jnp.float32)

    mmd = MaximumMeanDiscrepancy(batch_size=batch_size, instances=instances, mode='UDA')
    wc_loss, bc_loss = mmd(source, target)
    jax.block_until_ready((wc_loss, bc_loss))
    print("KERNEL_OK")
</pallas_src>

<mosaic_0001>
module attributes {stable_mosaic.version = 11 : i64} {
  func.func @_fused_forward_kernel(%arg0: memref<8x32xf32, #tpu.memory_space<vmem>>, %arg1: memref<8x32xf32, #tpu.memory_space<vmem>>, %arg2: memref<2xf32, #tpu.memory_space<smem>>) attributes {dimension_semantics = [], scalar_prefetch = 0 : i64, scratch_operands = 0 : i64, tpu.core_type = #tpu.core_type<tc>} {
    %c0 = arith.constant 0 : index
    %c0_0 = arith.constant 0 : index
    %0 = vector.load %arg0[%c0, %c0_0] : memref<8x32xf32, #tpu.memory_space<vmem>>, vector<8x32xf32>
    %c0_1 = arith.constant 0 : index
    %c0_2 = arith.constant 0 : index
    %1 = vector.load %arg1[%c0_1, %c0_2] : memref<8x32xf32, #tpu.memory_space<vmem>>, vector<8x32xf32>
    %cst = arith.constant dense<0.000000e+00> : vector<8x8xf32>
    %2 = tpu.matmul %0, %0, %cst {dimension_numbers = #tpu.dot_dimension_numbers<[1], [1], [0], [0], [0, 0, 1, 0], [], []>} : vector<8x32xf32>, vector<8x32xf32>, vector<8x8xf32> -> vector<8x8xf32>
    %3 = tpu.iota {dimensions = array<i32: 0>} : vector<8x8xi32>
    %4 = tpu.iota {dimensions = array<i32: 1>} : vector<8x8xi32>
    %5 = arith.cmpi eq, %3, %4 : vector<8x8xi32>
    %cst_3 = arith.constant 0.000000e+00 : f32
    %6 = vector.broadcast %cst_3 : f32 to vector<8x8xf32>
    %7 = arith.select %5, %2, %6 : vector<8x8xi1>, vector<8x8xf32>
    %cst_4 = arith.constant dense<0.000000e+00> : vector<8xf32>
    %8 = vector.multi_reduction <add>, %7, %cst_4 [1] : vector<8x8xf32> to vector<8xf32>
    %9 = vector.shape_cast %8 : vector<8xf32> to vector<8x1xf32>
    %cst_5 = arith.constant dense<0.000000e+00> : vector<8xf32>
    %10 = vector.multi_reduction <add>, %7, %cst_5 [0] : vector<8x8xf32> to vector<8xf32>
    %11 = vector.shape_cast %10 : vector<8xf32> to vector<1x8xf32>
    %12 = vector.broadcast %9 : vector<8x1xf32> to vector<8x8xf32>
    %13 = vector.broadcast %11 : vector<1x8xf32> to vector<8x8xf32>
    %14 = arith.addf %12, %13 : vector<8x8xf32>
    %cst_6 = arith.constant 2.000000e+00 : f32
    %15 = vector.broadcast %cst_6 : f32 to vector<8x8xf32>
    %16 = arith.mulf %15, %2 : vector<8x8xf32>
    %17 = arith.subf %14, %16 : vector<8x8xf32>
    %cst_7 = arith.constant 0.000000e+00 : f32
    %18 = vector.broadcast %cst_7 : f32 to vector<8x8xf32>
    %19 = arith.maximumf %17, %18 : vector<8x8xf32>
    %cst_8 = arith.constant 0.000000e+00 : f32
    %20 = vector.broadcast %cst_8 : f32 to vector<8x8xf32>
    %21 = arith.select %5, %20, %19 : vector<8x8xi1>, vector<8x8xf32>
    %cst_9 = arith.constant dense<0.000000e+00> : vector<8x8xf32>
    %22 = tpu.matmul %1, %1, %cst_9 {dimension_numbers = #tpu.dot_dimension_numbers<[1], [1], [0], [0], [0, 0, 1, 0], [], []>} : vector<8x32xf32>, vector<8x32xf32>, vector<8x8xf32> -> vector<8x8xf32>
    %23 = tpu.iota {dimensions = array<i32: 0>} : vector<8x8xi32>
    %24 = tpu.iota {dimensions = array<i32: 1>} : vector<8x8xi32>
    %25 = arith.cmpi eq, %23, %24 : vector<8x8xi32>
    %cst_10 = arith.constant 0.000000e+00 : f32
    %26 = vector.broadcast %cst_10 : f32 to vector<8x8xf32>
    %27 = arith.select %25, %22, %26 : vector<8x8xi1>, vector<8x8xf32>
    %cst_11 = arith.constant dense<0.000000e+00> : vector<8xf32>
    %28 = vector.multi_reduction <add>, %27, %cst_11 [1] : vector<8x8xf32> to vector<8xf32>
    %29 = vector.shape_cast %28 : vector<8xf32> to vector<8x1xf32>
    %cst_12 = arith.constant dense<0.000000e+00> : vector<8xf32>
    %30 = vector.multi_reduction <add>, %27, %cst_12 [0] : vector<8x8xf32> to vector<8xf32>
    %31 = vector.shape_cast %30 : vector<8xf32> to vector<1x8xf32>
    %32 = vector.broadcast %29 : vector<8x1xf32> to vector<8x8xf32>
    %33 = vector.broadcast %31 : vector<1x8xf32> to vector<8x8xf32>
    %34 = arith.addf %32, %33 : vector<8x8xf32>
    %cst_13 = arith.constant 2.000000e+00 : f32
    %35 = vector.broadcast %cst_13 : f32 to vector<8x8xf32>
    %36 = arith.mulf %35, %22 : vector<8x8xf32>
    %37 = arith.subf %34, %36 : vector<8x8xf32>
    %cst_14 = arith.constant 0.000000e+00 : f32
    %38 = vector.broadcast %cst_14 : f32 to vector<8x8xf32>
    %39 = arith.maximumf %37, %38 : vector<8x8xf32>
    %cst_15 = arith.constant 0.000000e+00 : f32
    %40 = vector.broadcast %cst_15 : f32 to vector<8x8xf32>
    %41 = arith.select %25, %40, %39 : vector<8x8xi1>, vector<8x8xf32>
    %42 = vector.extract_strided_slice %21 {offsets = [0, 0], sizes = [2, 2], strides = [1, 1]} : vector<8x8xf32> to vector<2x2xf32>
    %43 = vector.extract_strided_slice %21 {offsets = [2, 2], sizes = [2, 2], strides = [1, 1]} : vector<8x8xf32> to vector<2x2xf32>
    %44 = vector.extract_strided_slice %21 {offsets = [4, 4], sizes = [2, 2], strides = [1, 1]} : vector<8x8xf32> to vector<2x2xf32>
    %45 = vector.extract_strided_slice %21 {offsets = [6, 6], sizes = [2, 2], strides = [1, 1]} : vector<8x8xf32> to vector<2x2xf32>
    %46 = tpu.concatenate %42, %43, %44, %45 in 0 : vector<2x2xf32>, vector<2x2xf32>, vector<2x2xf32>, vector<2x2xf32> -> vector<8x2xf32>
    %47 = vector.extract_strided_slice %21 {offsets = [0, 2], sizes = [2, 2], strides = [1, 1]} : vector<8x8xf32> to vector<2x2xf32>
    %48 = vector.extract_strided_slice %21 {offsets = [0, 4], sizes = [2, 2], strides = [1, 1]} : vector<8x8xf32> to vector<2x2xf32>
    %49 = vector.extract_strided_slice %21 {offsets = [0, 6], sizes = [2, 2], strides = [1, 1]} : vector<8x8xf32> to vector<2x2xf32>
    %50 = vector.extract_strided_slice %21 {offsets = [2, 4], sizes = [2, 2], strides = [1, 1]} : vector<8x8xf32> to vector<2x2xf32>
    %51 = vector.extract_strided_slice %21 {offsets = [2, 6], sizes = [2, 2], strides = [1, 1]} : vector<8x8xf32> to vector<2x2xf32>
    %52 = vector.extract_strided_slice %21 {offsets = [4, 6], sizes = [2, 2], strides = [1, 1]} : vector<8x8xf32> to vector<2x2xf32>
    %53 = tpu.concatenate %47, %48, %49, %50, %51, %52 in 0 : vector<2x2xf32>, vector<2x2xf32>, vector<2x2xf32>, vector<2x2xf32>, vector<2x2xf32>, vector<2x2xf32> -> vector<12x2xf32>
    %54 = vector.extract_strided_slice %41 {offsets = [0, 0], sizes = [2, 2], strides = [1, 1]} : vector<8x8xf32> to vector<2x2xf32>
    %55 = vector.extract_strided_slice %41 {offsets = [2, 2], sizes = [2, 2], strides = [1, 1]} : vector<8x8xf32> to vector<2x2xf32>
    %56 = vector.extract_strided_slice %41 {offsets = [4, 4], sizes = [2, 2], strides = [1, 1]} : vector<8x8xf32> to vector<2x2xf32>
    %57 = vector.extract_strided_slice %41 {offsets = [6, 6], sizes = [2, 2], strides = [1, 1]} : vector<8x8xf32> to vector<2x2xf32>
    %58 = tpu.concatenate %54, %55, %56, %57 in 0 : vector<2x2xf32>, vector<2x2xf32>, vector<2x2xf32>, vector<2x2xf32> -> vector<8x2xf32>
    %59 = vector.extract_strided_slice %41 {offsets = [0, 2], sizes = [2, 2], strides = [1, 1]} : vector<8x8xf32> to vector<2x2xf32>
    %60 = vector.extract_strided_slice %41 {offsets = [0, 4], sizes = [2, 2], strides = [1, 1]} : vector<8x8xf32> to vector<2x2xf32>
    %61 = vector.extract_strided_slice %41 {offsets = [0, 6], sizes = [2, 2], strides = [1, 1]} : vector<8x8xf32> to vector<2x2xf32>
    %62 = vector.extract_strided_slice %41 {offsets = [2, 4], sizes = [2, 2], strides = [1, 1]} : vector<8x8xf32> to vector<2x2xf32>
    %63 = vector.extract_strided_slice %41 {offsets = [2, 6], sizes = [2, 2], strides = [1, 1]} : vector<8x8xf32> to vector<2x2xf32>
    %64 = vector.extract_strided_slice %41 {offsets = [4, 6], sizes = [2, 2], strides = [1, 1]} : vector<8x8xf32> to vector<2x2xf32>
    %65 = tpu.concatenate %59, %60, %61, %62, %63, %64 in 0 : vector<2x2xf32>, vector<2x2xf32>, vector<2x2xf32>, vector<2x2xf32>, vector<2x2xf32>, vector<2x2xf32> -> vector<12x2xf32>
    %66 = tpu.concatenate %46, %58 in 0 : vector<8x2xf32>, vector<8x2xf32> -> vector<16x2xf32>
    %cst_16 = arith.constant dense<0.000000e+00> : vector<16x16xf32>
    %67 = tpu.matmul %66, %66, %cst_16 {dimension_numbers = #tpu.dot_dimension_numbers<[1], [1], [0], [0], [0, 0, 1, 0], [], []>} : vector<16x2xf32>, vector<16x2xf32>, vector<16x16xf32> -> vector<16x16xf32>
    %68 = tpu.iota {dimensions = array<i32: 0>} : vector<16x16xi32>
    %69 = tpu.iota {dimensions = array<i32: 1>} : vector<16x16xi32>
    %70 = arith.cmpi eq, %68, %69 : vector<16x16xi32>
    %cst_17 = arith.constant 0.000000e+00 : f32
    %71 = vector.broadcast %cst_17 : f32 to vector<16x16xf32>
    %72 = arith.select %70, %67, %71 : vector<16x16xi1>, vector<16x16xf32>
    %cst_18 = arith.constant dense<0.000000e+00> : vector<16xf32>
    %73 = vector.multi_reduction <add>, %72, %cst_18 [1] : vector<16x16xf32> to vector<16xf32>
    %74 = vector.shape_cast %73 : vector<16xf32> to vector<16x1xf32>
    %cst_19 = arith.constant dense<0.000000e+00> : vector<16xf32>
    %75 = vector.multi_reduction <add>, %72, %cst_19 [0] : vector<16x16xf32> to vector<16xf32>
    %76 = vector.shape_cast %75 : vector<16xf32> to vector<1x16xf32>
    %77 = vector.broadcast %74 : vector<16x1xf32> to vector<16x16xf32>
    %78 = vector.broadcast %76 : vector<1x16xf32> to vector<16x16xf32>
    %79 = arith.addf %77, %78 : vector<16x16xf32>
    %cst_20 = arith.constant 2.000000e+00 : f32
    %80 = vector.broadcast %cst_20 : f32 to vector<16x16xf32>
    %81 = arith.mulf %80, %67 : vector<16x16xf32>
    %82 = arith.subf %79, %81 : vector<16x16xf32>
    %cst_21 = arith.constant 0.000000e+00 : f32
    %83 = vector.broadcast %cst_21 : f32 to vector<16x16xf32>
    %84 = arith.maximumf %82, %83 : vector<16x16xf32>
    %cst_22 = arith.constant 0.000000e+00 : f32
    %85 = vector.broadcast %cst_22 : f32 to vector<16x16xf32>
    %86 = arith.select %70, %85, %84 : vector<16x16xi1>, vector<16x16xf32>
    %87 = vector.extract_strided_slice %86 {offsets = [0, 0], sizes = [8, 8], strides = [1, 1]} : vector<16x16xf32> to vector<8x8xf32>
    %88 = vector.extract_strided_slice %86 {offsets = [8, 8], sizes = [8, 8], strides = [1, 1]} : vector<16x16xf32> to vector<8x8xf32>
    %89 = vector.extract_strided_slice %86 {offsets = [0, 8], sizes = [8, 8], strides = [1, 1]} : vector<16x16xf32> to vector<8x8xf32>
    %cst_23 = arith.constant -5.000000e+05 : f32
    %90 = vector.broadcast %cst_23 : f32 to vector<8x8xf32>
    %91 = arith.mulf %87, %90 : vector<8x8xf32>
    %92 = math.exp %91 : vector<8x8xf32>
    %93 = vector.shape_cast %92 : vector<8x8xf32> to vector<1x8x8xf32>
    %cst_24 = arith.constant dense<0.000000e+00> : vector<1xf32>
    %94 = vector.multi_reduction <add>, %93, %cst_24 [1, 2] : vector<1x8x8xf32> to vector<1xf32>
    %95 = vector.shape_cast %94 : vector<1xf32> to vector<1x1x1xf32>
    %96 = vector.extract %95[0, 0, 0] : f32 from vector<1x1x1xf32>
    %cst_25 = arith.constant 0.000000e+00 : f32
    %97 = arith.addf %cst_25, %96 : f32
    %cst_26 = arith.constant -5.000000e+04 : f32
    %98 = vector.broadcast %cst_26 : f32 to vector<8x8xf32>
    %99 = arith.mulf %87, %98 : vector<8x8xf32>
    %100 = math.exp %99 : vector<8x8xf32>
    %101 = vector.shape_cast %100 : vector<8x8xf32> to vector<1x8x8xf32>
    %cst_27 = arith.constant dense<0.000000e+00> : vector<1xf32>
    %102 = vector.multi_reduction <add>, %101, %cst_27 [1, 2] : vector<1x8x8xf32> to vector<1xf32>
    %103 = vector.shape_cast %102 : vector<1xf32> to vector<1x1x1xf32>
    %104 = vector.extract %103[0, 0, 0] : f32 from vector<1x1x1xf32>
    %105 = arith.addf %97, %104 : f32
    %cst_28 = arith.constant -5.000000e+03 : f32
    %106 = vector.broadcast %cst_28 : f32 to vector<8x8xf32>
    %107 = arith.mulf %87, %106 : vector<8x8xf32>
    %108 = math.exp %107 : vector<8x8xf32>
    %109 = vector.shape_cast %108 : vector<8x8xf32> to vector<1x8x8xf32>
    %cst_29 = arith.constant dense<0.000000e+00> : vector<1xf32>
    %110 = vector.multi_reduction <add>, %109, %cst_29 [1, 2] : vector<1x8x8xf32> to vector<1xf32>
    %111 = vector.shape_cast %110 : vector<1xf32> to vector<1x1x1xf32>
    %112 = vector.extract %111[0, 0, 0] : f32 from vector<1x1x1xf32>
    %113 = arith.addf %105, %112 : f32
    %cst_30 = arith.constant -5.000000e+02 : f32
    %114 = vector.broadcast %cst_30 : f32 to vector<8x8xf32>
    %115 = arith.mulf %87, %114 : vector<8x8xf32>
    %116 = math.exp %115 : vector<8x8xf32>
    %117 = vector.shape_cast %116 : vector<8x8xf32> to vector<1x8x8xf32>
    %cst_31 = arith.constant dense<0.000000e+00> : vector<1xf32>
    %118 = vector.multi_reduction <add>, %117, %cst_31 [1, 2] : vector<1x8x8xf32> to vector<1xf32>
    %119 = vector.shape_cast %118 : vector<1xf32> to vector<1x1x1xf32>
    %120 = vector.extract %119[0, 0, 0] : f32 from vector<1x1x1xf32>
    %121 = arith.addf %113, %120 : f32
    %cst_32 = arith.constant -5.000000e+01 : f32
    %122 = vector.broadcast %cst_32 : f32 to vector<8x8xf32>
    %123 = arith.mulf %87, %122 : vector<8x8xf32>
    %124 = math.exp %123 : vector<8x8xf32>
    %125 = vector.shape_cast %124 : vector<8x8xf32> to vector<1x8x8xf32>
    %cst_33 = arith.constant dense<0.000000e+00> : vector<1xf32>
    %126 = vector.multi_reduction <add>, %125, %cst_33 [1, 2] : vector<1x8x8xf32> to vector<1xf32>
    %127 = vector.shape_cast %126 : vector<1xf32> to vector<1x1x1xf32>
    %128 = vector.extract %127[0, 0, 0] : f32 from vector<1x1x1xf32>
    %129 = arith.addf %121, %128 : f32
    %cst_34 = arith.constant -5.000000e+00 : f32
    %130 = vector.broadcast %cst_34 : f32 to vector<8x8xf32>
    %131 = arith.mulf %87, %130 : vector<8x8xf32>
    %132 = math.exp %131 : vector<8x8xf32>
    %133 = vector.shape_cast %132 : vector<8x8xf32> to vector<1x8x8xf32>
    %cst_35 = arith.constant dense<0.000000e+00> : vector<1xf32>
    %134 = vector.multi_reduction <add>, %133, %cst_35 [1, 2] : vector<1x8x8xf32> to vector<1xf32>
    %135 = vector.shape_cast %134 : vector<1xf32> to vector<1x1x1xf32>
    %136 = vector.extract %135[0, 0, 0] : f32 from vector<1x1x1xf32>
    %137 = arith.addf %129, %136 : f32
    %cst_36 = arith.constant -5.000000e-01 : f32
    %138 = vector.broadcast %cst_36 : f32 to vector<8x8xf32>
    %139 = arith.mulf %87, %138 : vector<8x8xf32>
    %140 = math.exp %139 : vector<8x8xf32>
    %141 = vector.shape_cast %140 : vector<8x8xf32> to vector<1x8x8xf32>
    %cst_37 = arith.constant dense<0.000000e+00> : vector<1xf32>
    %142 = vector.multi_reduction <add>, %141, %cst_37 [1, 2] : vector<1x8x8xf32> to vector<1xf32>
    %143 = vector.shape_cast %142 : vector<1xf32> to vector<1x1x1xf32>
    %144 = vector.extract %143[0, 0, 0] : f32 from vector<1x1x1xf32>
    %145 = arith.addf %137, %144 : f32
    %cst_38 = arith.constant -1.000000e-01 : f32
    %146 = vector.broadcast %cst_38 : f32 to vector<8x8xf32>
    %147 = arith.mulf %87, %146 : vector<8x8xf32>
    %148 = math.exp %147 : vector<8x8xf32>
    %149 = vector.shape_cast %148 : vector<8x8xf32> to vector<1x8x8xf32>
    %cst_39 = arith.constant dense<0.000000e+00> : vector<1xf32>
    %150 = vector.multi_reduction <add>, %149, %cst_39 [1, 2] : vector<1x8x8xf32> to vector<1xf32>
    %151 = vector.shape_cast %150 : vector<1xf32> to vector<1x1x1xf32>
    %152 = vector.extract %151[0, 0, 0] : f32 from vector<1x1x1xf32>
    %153 = arith.addf %145, %152 : f32
    %cst_40 = arith.constant -5.000000e-02 : f32
    %154 = vector.broadcast %cst_40 : f32 to vector<8x8xf32>
    %155 = arith.mulf %87, %154 : vector<8x8xf32>
    %156 = math.exp %155 : vector<8x8xf32>
    %157 = vector.shape_cast %156 : vector<8x8xf32> to vector<1x8x8xf32>
    %cst_41 = arith.constant dense<0.000000e+00> : vector<1xf32>
    %158 = vector.multi_reduction <add>, %157, %cst_41 [1, 2] : vector<1x8x8xf32> to vector<1xf32>
    %159 = vector.shape_cast %158 : vector<1xf32> to vector<1x1x1xf32>
    %160 = vector.extract %159[0, 0, 0] : f32 from vector<1x1x1xf32>
    %161 = arith.addf %153, %160 : f32
    %cst_42 = arith.constant -0.0333333351 : f32
    %162 = vector.broadcast %cst_42 : f32 to vector<8x8xf32>
    %163 = arith.mulf %87, %162 : vector<8x8xf32>
    %164 = math.exp %163 : vector<8x8xf32>
    %165 = vector.shape_cast %164 : vector<8x8xf32> to vector<1x8x8xf32>
    %cst_43 = arith.constant dense<0.000000e+00> : vector<1xf32>
    %166 = vector.multi_reduction <add>, %165, %cst_43 [1, 2] : vector<1x8x8xf32> to vector<1xf32>
    %167 = vector.shape_cast %166 : vector<1xf32> to vector<1x1x1xf32>
    %168 = vector.extract %167[0, 0, 0] : f32 from vector<1x1x1xf32>
    %169 = arith.addf %161, %168 : f32
    %cst_44 = arith.constant -2.500000e-02 : f32
    %170 = vector.broadcast %cst_44 : f32 to vector<8x8xf32>
    %171 = arith.mulf %87, %170 : vector<8x8xf32>
    %172 = math.exp %171 : vector<8x8xf32>
    %173 = vector.shape_cast %172 : vector<8x8xf32> to vector<1x8x8xf32>
    %cst_45 = arith.constant dense<0.000000e+00> : vector<1xf32>
    %174 = vector.multi_reduction <add>, %173, %cst_45 [1, 2] : vector<1x8x8xf32> to vector<1xf32>
    %175 = vector.shape_cast %174 : vector<1xf32> to vector<1x1x1xf32>
    %176 = vector.extract %175[0, 0, 0] : f32 from vector<1x1x1xf32>
    %177 = arith.addf %169, %176 : f32
    %cst_46 = arith.constant -2.000000e-02 : f32
    %178 = vector.broadcast %cst_46 : f32 to vector<8x8xf32>
    %179 = arith.mulf %87, %178 : vector<8x8xf32>
    %180 = math.exp %179 : vector<8x8xf32>
    %181 = vector.shape_cast %180 : vector<8x8xf32> to vector<1x8x8xf32>
    %cst_47 = arith.constant dense<0.000000e+00> : vector<1xf32>
    %182 = vector.multi_reduction <add>, %181, %cst_47 [1, 2] : vector<1x8x8xf32> to vector<1xf32>
    %183 = vector.shape_cast %182 : vector<1xf32> to vector<1x1x1xf32>
    %184 = vector.extract %183[0, 0, 0] : f32 from vector<1x1x1xf32>
    %185 = arith.addf %177, %184 : f32
    %cst_48 = arith.constant -0.0166666675 : f32
    %186 = vector.broadcast %cst_48 : f32 to vector<8x8xf32>
    %187 = arith.mulf %87, %186 : vector<8x8xf32>
    %188 = math.exp %187 : vector<8x8xf32>
    %189 = vector.shape_cast %188 : vector<8x8xf32> to vector<1x8x8xf32>
    %cst_49 = arith.constant dense<0.000000e+00> : vector<1xf32>
    %190 = vector.multi_reduction <add>, %189, %cst_49 [1, 2] : vector<1x8x8xf32> to vector<1xf32>
    %191 = vector.shape_cast %190 : vector<1xf32> to vector<1x1x1xf32>
    %192 = vector.extract %191[0, 0, 0] : f32 from vector<1x1x1xf32>
    %193 = arith.addf %185, %192 : f32
    %cst_50 = arith.constant -0.0142857144 : f32
    %194 = vector.broadcast %cst_50 : f32 to vector<8x8xf32>
    %195 = arith.mulf %87, %194 : vector<8x8xf32>
    %196 = math.exp %195 : vector<8x8xf32>
    %197 = vector.shape_cast %196 : vector<8x8xf32> to vector<1x8x8xf32>
    %cst_51 = arith.constant dense<0.000000e+00> : vector<1xf32>
    %198 = vector.multi_reduction <add>, %197, %cst_51 [1, 2] : vector<1x8x8xf32> to vector<1xf32>
    %199 = vector.shape_cast %198 : vector<1xf32> to vector<1x1x1xf32>
    %200 = vector.extract %199[0, 0, 0] : f32 from vector<1x1x1xf32>
    %201 = arith.addf %193, %200 : f32
    %cst_52 = arith.constant -5.000000e-03 : f32
    %202 = vector.broadcast %cst_52 : f32 to vector<8x8xf32>
    %203 = arith.mulf %87, %202 : vector<8x8xf32>
    %204 = math.exp %203 : vector<8x8xf32>
    %205 = vector.shape_cast %204 : vector<8x8xf32> to vector<1x8x8xf32>
    %cst_53 = arith.constant dense<0.000000e+00> : vector<1xf32>
    %206 = vector.multi_reduction <add>, %205, %cst_53 [1, 2] : vector<1x8x8xf32> to vector<1xf32>
    %207 = vector.shape_cast %206 : vector<1xf32> to vector<1x1x1xf32>
    %208 = vector.extract %207[0, 0, 0] : f32 from vector<1x1x1xf32>
    %209 = arith.addf %201, %208 : f32
    %cst_54 = arith.constant -5.000000e-04 : f32
    %210 = vector.broadcast %cst_54 : f32 to vector<8x8xf32>
    %211 = arith.mulf %87, %210 : vector<8x8xf32>
    %212 = math.exp %211 : vector<8x8xf32>
    %213 = vector.shape_cast %212 : vector<8x8xf32> to vector<1x8x8xf32>
    %cst_55 = arith.constant dense<0.000000e+00> : vector<1xf32>
    %214 = vector.multi_reduction <add>, %213, %cst_55 [1, 2] : vector<1x8x8xf32> to vector<1xf32>
    %215 = vector.shape_cast %214 : vector<1xf32> to vector<1x1x1xf32>
    %216 = vector.extract %215[0, 0, 0] : f32 from vector<1x1x1xf32>
    %217 = arith.addf %209, %216 : f32
    %cst_56 = arith.constant -5.000000e-05 : f32
    %218 = vector.broadcast %cst_56 : f32 to vector<8x8xf32>
    %219 = arith.mulf %87, %218 : vector<8x8xf32>
    %220 = math.exp %219 : vector<8x8xf32>
    %221 = vector.shape_cast %220 : vector<8x8xf32> to vector<1x8x8xf32>
    %cst_57 = arith.constant dense<0.000000e+00> : vector<1xf32>
    %222 = vector.multi_reduction <add>, %221, %cst_57 [1, 2] : vector<1x8x8xf32> to vector<1xf32>
    %223 = vector.shape_cast %222 : vector<1xf32> to vector<1x1x1xf32>
    %224 = vector.extract %223[0, 0, 0] : f32 from vector<1x1x1xf32>
    %225 = arith.addf %217, %224 : f32
    %cst_58 = arith.constant -5.000000e-06 : f32
    %226 = vector.broadcast %cst_58 : f32 to vector<8x8xf32>
    %227 = arith.mulf %87, %226 : vector<8x8xf32>
    %228 = math.exp %227 : vector<8x8xf32>
    %229 = vector.shape_cast %228 : vector<8x8xf32> to vector<1x8x8xf32>
    %cst_59 = arith.constant dense<0.000000e+00> : vector<1xf32>
    %230 = vector.multi_reduction <add>, %229, %cst_59 [1, 2] : vector<1x8x8xf32> to vector<1xf32>
    %231 = vector.shape_cast %230 : vector<1xf32> to vector<1x1x1xf32>
    %232 = vector.extract %231[0, 0, 0] : f32 from vector<1x1x1xf32>
    %233 = arith.addf %225, %232 : f32
    %cst_60 = arith.constant -5.000000e-07 : f32
    %234 = vector.broadcast %cst_60 : f32 to vector<8x8xf32>
    %235 = arith.mulf %87, %234 : vector<8x8xf32>
    %236 = math.exp %235 : vector<8x8xf32>
    %237 = vector.shape_cast %236 : vector<8x8xf32> to vector<1x8x8xf32>
    %cst_61 = arith.constant dense<0.000000e+00> : vector<1xf32>
    %238 = vector.multi_reduction <add>, %237, %cst_61 [1, 2] : vector<1x8x8xf32> to vector<1xf32>
    %239 = vector.shape_cast %238 : vector<1xf32> to vector<1x1x1xf32>
    %240 = vector.extract %239[0, 0, 0] : f32 from vector<1x1x1xf32>
    %241 = arith.addf %233, %240 : f32
    %cst_62 = arith.constant 1.562500e-02 : f32
    %242 = arith.mulf %241, %cst_62 : f32
    %cst_63 = arith.constant -5.000000e+05 : f32
    %243 = vector.broadcast %cst_63 : f32 to vector<8x8xf32>
    %244 = arith.mulf %88, %243 : vector<8x8xf32>
    %245 = math.exp %244 : vector<8x8xf32>
    %246 = vector.shape_cast %245 : vector<8x8xf32> to vector<1x8x8xf32>
    %cst_64 = arith.constant dense<0.000000e+00> : vector<1xf32>
    %247 = vector.multi_reduction <add>, %246, %cst_64 [1, 2] : vector<1x8x8xf32> to vector<1xf32>
    %248 = vector.shape_cast %247 : vector<1xf32> to vector<1x1x1xf32>
    %249 = vector.extract %248[0, 0, 0] : f32 from vector<1x1x1xf32>
    %cst_65 = arith.constant 0.000000e+00 : f32
    %250 = arith.addf %cst_65, %249 : f32
    %cst_66 = arith.constant -5.000000e+04 : f32
    %251 = vector.broadcast %cst_66 : f32 to vector<8x8xf32>
    %252 = arith.mulf %88, %251 : vector<8x8xf32>
    %253 = math.exp %252 : vector<8x8xf32>
    %254 = vector.shape_cast %253 : vector<8x8xf32> to vector<1x8x8xf32>
    %cst_67 = arith.constant dense<0.000000e+00> : vector<1xf32>
    %255 = vector.multi_reduction <add>, %254, %cst_67 [1, 2] : vector<1x8x8xf32> to vector<1xf32>
    %256 = vector.shape_cast %255 : vector<1xf32> to vector<1x1x1xf32>
    %257 = vector.extract %256[0, 0, 0] : f32 from vector<1x1x1xf32>
    %258 = arith.addf %250, %257 : f32
    %cst_68 = arith.constant -5.000000e+03 : f32
    %259 = vector.broadcast %cst_68 : f32 to vector<8x8xf32>
    %260 = arith.mulf %88, %259 : vector<8x8xf32>
    %261 = math.exp %260 : vector<8x8xf32>
    %262 = vector.shape_cast %261 : vector<8x8xf32> to vector<1x8x8xf32>
    %cst_69 = arith.constant dense<0.000000e+00> : vector<1xf32>
    %263 = vector.multi_reduction <add>, %262, %cst_69 [1, 2] : vector<1x8x8xf32> to vector<1xf32>
    %264 = vector.shape_cast %263 : vector<1xf32> to vector<1x1x1xf32>
    %265 = vector.extract %264[0, 0, 0] : f32 from vector<1x1x1xf32>
    %266 = arith.addf %258, %265 : f32
    %cst_70 = arith.constant -5.000000e+02 : f32
    %267 = vector.broadcast %cst_70 : f32 to vector<8x8xf32>
    %268 = arith.mulf %88, %267 : vector<8x8xf32>
    %269 = math.exp %268 : vector<8x8xf32>
    %270 = vector.shape_cast %269 : vector<8x8xf32> to vector<1x8x8xf32>
    %cst_71 = arith.constant dense<0.000000e+00> : vector<1xf32>
    %271 = vector.multi_reduction <add>, %270, %cst_71 [1, 2] : vector<1x8x8xf32> to vector<1xf32>
    %272 = vector.shape_cast %271 : vector<1xf32> to vector<1x1x1xf32>
    %273 = vector.extract %272[0, 0, 0] : f32 from vector<1x1x1xf32>
    %274 = arith.addf %266, %273 : f32
    %cst_72 = arith.constant -5.000000e+01 : f32
    %275 = vector.broadcast %cst_72 : f32 to vector<8x8xf32>
    %276 = arith.mulf %88, %275 : vector<8x8xf32>
    %277 = math.exp %276 : vector<8x8xf32>
    %278 = vector.shape_cast %277 : vector<8x8xf32> to vector<1x8x8xf32>
    %cst_73 = arith.constant dense<0.000000e+00> : vector<1xf32>
    %279 = vector.multi_reduction <add>, %278, %cst_73 [1, 2] : vector<1x8x8xf32> to vector<1xf32>
    %280 = vector.shape_cast %279 : vector<1xf32> to vector<1x1x1xf32>
    %281 = vector.extract %280[0, 0, 0] : f32 from vector<1x1x1xf32>
    %282 = arith.addf %274, %281 : f32
    %cst_74 = arith.constant -5.000000e+00 : f32
    %283 = vector.broadcast %cst_74 : f32 to vector<8x8xf32>
    %284 = arith.mulf %88, %283 : vector<8x8xf32>
    %285 = math.exp %284 : vector<8x8xf32>
    %286 = vector.shape_cast %285 : vector<8x8xf32> to vector<1x8x8xf32>
    %cst_75 = arith.constant dense<0.000000e+00> : vector<1xf32>
    %287 = vector.multi_reduction <add>, %286, %cst_75 [1, 2] : vector<1x8x8xf32> to vector<1xf32>
    %288 = vector.shape_cast %287 : vector<1xf32> to vector<1x1x1xf32>
    %289 = vector.extract %288[0, 0, 0] : f32 from vector<1x1x1xf32>
    %290 = arith.addf %282, %289 : f32
    %cst_76 = arith.constant -5.000000e-01 : f32
    %291 = vector.broadcast %cst_76 : f32 to vector<8x8xf32>
    %292 = arith.mulf %88, %291 : vector<8x8xf32>
    %293 = math.exp %292 : vector<8x8xf32>
    %294 = vector.shape_cast %293 : vector<8x8xf32> to vector<1x8x8xf32>
    %cst_77 = arith.constant dense<0.000000e+00> : vector<1xf32>
    %295 = vector.multi_reduction <add>, %294, %cst_77 [1, 2] : vector<1x8x8xf32> to vector<1xf32>
    %296 = vector.shape_cast %295 : vector<1xf32> to vector<1x1x1xf32>
    %297 = vector.extract %296[0, 0, 0] : f32 from vector<1x1x1xf32>
    %298 = arith.addf %290, %297 : f32
    %cst_78 = arith.constant -1.000000e-01 : f32
    %299 = vector.broadcast %cst_78 : f32 to vector<8x8xf32>
    %300 = arith.mulf %88, %299 : vector<8x8xf32>
    %301 = math.exp %300 : vector<8x8xf32>
    %302 = vector.shape_cast %301 : vector<8x8xf32> to vector<1x8x8xf32>
    %cst_79 = arith.constant dense<0.000000e+00> : vector<1xf32>
    %303 = vector.multi_reduction <add>, %302, %cst_79 [1, 2] : vector<1x8x8xf32> to vector<1xf32>
    %304 = vector.shape_cast %303 : vector<1xf32> to vector<1x1x1xf32>
    %305 = vector.extract %304[0, 0, 0] : f32 from vector<1x1x1xf32>
    %306 = arith.addf %298, %305 : f32
    %cst_80 = arith.constant -5.000000e-02 : f32
    %307 = vector.broadcast %cst_80 : f32 to vector<8x8xf32>
    %308 = arith.mulf %88, %307 : vector<8x8xf32>
    %309 = math.exp %308 : vector<8x8xf32>
    %310 = vector.shape_cast %309 : vector<8x8xf32> to vector<1x8x8xf32>
    %cst_81 = arith.constant dense<0.000000e+00> : vector<1xf32>
    %311 = vector.multi_reduction <add>, %310, %cst_81 [1, 2] : vector<1x8x8xf32> to vector<1xf32>
    %312 = vector.shape_cast %311 : vector<1xf32> to vector<1x1x1xf32>
    %313 = vector.extract %312[0, 0, 0] : f32 from vector<1x1x1xf32>
    %314 = arith.addf %306, %313 : f32
    %cst_82 = arith.constant -0.0333333351 : f32
    %315 = vector.broadcast %cst_82 : f32 to vector<8x8xf32>
    %316 = arith.mulf %88, %315 : vector<8x8xf32>
    %317 = math.exp %316 : vector<8x8xf32>
    %318 = vector.shape_cast %317 : vector<8x8xf32> to vector<1x8x8xf32>
    %cst_83 = arith.constant dense<0.000000e+00> : vector<1xf32>
    %319 = vector.multi_reduction <add>, %318, %cst_83 [1, 2] : vector<1x8x8xf32> to vector<1xf32>
    %320 = vector.shape_cast %319 : vector<1xf32> to vector<1x1x1xf32>
    %321 = vector.extract %320[0, 0, 0] : f32 from vector<1x1x1xf32>
    %322 = arith.addf %314, %321 : f32
    %cst_84 = arith.constant -2.500000e-02 : f32
    %323 = vector.broadcast %cst_84 : f32 to vector<8x8xf32>
    %324 = arith.mulf %88, %323 : vector<8x8xf32>
    %325 = math.exp %324 : vector<8x8xf32>
    %326 = vector.shape_cast %325 : vector<8x8xf32> to vector<1x8x8xf32>
    %cst_85 = arith.constant dense<0.000000e+00> : vector<1xf32>
    %327 = vector.multi_reduction <add>, %326, %cst_85 [1, 2] : vector<1x8x8xf32> to vector<1xf32>
    %328 = vector.shape_cast %327 : vector<1xf32> to vector<1x1x1xf32>
    %329 = vector.extract %328[0, 0, 0] : f32 from vector<1x1x1xf32>
    %330 = arith.addf %322, %329 : f32
    %cst_86 = arith.constant -2.000000e-02 : f32
    %331 = vector.broadcast %cst_86 : f32 to vector<8x8xf32>
    %332 = arith.mulf %88, %331 : vector<8x8xf32>
    %333 = math.exp %332 : vector<8x8xf32>
    %334 = vector.shape_cast %333 : vector<8x8xf32> to vector<1x8x8xf32>
    %cst_87 = arith.constant dense<0.000000e+00> : vector<1xf32>
    %335 = vector.multi_reduction <add>, %334, %cst_87 [1, 2] : vector<1x8x8xf32> to vector<1xf32>
    %336 = vector.shape_cast %335 : vector<1xf32> to vector<1x1x1xf32>
    %337 = vector.extract %336[0, 0, 0] : f32 from vector<1x1x1xf32>
    %338 = arith.addf %330, %337 : f32
    %cst_88 = arith.constant -0.0166666675 : f32
    %339 = vector.broadcast %cst_88 : f32 to vector<8x8xf32>
    %340 = arith.mulf %88, %339 : vector<8x8xf32>
    %341 = math.exp %340 : vector<8x8xf32>
    %342 = vector.shape_cast %341 : vector<8x8xf32> to vector<1x8x8xf32>
    %cst_89 = arith.constant dense<0.000000e+00> : vector<1xf32>
    %343 = vector.multi_reduction <add>, %342, %cst_89 [1, 2] : vector<1x8x8xf32> to vector<1xf32>
    %344 = vector.shape_cast %343 : vector<1xf32> to vector<1x1x1xf32>
    %345 = vector.extract %344[0, 0, 0] : f32 from vector<1x1x1xf32>
    %346 = arith.addf %338, %345 : f32
    %cst_90 = arith.constant -0.0142857144 : f32
    %347 = vector.broadcast %cst_90 : f32 to vector<8x8xf32>
    %348 = arith.mulf %88, %347 : vector<8x8xf32>
    %349 = math.exp %348 : vector<8x8xf32>
    %350 = vector.shape_cast %349 : vector<8x8xf32> to vector<1x8x8xf32>
    %cst_91 = arith.constant dense<0.000000e+00> : vector<1xf32>
    %351 = vector.multi_reduction <add>, %350, %cst_91 [1, 2] : vector<1x8x8xf32> to vector<1xf32>
    %352 = vector.shape_cast %351 : vector<1xf32> to vector<1x1x1xf32>
    %353 = vector.extract %352[0, 0, 0] : f32 from vector<1x1x1xf32>
    %354 = arith.addf %346, %353 : f32
    %cst_92 = arith.constant -5.000000e-03 : f32
    %355 = vector.broadcast %cst_92 : f32 to vector<8x8xf32>
    %356 = arith.mulf %88, %355 : vector<8x8xf32>
    %357 = math.exp %356 : vector<8x8xf32>
    %358 = vector.shape_cast %357 : vector<8x8xf32> to vector<1x8x8xf32>
    %cst_93 = arith.constant dense<0.000000e+00> : vector<1xf32>
    %359 = vector.multi_reduction <add>, %358, %cst_93 [1, 2] : vector<1x8x8xf32> to vector<1xf32>
    %360 = vector.shape_cast %359 : vector<1xf32> to vector<1x1x1xf32>
    %361 = vector.extract %360[0, 0, 0] : f32 from vector<1x1x1xf32>
    %362 = arith.addf %354, %361 : f32
    %cst_94 = arith.constant -5.000000e-04 : f32
    %363 = vector.broadcast %cst_94 : f32 to vector<8x8xf32>
    %364 = arith.mulf %88, %363 : vector<8x8xf32>
    %365 = math.exp %364 : vector<8x8xf32>
    %366 = vector.shape_cast %365 : vector<8x8xf32> to vector<1x8x8xf32>
    %cst_95 = arith.constant dense<0.000000e+00> : vector<1xf32>
    %367 = vector.multi_reduction <add>, %366, %cst_95 [1, 2] : vector<1x8x8xf32> to vector<1xf32>
    %368 = vector.shape_cast %367 : vector<1xf32> to vector<1x1x1xf32>
    %369 = vector.extract %368[0, 0, 0] : f32 from vector<1x1x1xf32>
    %370 = arith.addf %362, %369 : f32
    %cst_96 = arith.constant -5.000000e-05 : f32
    %371 = vector.broadcast %cst_96 : f32 to vector<8x8xf32>
    %372 = arith.mulf %88, %371 : vector<8x8xf32>
    %373 = math.exp %372 : vector<8x8xf32>
    %374 = vector.shape_cast %373 : vector<8x8xf32> to vector<1x8x8xf32>
    %cst_97 = arith.constant dense<0.000000e+00> : vector<1xf32>
    %375 = vector.multi_reduction <add>, %374, %cst_97 [1, 2] : vector<1x8x8xf32> to vector<1xf32>
    %376 = vector.shape_cast %375 : vector<1xf32> to vector<1x1x1xf32>
    %377 = vector.extract %376[0, 0, 0] : f32 from vector<1x1x1xf32>
    %378 = arith.addf %370, %377 : f32
    %cst_98 = arith.constant -5.000000e-06 : f32
    %379 = vector.broadcast %cst_98 : f32 to vector<8x8xf32>
    %380 = arith.mulf %88, %379 : vector<8x8xf32>
    %381 = math.exp %380 : vector<8x8xf32>
    %382 = vector.shape_cast %381 : vector<8x8xf32> to vector<1x8x8xf32>
    %cst_99 = arith.constant dense<0.000000e+00> : vector<1xf32>
    %383 = vector.multi_reduction <add>, %382, %cst_99 [1, 2] : vector<1x8x8xf32> to vector<1xf32>
    %384 = vector.shape_cast %383 : vector<1xf32> to vector<1x1x1xf32>
    %385 = vector.extract %384[0, 0, 0] : f32 from vector<1x1x1xf32>
    %386 = arith.addf %378, %385 : f32
    %cst_100 = arith.constant -5.000000e-07 : f32
    %387 = vector.broadcast %cst_100 : f32 to vector<8x8xf32>
    %388 = arith.mulf %88, %387 : vector<8x8xf32>
    %389 = math.exp %388 : vector<8x8xf32>
    %390 = vector.shape_cast %389 : vector<8x8xf32> to vector<1x8x8xf32>
    %cst_101 = arith.constant dense<0.000000e+00> : vector<1xf32>
    %391 = vector.multi_reduction <add>, %390, %cst_101 [1, 2] : vector<1x8x8xf32> to vector<1xf32>
    %392 = vector.shape_cast %391 : vector<1xf32> to vector<1x1x1xf32>
    %393 = vector.extract %392[0, 0, 0] : f32 from vector<1x1x1xf32>
    %394 = arith.addf %386, %393 : f32
    %cst_102 = arith.constant 1.562500e-02 : f32
    %395 = arith.mulf %394, %cst_102 : f32
    %396 = arith.addf %242, %395 : f32
    %cst_103 = arith.constant -5.000000e+05 : f32
    %397 = vector.broadcast %cst_103 : f32 to vector<8x8xf32>
    %398 = arith.mulf %89, %397 : vector<8x8xf32>
    %399 = math.exp %398 : vector<8x8xf32>
    %400 = vector.shape_cast %399 : vector<8x8xf32> to vector<1x8x8xf32>
    %cst_104 = arith.constant dense<0.000000e+00> : vector<1xf32>
    %401 = vector.multi_reduction <add>, %400, %cst_104 [1, 2] : vector<1x8x8xf32> to vector<1xf32>
    %402 = vector.shape_cast %401 : vector<1xf32> to vector<1x1x1xf32>
    %403 = vector.extract %402[0, 0, 0] : f32 from vector<1x1x1xf32>
    %cst_105 = arith.constant 0.000000e+00 : f32
    %404 = arith.addf %cst_105, %403 : f32
    %cst_106 = arith.constant -5.000000e+04 : f32
    %405 = vector.broadcast %cst_106 : f32 to vector<8x8xf32>
    %406 = arith.mulf %89, %405 : vector<8x8xf32>
    %407 = math.exp %406 : vector<8x8xf32>
    %408 = vector.shape_cast %407 : vector<8x8xf32> to vector<1x8x8xf32>
    %cst_107 = arith.constant dense<0.000000e+00> : vector<1xf32>
    %409 = vector.multi_reduction <add>, %408, %cst_107 [1, 2] : vector<1x8x8xf32> to vector<1xf32>
    %410 = vector.shape_cast %409 : vector<1xf32> to vector<1x1x1xf32>
    %411 = vector.extract %410[0, 0, 0] : f32 from vector<1x1x1xf32>
    %412 = arith.addf %404, %411 : f32
    %cst_108 = arith.constant -5.000000e+03 : f32
    %413 = vector.broadcast %cst_108 : f32 to vector<8x8xf32>
    %414 = arith.mulf %89, %413 : vector<8x8xf32>
    %415 = math.exp %414 : vector<8x8xf32>
    %416 = vector.shape_cast %415 : vector<8x8xf32> to vector<1x8x8xf32>
    %cst_109 = arith.constant dense<0.000000e+00> : vector<1xf32>
    %417 = vector.multi_reduction <add>, %416, %cst_109 [1, 2] : vector<1x8x8xf32> to vector<1xf32>
    %418 = vector.shape_cast %417 : vector<1xf32> to vector<1x1x1xf32>
    %419 = vector.extract %418[0, 0, 0] : f32 from vector<1x1x1xf32>
    %420 = arith.addf %412, %419 : f32
    %cst_110 = arith.constant -5.000000e+02 : f32
    %421 = vector.broadcast %cst_110 : f32 to vector<8x8xf32>
    %422 = arith.mulf %89, %421 : vector<8x8xf32>
    %423 = math.exp %422 : vector<8x8xf32>
    %424 = vector.shape_cast %423 : vector<8x8xf32> to vector<1x8x8xf32>
    %cst_111 = arith.constant dense<0.000000e+00> : vector<1xf32>
    %425 = vector.multi_reduction <add>, %424, %cst_111 [1, 2] : vector<1x8x8xf32> to vector<1xf32>
    %426 = vector.shape_cast %425 : vector<1xf32> to vector<1x1x1xf32>
    %427 = vector.extract %426[0, 0, 0] : f32 from vector<1x1x1xf32>
    %428 = arith.addf %420, %427 : f32
    %cst_112 = arith.constant -5.000000e+01 : f32
    %429 = vector.broadcast %cst_112 : f32 to vector<8x8xf32>
    %430 = arith.mulf %89, %429 : vector<8x8xf32>
    %431 = math.exp %430 : vector<8x8xf32>
    %432 = vector.shape_cast %431 : vector<8x8xf32> to vector<1x8x8xf32>
    %cst_113 = arith.constant dense<0.000000e+00> : vector<1xf32>
    %433 = vector.multi_reduction <add>, %432, %cst_113 [1, 2] : vector<1x8x8xf32> to vector<1xf32>
    %434 = vector.shape_cast %433 : vector<1xf32> to vector<1x1x1xf32>
    %435 = vector.extract %434[0, 0, 0] : f32 from vector<1x1x1xf32>
    %436 = arith.addf %428, %435 : f32
    %cst_114 = arith.constant -5.000000e+00 : f32
    %437 = vector.broadcast %cst_114 : f32 to vector<8x8xf32>
    %438 = arith.mulf %89, %437 : vector<8x8xf32>
    %439 = math.exp %438 : vector<8x8xf32>
    %440 = vector.shape_cast %439 : vector<8x8xf32> to vector<1x8x8xf32>
    %cst_115 = arith.constant dense<0.000000e+00> : vector<1xf32>
    %441 = vector.multi_reduction <add>, %440, %cst_115 [1, 2] : vector<1x8x8xf32> to vector<1xf32>
    %442 = vector.shape_cast %441 : vector<1xf32> to vector<1x1x1xf32>
    %443 = vector.extract %442[0, 0, 0] : f32 from vector<1x1x1xf32>
    %444 = arith.addf %436, %443 : f32
    %cst_116 = arith.constant -5.000000e-01 : f32
    %445 = vector.broadcast %cst_116 : f32 to vector<8x8xf32>
    %446 = arith.mulf %89, %445 : vector<8x8xf32>
    %447 = math.exp %446 : vector<8x8xf32>
    %448 = vector.shape_cast %447 : vector<8x8xf32> to vector<1x8x8xf32>
    %cst_117 = arith.constant dense<0.000000e+00> : vector<1xf32>
    %449 = vector.multi_reduction <add>, %448, %cst_117 [1, 2] : vector<1x8x8xf32> to vector<1xf32>
    %450 = vector.shape_cast %449 : vector<1xf32> to vector<1x1x1xf32>
    %451 = vector.extract %450[0, 0, 0] : f32 from vector<1x1x1xf32>
    %452 = arith.addf %444, %451 : f32
    %cst_118 = arith.constant -1.000000e-01 : f32
    %453 = vector.broadcast %cst_118 : f32 to vector<8x8xf32>
    %454 = arith.mulf %89, %453 : vector<8x8xf32>
    %455 = math.exp %454 : vector<8x8xf32>
    %456 = vector.shape_cast %455 : vector<8x8xf32> to vector<1x8x8xf32>
    %cst_119 = arith.constant dense<0.000000e+00> : vector<1xf32>
    %457 = vector.multi_reduction <add>, %456, %cst_119 [1, 2] : vector<1x8x8xf32> to vector<1xf32>
    %458 = vector.shape_cast %457 : vector<1xf32> to vector<1x1x1xf32>
    %459 = vector.extract %458[0, 0, 0] : f32 from vector<1x1x1xf32>
    %460 = arith.addf %452, %459 : f32
    %cst_120 = arith.constant -5.000000e-02 : f32
    %461 = vector.broadcast %cst_120 : f32 to vector<8x8xf32>
    %462 = arith.mulf %89, %461 : vector<8x8xf32>
    %463 = math.exp %462 : vector<8x8xf32>
    %464 = vector.shape_cast %463 : vector<8x8xf32> to vector<1x8x8xf32>
    %cst_121 = arith.constant dense<0.000000e+00> : vector<1xf32>
    %465 = vector.multi_reduction <add>, %464, %cst_121 [1, 2] : vector<1x8x8xf32> to vector<1xf32>
    %466 = vector.shape_cast %465 : vector<1xf32> to vector<1x1x1xf32>
    %467 = vector.extract %466[0, 0, 0] : f32 from vector<1x1x1xf32>
    %468 = arith.addf %460, %467 : f32
    %cst_122 = arith.constant -0.0333333351 : f32
    %469 = vector.broadcast %cst_122 : f32 to vector<8x8xf32>
    %470 = arith.mulf %89, %469 : vector<8x8xf32>
    %471 = math.exp %470 : vector<8x8xf32>
    %472 = vector.shape_cast %471 : vector<8x8xf32> to vector<1x8x8xf32>
    %cst_123 = arith.constant dense<0.000000e+00> : vector<1xf32>
    %473 = vector.multi_reduction <add>, %472, %cst_123 [1, 2] : vector<1x8x8xf32> to vector<1xf32>
    %474 = vector.shape_cast %473 : vector<1xf32> to vector<1x1x1xf32>
    %475 = vector.extract %474[0, 0, 0] : f32 from vector<1x1x1xf32>
    %476 = arith.addf %468, %475 : f32
    %cst_124 = arith.constant -2.500000e-02 : f32
    %477 = vector.broadcast %cst_124 : f32 to vector<8x8xf32>
    %478 = arith.mulf %89, %477 : vector<8x8xf32>
    %479 = math.exp %478 : vector<8x8xf32>
    %480 = vector.shape_cast %479 : vector<8x8xf32> to vector<1x8x8xf32>
    %cst_125 = arith.constant dense<0.000000e+00> : vector<1xf32>
    %481 = vector.multi_reduction <add>, %480, %cst_125 [1, 2] : vector<1x8x8xf32> to vector<1xf32>
    %482 = vector.shape_cast %481 : vector<1xf32> to vector<1x1x1xf32>
    %483 = vector.extract %482[0, 0, 0] : f32 from vector<1x1x1xf32>
    %484 = arith.addf %476, %483 : f32
    %cst_126 = arith.constant -2.000000e-02 : f32
    %485 = vector.broadcast %cst_126 : f32 to vector<8x8xf32>
    %486 = arith.mulf %89, %485 : vector<8x8xf32>
    %487 = math.exp %486 : vector<8x8xf32>
    %488 = vector.shape_cast %487 : vector<8x8xf32> to vector<1x8x8xf32>
    %cst_127 = arith.constant dense<0.000000e+00> : vector<1xf32>
    %489 = vector.multi_reduction <add>, %488, %cst_127 [1, 2] : vector<1x8x8xf32> to vector<1xf32>
    %490 = vector.shape_cast %489 : vector<1xf32> to vector<1x1x1xf32>
    %491 = vector.extract %490[0, 0, 0] : f32 from vector<1x1x1xf32>
    %492 = arith.addf %484, %491 : f32
    %cst_128 = arith.constant -0.0166666675 : f32
    %493 = vector.broadcast %cst_128 : f32 to vector<8x8xf32>
    %494 = arith.mulf %89, %493 : vector<8x8xf32>
    %495 = math.exp %494 : vector<8x8xf32>
    %496 = vector.shape_cast %495 : vector<8x8xf32> to vector<1x8x8xf32>
    %cst_129 = arith.constant dense<0.000000e+00> : vector<1xf32>
    %497 = vector.multi_reduction <add>, %496, %cst_129 [1, 2] : vector<1x8x8xf32> to vector<1xf32>
    %498 = vector.shape_cast %497 : vector<1xf32> to vector<1x1x1xf32>
    %499 = vector.extract %498[0, 0, 0] : f32 from vector<1x1x1xf32>
    %500 = arith.addf %492, %499 : f32
    %cst_130 = arith.constant -0.0142857144 : f32
    %501 = vector.broadcast %cst_130 : f32 to vector<8x8xf32>
    %502 = arith.mulf %89, %501 : vector<8x8xf32>
    %503 = math.exp %502 : vector<8x8xf32>
    %504 = vector.shape_cast %503 : vector<8x8xf32> to vector<1x8x8xf32>
    %cst_131 = arith.constant dense<0.000000e+00> : vector<1xf32>
    %505 = vector.multi_reduction <add>, %504, %cst_131 [1, 2] : vector<1x8x8xf32> to vector<1xf32>
    %506 = vector.shape_cast %505 : vector<1xf32> to vector<1x1x1xf32>
    %507 = vector.extract %506[0, 0, 0] : f32 from vector<1x1x1xf32>
    %508 = arith.addf %500, %507 : f32
    %cst_132 = arith.constant -5.000000e-03 : f32
    %509 = vector.broadcast %cst_132 : f32 to vector<8x8xf32>
    %510 = arith.mulf %89, %509 : vector<8x8xf32>
    %511 = math.exp %510 : vector<8x8xf32>
    %512 = vector.shape_cast %511 : vector<8x8xf32> to vector<1x8x8xf32>
    %cst_133 = arith.constant dense<0.000000e+00> : vector<1xf32>
    %513 = vector.multi_reduction <add>, %512, %cst_133 [1, 2] : vector<1x8x8xf32> to vector<1xf32>
    %514 = vector.shape_cast %513 : vector<1xf32> to vector<1x1x1xf32>
    %515 = vector.extract %514[0, 0, 0] : f32 from vector<1x1x1xf32>
    %516 = arith.addf %508, %515 : f32
    %cst_134 = arith.constant -5.000000e-04 : f32
    %517 = vector.broadcast %cst_134 : f32 to vector<8x8xf32>
    %518 = arith.mulf %89, %517 : vector<8x8xf32>
    %519 = math.exp %518 : vector<8x8xf32>
    %520 = vector.shape_cast %519 : vector<8x8xf32> to vector<1x8x8xf32>
    %cst_135 = arith.constant dense<0.000000e+00> : vector<1xf32>
    %521 = vector.multi_reduction <add>, %520, %cst_135 [1, 2] : vector<1x8x8xf32> to vector<1xf32>
    %522 = vector.shape_cast %521 : vector<1xf32> to vector<1x1x1xf32>
    %523 = vector.extract %522[0, 0, 0] : f32 from vector<1x1x1xf32>
    %524 = arith.addf %516, %523 : f32
    %cst_136 = arith.constant -5.000000e-05 : f32
    %525 = vector.broadcast %cst_136 : f32 to vector<8x8xf32>
    %526 = arith.mulf %89, %525 : vector<8x8xf32>
    %527 = math.exp %526 : vector<8x8xf32>
    %528 = vector.shape_cast %527 : vector<8x8xf32> to vector<1x8x8xf32>
    %cst_137 = arith.constant dense<0.000000e+00> : vector<1xf32>
    %529 = vector.multi_reduction <add>, %528, %cst_137 [1, 2] : vector<1x8x8xf32> to vector<1xf32>
    %530 = vector.shape_cast %529 : vector<1xf32> to vector<1x1x1xf32>
    %531 = vector.extract %530[0, 0, 0] : f32 from vector<1x1x1xf32>
    %532 = arith.addf %524, %531 : f32
    %cst_138 = arith.constant -5.000000e-06 : f32
    %533 = vector.broadcast %cst_138 : f32 to vector<8x8xf32>
    %534 = arith.mulf %89, %533 : vector<8x8xf32>
    %535 = math.exp %534 : vector<8x8xf32>
    %536 = vector.shape_cast %535 : vector<8x8xf32> to vector<1x8x8xf32>
    %cst_139 = arith.constant dense<0.000000e+00> : vector<1xf32>
    %537 = vector.multi_reduction <add>, %536, %cst_139 [1, 2] : vector<1x8x8xf32> to vector<1xf32>
    %538 = vector.shape_cast %537 : vector<1xf32> to vector<1x1x1xf32>
    %539 = vector.extract %538[0, 0, 0] : f32 from vector<1x1x1xf32>
    %540 = arith.addf %532, %539 : f32
    %cst_140 = arith.constant -5.000000e-07 : f32
    %541 = vector.broadcast %cst_140 : f32 to vector<8x8xf32>
    %542 = arith.mulf %89, %541 : vector<8x8xf32>
    %543 = math.exp %542 : vector<8x8xf32>
    %544 = vector.shape_cast %543 : vector<8x8xf32> to vector<1x8x8xf32>
    %cst_141 = arith.constant dense<0.000000e+00> : vector<1xf32>
    %545 = vector.multi_reduction <add>, %544, %cst_141 [1, 2] : vector<1x8x8xf32> to vector<1xf32>
    %546 = vector.shape_cast %545 : vector<1xf32> to vector<1x1x1xf32>
    %547 = vector.extract %546[0, 0, 0] : f32 from vector<1x1x1xf32>
    %548 = arith.addf %540, %547 : f32
    %cst_142 = arith.constant 1.562500e-02 : f32
    %549 = arith.mulf %548, %cst_142 : f32
    %cst_143 = arith.constant 2.000000e+00 : f32
    %550 = arith.mulf %cst_143, %549 : f32
    %551 = arith.subf %396, %550 : f32
    %552 = tpu.concatenate %53, %65 in 0 : vector<12x2xf32>, vector<12x2xf32> -> vector<24x2xf32>
    %cst_144 = arith.constant dense<0.000000e+00> : vector<24x24xf32>
    %553 = tpu.matmul %552, %552, %cst_144 {dimension_numbers = #tpu.dot_dimension_numbers<[1], [1], [0], [0], [0, 0, 1, 0], [], []>} : vector<24x2xf32>, vector<24x2xf32>, vector<24x24xf32> -> vector<24x24xf32>
    %554 = tpu.iota {dimensions = array<i32: 0>} : vector<24x24xi32>
    %555 = tpu.iota {dimensions = array<i32: 1>} : vector<24x24xi32>
    %556 = arith.cmpi eq, %554, %555 : vector<24x24xi32>
    %cst_145 = arith.constant 0.000000e+00 : f32
    %557 = vector.broadcast %cst_145 : f32 to vector<24x24xf32>
    %558 = arith.select %556, %553, %557 : vector<24x24xi1>, vector<24x24xf32>
    %cst_146 = arith.constant dense<0.000000e+00> : vector<24xf32>
    %559 = vector.multi_reduction <add>, %558, %cst_146 [1] : vector<24x24xf32> to vector<24xf32>
    %560 = vector.shape_cast %559 : vector<24xf32> to vector<24x1xf32>
    %cst_147 = arith.constant dense<0.000000e+00> : vector<24xf32>
    %561 = vector.multi_reduction <add>, %558, %cst_147 [0] : vector<24x24xf32> to vector<24xf32>
    %562 = vector.shape_cast %561 : vector<24xf32> to vector<1x24xf32>
    %563 = vector.broadcast %560 : vector<24x1xf32> to vector<24x24xf32>
    %564 = vector.broadcast %562 : vector<1x24xf32> to vector<24x24xf32>
    %565 = arith.addf %563, %564 : vector<24x24xf32>
    %cst_148 = arith.constant 2.000000e+00 : f32
    %566 = vector.broadcast %cst_148 : f32 to vector<24x24xf32>
    %567 = arith.mulf %566, %553 : vector<24x24xf32>
    %568 = arith.subf %565, %567 : vector<24x24xf32>
    %cst_149 = arith.constant 0.000000e+00 : f32
    %569 = vector.broadcast %cst_149 : f32 to vector<24x24xf32>
    %570 = arith.maximumf %568, %569 : vector<24x24xf32>
    %cst_150 = arith.constant 0.000000e+00 : f32
    %571 = vector.broadcast %cst_150 : f32 to vector<24x24xf32>
    %572 = arith.select %556, %571, %570 : vector<24x24xi1>, vector<24x24xf32>
    %573 = vector.extract_strided_slice %572 {offsets = [0, 0], sizes = [12, 12], strides = [1, 1]} : vector<24x24xf32> to vector<12x12xf32>
    %574 = vector.extract_strided_slice %572 {offsets = [12, 12], sizes = [12, 12], strides = [1, 1]} : vector<24x24xf32> to vector<12x12xf32>
    %575 = vector.extract_strided_slice %572 {offsets = [0, 12], sizes = [12, 12], strides = [1, 1]} : vector<24x24xf32> to vector<12x12xf32>
    %cst_151 = arith.constant -5.000000e+05 : f32
    %576 = vector.broadcast %cst_151 : f32 to vector<12x12xf32>
    %577 = arith.mulf %573, %576 : vector<12x12xf32>
    %578 = math.exp %577 : vector<12x12xf32>
    %579 = vector.shape_cast %578 : vector<12x12xf32> to vector<1x12x12xf32>
    %cst_152 = arith.constant dense<0.000000e+00> : vector<1xf32>
    %580 = vector.multi_reduction <add>, %579, %cst_152 [1, 2] : vector<1x12x12xf32> to vector<1xf32>
    %581 = vector.shape_cast %580 : vector<1xf32> to vector<1x1x1xf32>
    %582 = vector.extract %581[0, 0, 0] : f32 from vector<1x1x1xf32>
    %cst_153 = arith.constant 0.000000e+00 : f32
    %583 = arith.addf %cst_153, %582 : f32
    %cst_154 = arith.constant -5.000000e+04 : f32
    %584 = vector.broadcast %cst_154 : f32 to vector<12x12xf32>
    %585 = arith.mulf %573, %584 : vector<12x12xf32>
    %586 = math.exp %585 : vector<12x12xf32>
    %587 = vector.shape_cast %586 : vector<12x12xf32> to vector<1x12x12xf32>
    %cst_155 = arith.constant dense<0.000000e+00> : vector<1xf32>
    %588 = vector.multi_reduction <add>, %587, %cst_155 [1, 2] : vector<1x12x12xf32> to vector<1xf32>
    %589 = vector.shape_cast %588 : vector<1xf32> to vector<1x1x1xf32>
    %590 = vector.extract %589[0, 0, 0] : f32 from vector<1x1x1xf32>
    %591 = arith.addf %583, %590 : f32
    %cst_156 = arith.constant -5.000000e+03 : f32
    %592 = vector.broadcast %cst_156 : f32 to vector<12x12xf32>
    %593 = arith.mulf %573, %592 : vector<12x12xf32>
    %594 = math.exp %593 : vector<12x12xf32>
    %595 = vector.shape_cast %594 : vector<12x12xf32> to vector<1x12x12xf32>
    %cst_157 = arith.constant dense<0.000000e+00> : vector<1xf32>
    %596 = vector.multi_reduction <add>, %595, %cst_157 [1, 2] : vector<1x12x12xf32> to vector<1xf32>
    %597 = vector.shape_cast %596 : vector<1xf32> to vector<1x1x1xf32>
    %598 = vector.extract %597[0, 0, 0] : f32 from vector<1x1x1xf32>
    %599 = arith.addf %591, %598 : f32
    %cst_158 = arith.constant -5.000000e+02 : f32
    %600 = vector.broadcast %cst_158 : f32 to vector<12x12xf32>
    %601 = arith.mulf %573, %600 : vector<12x12xf32>
    %602 = math.exp %601 : vector<12x12xf32>
    %603 = vector.shape_cast %602 : vector<12x12xf32> to vector<1x12x12xf32>
    %cst_159 = arith.constant dense<0.000000e+00> : vector<1xf32>
    %604 = vector.multi_reduction <add>, %603, %cst_159 [1, 2] : vector<1x12x12xf32> to vector<1xf32>
    %605 = vector.shape_cast %604 : vector<1xf32> to vector<1x1x1xf32>
    %606 = vector.extract %605[0, 0, 0] : f32 from vector<1x1x1xf32>
    %607 = arith.addf %599, %606 : f32
    %cst_160 = arith.constant -5.000000e+01 : f32
    %608 = vector.broadcast %cst_160 : f32 to vector<12x12xf32>
    %609 = arith.mulf %573, %608 : vector<12x12xf32>
    %610 = math.exp %609 : vector<12x12xf32>
    %611 = vector.shape_cast %610 : vector<12x12xf32> to vector<1x12x12xf32>
    %cst_161 = arith.constant dense<0.000000e+00> : vector<1xf32>
    %612 = vector.multi_reduction <add>, %611, %cst_161 [1, 2] : vector<1x12x12xf32> to vector<1xf32>
    %613 = vector.shape_cast %612 : vector<1xf32> to vector<1x1x1xf32>
    %614 = vector.extract %613[0, 0, 0] : f32 from vector<1x1x1xf32>
    %615 = arith.addf %607, %614 : f32
    %cst_162 = arith.constant -5.000000e+00 : f32
    %616 = vector.broadcast %cst_162 : f32 to vector<12x12xf32>
    %617 = arith.mulf %573, %616 : vector<12x12xf32>
    %618 = math.exp %617 : vector<12x12xf32>
    %619 = vector.shape_cast %618 : vector<12x12xf32> to vector<1x12x12xf32>
    %cst_163 = arith.constant dense<0.000000e+00> : vector<1xf32>
    %620 = vector.multi_reduction <add>, %619, %cst_163 [1, 2] : vector<1x12x12xf32> to vector<1xf32>
    %621 = vector.shape_cast %620 : vector<1xf32> to vector<1x1x1xf32>
    %622 = vector.extract %621[0, 0, 0] : f32 from vector<1x1x1xf32>
    %623 = arith.addf %615, %622 : f32
    %cst_164 = arith.constant -5.000000e-01 : f32
    %624 = vector.broadcast %cst_164 : f32 to vector<12x12xf32>
    %625 = arith.mulf %573, %624 : vector<12x12xf32>
    %626 = math.exp %625 : vector<12x12xf32>
    %627 = vector.shape_cast %626 : vector<12x12xf32> to vector<1x12x12xf32>
    %cst_165 = arith.constant dense<0.000000e+00> : vector<1xf32>
    %628 = vector.multi_reduction <add>, %627, %cst_165 [1, 2] : vector<1x12x12xf32> to vector<1xf32>
    %629 = vector.shape_cast %628 : vector<1xf32> to vector<1x1x1xf32>
    %630 = vector.extract %629[0, 0, 0] : f32 from vector<1x1x1xf32>
    %631 = arith.addf %623, %630 : f32
    %cst_166 = arith.constant -1.000000e-01 : f32
    %632 = vector.broadcast %cst_166 : f32 to vector<12x12xf32>
    %633 = arith.mulf %573, %632 : vector<12x12xf32>
    %634 = math.exp %633 : vector<12x12xf32>
    %635 = vector.shape_cast %634 : vector<12x12xf32> to vector<1x12x12xf32>
    %cst_167 = arith.constant dense<0.000000e+00> : vector<1xf32>
    %636 = vector.multi_reduction <add>, %635, %cst_167 [1, 2] : vector<1x12x12xf32> to vector<1xf32>
    %637 = vector.shape_cast %636 : vector<1xf32> to vector<1x1x1xf32>
    %638 = vector.extract %637[0, 0, 0] : f32 from vector<1x1x1xf32>
    %639 = arith.addf %631, %638 : f32
    %cst_168 = arith.constant -5.000000e-02 : f32
    %640 = vector.broadcast %cst_168 : f32 to vector<12x12xf32>
    %641 = arith.mulf %573, %640 : vector<12x12xf32>
    %642 = math.exp %641 : vector<12x12xf32>
    %643 = vector.shape_cast %642 : vector<12x12xf32> to vector<1x12x12xf32>
    %cst_169 = arith.constant dense<0.000000e+00> : vector<1xf32>
    %644 = vector.multi_reduction <add>, %643, %cst_169 [1, 2] : vector<1x12x12xf32> to vector<1xf32>
    %645 = vector.shape_cast %644 : vector<1xf32> to vector<1x1x1xf32>
    %646 = vector.extract %645[0, 0, 0] : f32 from vector<1x1x1xf32>
    %647 = arith.addf %639, %646 : f32
    %cst_170 = arith.constant -0.0333333351 : f32
    %648 = vector.broadcast %cst_170 : f32 to vector<12x12xf32>
    %649 = arith.mulf %573, %648 : vector<12x12xf32>
    %650 = math.exp %649 : vector<12x12xf32>
    %651 = vector.shape_cast %650 : vector<12x12xf32> to vector<1x12x12xf32>
    %cst_171 = arith.constant dense<0.000000e+00> : vector<1xf32>
    %652 = vector.multi_reduction <add>, %651, %cst_171 [1, 2] : vector<1x12x12xf32> to vector<1xf32>
    %653 = vector.shape_cast %652 : vector<1xf32> to vector<1x1x1xf32>
    %654 = vector.extract %653[0, 0, 0] : f32 from vector<1x1x1xf32>
    %655 = arith.addf %647, %654 : f32
    %cst_172 = arith.constant -2.500000e-02 : f32
    %656 = vector.broadcast %cst_172 : f32 to vector<12x12xf32>
    %657 = arith.mulf %573, %656 : vector<12x12xf32>
    %658 = math.exp %657 : vector<12x12xf32>
    %659 = vector.shape_cast %658 : vector<12x12xf32> to vector<1x12x12xf32>
    %cst_173 = arith.constant dense<0.000000e+00> : vector<1xf32>
    %660 = vector.multi_reduction <add>, %659, %cst_173 [1, 2] : vector<1x12x12xf32> to vector<1xf32>
    %661 = vector.shape_cast %660 : vector<1xf32> to vector<1x1x1xf32>
    %662 = vector.extract %661[0, 0, 0] : f32 from vector<1x1x1xf32>
    %663 = arith.addf %655, %662 : f32
    %cst_174 = arith.constant -2.000000e-02 : f32
    %664 = vector.broadcast %cst_174 : f32 to vector<12x12xf32>
    %665 = arith.mulf %573, %664 : vector<12x12xf32>
    %666 = math.exp %665 : vector<12x12xf32>
    %667 = vector.shape_cast %666 : vector<12x12xf32> to vector<1x12x12xf32>
    %cst_175 = arith.constant dense<0.000000e+00> : vector<1xf32>
    %668 = vector.multi_reduction <add>, %667, %cst_175 [1, 2] : vector<1x12x12xf32> to vector<1xf32>
    %669 = vector.shape_cast %668 : vector<1xf32> to vector<1x1x1xf32>
    %670 = vector.extract %669[0, 0, 0] : f32 from vector<1x1x1xf32>
    %671 = arith.addf %663, %670 : f32
    %cst_176 = arith.constant -0.0166666675 : f32
    %672 = vector.broadcast %cst_176 : f32 to vector<12x12xf32>
    %673 = arith.mulf %573, %672 : vector<12x12xf32>
    %674 = math.exp %673 : vector<12x12xf32>
    %675 = vector.shape_cast %674 : vector<12x12xf32> to vector<1x12x12xf32>
    %cst_177 = arith.constant dense<0.000000e+00> : vector<1xf32>
    %676 = vector.multi_reduction <add>, %675, %cst_177 [1, 2] : vector<1x12x12xf32> to vector<1xf32>
    %677 = vector.shape_cast %676 : vector<1xf32> to vector<1x1x1xf32>
    %678 = vector.extract %677[0, 0, 0] : f32 from vector<1x1x1xf32>
    %679 = arith.addf %671, %678 : f32
    %cst_178 = arith.constant -0.0142857144 : f32
    %680 = vector.broadcast %cst_178 : f32 to vector<12x12xf32>
    %681 = arith.mulf %573, %680 : vector<12x12xf32>
    %682 = math.exp %681 : vector<12x12xf32>
    %683 = vector.shape_cast %682 : vector<12x12xf32> to vector<1x12x12xf32>
    %cst_179 = arith.constant dense<0.000000e+00> : vector<1xf32>
    %684 = vector.multi_reduction <add>, %683, %cst_179 [1, 2] : vector<1x12x12xf32> to vector<1xf32>
    %685 = vector.shape_cast %684 : vector<1xf32> to vector<1x1x1xf32>
    %686 = vector.extract %685[0, 0, 0] : f32 from vector<1x1x1xf32>
    %687 = arith.addf %679, %686 : f32
    %cst_180 = arith.constant -5.000000e-03 : f32
    %688 = vector.broadcast %cst_180 : f32 to vector<12x12xf32>
    %689 = arith.mulf %573, %688 : vector<12x12xf32>
    %690 = math.exp %689 : vector<12x12xf32>
    %691 = vector.shape_cast %690 : vector<12x12xf32> to vector<1x12x12xf32>
    %cst_181 = arith.constant dense<0.000000e+00> : vector<1xf32>
    %692 = vector.multi_reduction <add>, %691, %cst_181 [1, 2] : vector<1x12x12xf32> to vector<1xf32>
    %693 = vector.shape_cast %692 : vector<1xf32> to vector<1x1x1xf32>
    %694 = vector.extract %693[0, 0, 0] : f32 from vector<1x1x1xf32>
    %695 = arith.addf %687, %694 : f32
    %cst_182 = arith.constant -5.000000e-04 : f32
    %696 = vector.broadcast %cst_182 : f32 to vector<12x12xf32>
    %697 = arith.mulf %573, %696 : vector<12x12xf32>
    %698 = math.exp %697 : vector<12x12xf32>
    %699 = vector.shape_cast %698 : vector<12x12xf32> to vector<1x12x12xf32>
    %cst_183 = arith.constant dense<0.000000e+00> : vector<1xf32>
    %700 = vector.multi_reduction <add>, %699, %cst_183 [1, 2] : vector<1x12x12xf32> to vector<1xf32>
    %701 = vector.shape_cast %700 : vector<1xf32> to vector<1x1x1xf32>
    %702 = vector.extract %701[0, 0, 0] : f32 from vector<1x1x1xf32>
    %703 = arith.addf %695, %702 : f32
    %cst_184 = arith.constant -5.000000e-05 : f32
    %704 = vector.broadcast %cst_184 : f32 to vector<12x12xf32>
    %705 = arith.mulf %573, %704 : vector<12x12xf32>
    %706 = math.exp %705 : vector<12x12xf32>
    %707 = vector.shape_cast %706 : vector<12x12xf32> to vector<1x12x12xf32>
    %cst_185 = arith.constant dense<0.000000e+00> : vector<1xf32>
    %708 = vector.multi_reduction <add>, %707, %cst_185 [1, 2] : vector<1x12x12xf32> to vector<1xf32>
    %709 = vector.shape_cast %708 : vector<1xf32> to vector<1x1x1xf32>
    %710 = vector.extract %709[0, 0, 0] : f32 from vector<1x1x1xf32>
    %711 = arith.addf %703, %710 : f32
    %cst_186 = arith.constant -5.000000e-06 : f32
    %712 = vector.broadcast %cst_186 : f32 to vector<12x12xf32>
    %713 = arith.mulf %573, %712 : vector<12x12xf32>
    %714 = math.exp %713 : vector<12x12xf32>
    %715 = vector.shape_cast %714 : vector<12x12xf32> to vector<1x12x12xf32>
    %cst_187 = arith.constant dense<0.000000e+00> : vector<1xf32>
    %716 = vector.multi_reduction <add>, %715, %cst_187 [1, 2] : vector<1x12x12xf32> to vector<1xf32>
    %717 = vector.shape_cast %716 : vector<1xf32> to vector<1x1x1xf32>
    %718 = vector.extract %717[0, 0, 0] : f32 from vector<1x1x1xf32>
    %719 = arith.addf %711, %718 : f32
    %cst_188 = arith.constant -5.000000e-07 : f32
    %720 = vector.broadcast %cst_188 : f32 to vector<12x12xf32>
    %721 = arith.mulf %573, %720 : vector<12x12xf32>
    %722 = math.exp %721 : vector<12x12xf32>
    %723 = vector.shape_cast %722 : vector<12x12xf32> to vector<1x12x12xf32>
    %cst_189 = arith.constant dense<0.000000e+00> : vector<1xf32>
    %724 = vector.multi_reduction <add>, %723, %cst_189 [1, 2] : vector<1x12x12xf32> to vector<1xf32>
    %725 = vector.shape_cast %724 : vector<1xf32> to vector<1x1x1xf32>
    %726 = vector.extract %725[0, 0, 0] : f32 from vector<1x1x1xf32>
    %727 = arith.addf %719, %726 : f32
    %cst_190 = arith.constant 0.0069444445 : f32
    %728 = arith.mulf %727, %cst_190 : f32
    %cst_191 = arith.constant -5.000000e+05 : f32
    %729 = vector.broadcast %cst_191 : f32 to vector<12x12xf32>
    %730 = arith.mulf %574, %729 : vector<12x12xf32>
    %731 = math.exp %730 : vector<12x12xf32>
    %732 = vector.shape_cast %731 : vector<12x12xf32> to vector<1x12x12xf32>
    %cst_192 = arith.constant dense<0.000000e+00> : vector<1xf32>
    %733 = vector.multi_reduction <add>, %732, %cst_192 [1, 2] : vector<1x12x12xf32> to vector<1xf32>
    %734 = vector.shape_cast %733 : vector<1xf32> to vector<1x1x1xf32>
    %735 = vector.extract %734[0, 0, 0] : f32 from vector<1x1x1xf32>
    %cst_193 = arith.constant 0.000000e+00 : f32
    %736 = arith.addf %cst_193, %735 : f32
    %cst_194 = arith.constant -5.000000e+04 : f32
    %737 = vector.broadcast %cst_194 : f32 to vector<12x12xf32>
    %738 = arith.mulf %574, %737 : vector<12x12xf32>
    %739 = math.exp %738 : vector<12x12xf32>
    %740 = vector.shape_cast %739 : vector<12x12xf32> to vector<1x12x12xf32>
    %cst_195 = arith.constant dense<0.000000e+00> : vector<1xf32>
    %741 = vector.multi_reduction <add>, %740, %cst_195 [1, 2] : vector<1x12x12xf32> to vector<1xf32>
    %742 = vector.shape_cast %741 : vector<1xf32> to vector<1x1x1xf32>
    %743 = vector.extract %742[0, 0, 0] : f32 from vector<1x1x1xf32>
    %744 = arith.addf %736, %743 : f32
    %cst_196 = arith.constant -5.000000e+03 : f32
    %745 = vector.broadcast %cst_196 : f32 to vector<12x12xf32>
    %746 = arith.mulf %574, %745 : vector<12x12xf32>
    %747 = math.exp %746 : vector<12x12xf32>
    %748 = vector.shape_cast %747 : vector<12x12xf32> to vector<1x12x12xf32>
    %cst_197 = arith.constant dense<0.000000e+00> : vector<1xf32>
    %749 = vector.multi_reduction <add>, %748, %cst_197 [1, 2] : vector<1x12x12xf32> to vector<1xf32>
    %750 = vector.shape_cast %749 : vector<1xf32> to vector<1x1x1xf32>
    %751 = vector.extract %750[0, 0, 0] : f32 from vector<1x1x1xf32>
    %752 = arith.addf %744, %751 : f32
    %cst_198 = arith.constant -5.000000e+02 : f32
    %753 = vector.broadcast %cst_198 : f32 to vector<12x12xf32>
    %754 = arith.mulf %574, %753 : vector<12x12xf32>
    %755 = math.exp %754 : vector<12x12xf32>
    %756 = vector.shape_cast %755 : vector<12x12xf32> to vector<1x12x12xf32>
    %cst_199 = arith.constant dense<0.000000e+00> : vector<1xf32>
    %757 = vector.multi_reduction <add>, %756, %cst_199 [1, 2] : vector<1x12x12xf32> to vector<1xf32>
    %758 = vector.shape_cast %757 : vector<1xf32> to vector<1x1x1xf32>
    %759 = vector.extract %758[0, 0, 0] : f32 from vector<1x1x1xf32>
    %760 = arith.addf %752, %759 : f32
    %cst_200 = arith.constant -5.000000e+01 : f32
    %761 = vector.broadcast %cst_200 : f32 to vector<12x12xf32>
    %762 = arith.mulf %574, %761 : vector<12x12xf32>
    %763 = math.exp %762 : vector<12x12xf32>
    %764 = vector.shape_cast %763 : vector<12x12xf32> to vector<1x12x12xf32>
    %cst_201 = arith.constant dense<0.000000e+00> : vector<1xf32>
    %765 = vector.multi_reduction <add>, %764, %cst_201 [1, 2] : vector<1x12x12xf32> to vector<1xf32>
    %766 = vector.shape_cast %765 : vector<1xf32> to vector<1x1x1xf32>
    %767 = vector.extract %766[0, 0, 0] : f32 from vector<1x1x1xf32>
    %768 = arith.addf %760, %767 : f32
    %cst_202 = arith.constant -5.000000e+00 : f32
    %769 = vector.broadcast %cst_202 : f32 to vector<12x12xf32>
    %770 = arith.mulf %574, %769 : vector<12x12xf32>
    %771 = math.exp %770 : vector<12x12xf32>
    %772 = vector.shape_cast %771 : vector<12x12xf32> to vector<1x12x12xf32>
    %cst_203 = arith.constant dense<0.000000e+00> : vector<1xf32>
    %773 = vector.multi_reduction <add>, %772, %cst_203 [1, 2] : vector<1x12x12xf32> to vector<1xf32>
    %774 = vector.shape_cast %773 : vector<1xf32> to vector<1x1x1xf32>
    %775 = vector.extract %774[0, 0, 0] : f32 from vector<1x1x1xf32>
    %776 = arith.addf %768, %775 : f32
    %cst_204 = arith.constant -5.000000e-01 : f32
    %777 = vector.broadcast %cst_204 : f32 to vector<12x12xf32>
    %778 = arith.mulf %574, %777 : vector<12x12xf32>
    %779 = math.exp %778 : vector<12x12xf32>
    %780 = vector.shape_cast %779 : vector<12x12xf32> to vector<1x12x12xf32>
    %cst_205 = arith.constant dense<0.000000e+00> : vector<1xf32>
    %781 = vector.multi_reduction <add>, %780, %cst_205 [1, 2] : vector<1x12x12xf32> to vector<1xf32>
    %782 = vector.shape_cast %781 : vector<1xf32> to vector<1x1x1xf32>
    %783 = vector.extract %782[0, 0, 0] : f32 from vector<1x1x1xf32>
    %784 = arith.addf %776, %783 : f32
    %cst_206 = arith.constant -1.000000e-01 : f32
    %785 = vector.broadcast %cst_206 : f32 to vector<12x12xf32>
    %786 = arith.mulf %574, %785 : vector<12x12xf32>
    %787 = math.exp %786 : vector<12x12xf32>
    %788 = vector.shape_cast %787 : vector<12x12xf32> to vector<1x12x12xf32>
    %cst_207 = arith.constant dense<0.000000e+00> : vector<1xf32>
    %789 = vector.multi_reduction <add>, %788, %cst_207 [1, 2] : vector<1x12x12xf32> to vector<1xf32>
    %790 = vector.shape_cast %789 : vector<1xf32> to vector<1x1x1xf32>
    %791 = vector.extract %790[0, 0, 0] : f32 from vector<1x1x1xf32>
    %792 = arith.addf %784, %791 : f32
    %cst_208 = arith.constant -5.000000e-02 : f32
    %793 = vector.broadcast %cst_208 : f32 to vector<12x12xf32>
    %794 = arith.mulf %574, %793 : vector<12x12xf32>
    %795 = math.exp %794 : vector<12x12xf32>
    %796 = vector.shape_cast %795 : vector<12x12xf32> to vector<1x12x12xf32>
    %cst_209 = arith.constant dense<0.000000e+00> : vector<1xf32>
    %797 = vector.multi_reduction <add>, %796, %cst_209 [1, 2] : vector<1x12x12xf32> to vector<1xf32>
    %798 = vector.shape_cast %797 : vector<1xf32> to vector<1x1x1xf32>
    %799 = vector.extract %798[0, 0, 0] : f32 from vector<1x1x1xf32>
    %800 = arith.addf %792, %799 : f32
    %cst_210 = arith.constant -0.0333333351 : f32
    %801 = vector.broadcast %cst_210 : f32 to vector<12x12xf32>
    %802 = arith.mulf %574, %801 : vector<12x12xf32>
    %803 = math.exp %802 : vector<12x12xf32>
    %804 = vector.shape_cast %803 : vector<12x12xf32> to vector<1x12x12xf32>
    %cst_211 = arith.constant dense<0.000000e+00> : vector<1xf32>
    %805 = vector.multi_reduction <add>, %804, %cst_211 [1, 2] : vector<1x12x12xf32> to vector<1xf32>
    %806 = vector.shape_cast %805 : vector<1xf32> to vector<1x1x1xf32>
    %807 = vector.extract %806[0, 0, 0] : f32 from vector<1x1x1xf32>
    %808 = arith.addf %800, %807 : f32
    %cst_212 = arith.constant -2.500000e-02 : f32
    %809 = vector.broadcast %cst_212 : f32 to vector<12x12xf32>
    %810 = arith.mulf %574, %809 : vector<12x12xf32>
    %811 = math.exp %810 : vector<12x12xf32>
    %812 = vector.shape_cast %811 : vector<12x12xf32> to vector<1x12x12xf32>
    %cst_213 = arith.constant dense<0.000000e+00> : vector<1xf32>
    %813 = vector.multi_reduction <add>, %812, %cst_213 [1, 2] : vector<1x12x12xf32> to vector<1xf32>
    %814 = vector.shape_cast %813 : vector<1xf32> to vector<1x1x1xf32>
    %815 = vector.extract %814[0, 0, 0] : f32 from vector<1x1x1xf32>
    %816 = arith.addf %808, %815 : f32
    %cst_214 = arith.constant -2.000000e-02 : f32
    %817 = vector.broadcast %cst_214 : f32 to vector<12x12xf32>
    %818 = arith.mulf %574, %817 : vector<12x12xf32>
    %819 = math.exp %818 : vector<12x12xf32>
    %820 = vector.shape_cast %819 : vector<12x12xf32> to vector<1x12x12xf32>
    %cst_215 = arith.constant dense<0.000000e+00> : vector<1xf32>
    %821 = vector.multi_reduction <add>, %820, %cst_215 [1, 2] : vector<1x12x12xf32> to vector<1xf32>
    %822 = vector.shape_cast %821 : vector<1xf32> to vector<1x1x1xf32>
    %823 = vector.extract %822[0, 0, 0] : f32 from vector<1x1x1xf32>
    %824 = arith.addf %816, %823 : f32
    %cst_216 = arith.constant -0.0166666675 : f32
    %825 = vector.broadcast %cst_216 : f32 to vector<12x12xf32>
    %826 = arith.mulf %574, %825 : vector<12x12xf32>
    %827 = math.exp %826 : vector<12x12xf32>
    %828 = vector.shape_cast %827 : vector<12x12xf32> to vector<1x12x12xf32>
    %cst_217 = arith.constant dense<0.000000e+00> : vector<1xf32>
    %829 = vector.multi_reduction <add>, %828, %cst_217 [1, 2] : vector<1x12x12xf32> to vector<1xf32>
    %830 = vector.shape_cast %829 : vector<1xf32> to vector<1x1x1xf32>
    %831 = vector.extract %830[0, 0, 0] : f32 from vector<1x1x1xf32>
    %832 = arith.addf %824, %831 : f32
    %cst_218 = arith.constant -0.0142857144 : f32
    %833 = vector.broadcast %cst_218 : f32 to vector<12x12xf32>
    %834 = arith.mulf %574, %833 : vector<12x12xf32>
    %835 = math.exp %834 : vector<12x12xf32>
    %836 = vector.shape_cast %835 : vector<12x12xf32> to vector<1x12x12xf32>
    %cst_219 = arith.constant dense<0.000000e+00> : vector<1xf32>
    %837 = vector.multi_reduction <add>, %836, %cst_219 [1, 2] : vector<1x12x12xf32> to vector<1xf32>
    %838 = vector.shape_cast %837 : vector<1xf32> to vector<1x1x1xf32>
    %839 = vector.extract %838[0, 0, 0] : f32 from vector<1x1x1xf32>
    %840 = arith.addf %832, %839 : f32
    %cst_220 = arith.constant -5.000000e-03 : f32
    %841 = vector.broadcast %cst_220 : f32 to vector<12x12xf32>
    %842 = arith.mulf %574, %841 : vector<12x12xf32>
    %843 = math.exp %842 : vector<12x12xf32>
    %844 = vector.shape_cast %843 : vector<12x12xf32> to vector<1x12x12xf32>
    %cst_221 = arith.constant dense<0.000000e+00> : vector<1xf32>
    %845 = vector.multi_reduction <add>, %844, %cst_221 [1, 2] : vector<1x12x12xf32> to vector<1xf32>
    %846 = vector.shape_cast %845 : vector<1xf32> to vector<1x1x1xf32>
    %847 = vector.extract %846[0, 0, 0] : f32 from vector<1x1x1xf32>
    %848 = arith.addf %840, %847 : f32
    %cst_222 = arith.constant -5.000000e-04 : f32
    %849 = vector.broadcast %cst_222 : f32 to vector<12x12xf32>
    %850 = arith.mulf %574, %849 : vector<12x12xf32>
    %851 = math.exp %850 : vector<12x12xf32>
    %852 = vector.shape_cast %851 : vector<12x12xf32> to vector<1x12x12xf32>
    %cst_223 = arith.constant dense<0.000000e+00> : vector<1xf32>
    %853 = vector.multi_reduction <add>, %852, %cst_223 [1, 2] : vector<1x12x12xf32> to vector<1xf32>
    %854 = vector.shape_cast %853 : vector<1xf32> to vector<1x1x1xf32>
    %855 = vector.extract %854[0, 0, 0] : f32 from vector<1x1x1xf32>
    %856 = arith.addf %848, %855 : f32
    %cst_224 = arith.constant -5.000000e-05 : f32
    %857 = vector.broadcast %cst_224 : f32 to vector<12x12xf32>
    %858 = arith.mulf %574, %857 : vector<12x12xf32>
    %859 = math.exp %858 : vector<12x12xf32>
    %860 = vector.shape_cast %859 : vector<12x12xf32> to vector<1x12x12xf32>
    %cst_225 = arith.constant dense<0.000000e+00> : vector<1xf32>
    %861 = vector.multi_reduction <add>, %860, %cst_225 [1, 2] : vector<1x12x12xf32> to vector<1xf32>
    %862 = vector.shape_cast %861 : vector<1xf32> to vector<1x1x1xf32>
    %863 = vector.extract %862[0, 0, 0] : f32 from vector<1x1x1xf32>
    %864 = arith.addf %856, %863 : f32
    %cst_226 = arith.constant -5.000000e-06 : f32
    %865 = vector.broadcast %cst_226 : f32 to vector<12x12xf32>
    %866 = arith.mulf %574, %865 : vector<12x12xf32>
    %867 = math.exp %866 : vector<12x12xf32>
    %868 = vector.shape_cast %867 : vector<12x12xf32> to vector<1x12x12xf32>
    %cst_227 = arith.constant dense<0.000000e+00> : vector<1xf32>
    %869 = vector.multi_reduction <add>, %868, %cst_227 [1, 2] : vector<1x12x12xf32> to vector<1xf32>
    %870 = vector.shape_cast %869 : vector<1xf32> to vector<1x1x1xf32>
    %871 = vector.extract %870[0, 0, 0] : f32 from vector<1x1x1xf32>
    %872 = arith.addf %864, %871 : f32
    %cst_228 = arith.constant -5.000000e-07 : f32
    %873 = vector.broadcast %cst_228 : f32 to vector<12x12xf32>
    %874 = arith.mulf %574, %873 : vector<12x12xf32>
    %875 = math.exp %874 : vector<12x12xf32>
    %876 = vector.shape_cast %875 : vector<12x12xf32> to vector<1x12x12xf32>
    %cst_229 = arith.constant dense<0.000000e+00> : vector<1xf32>
    %877 = vector.multi_reduction <add>, %876, %cst_229 [1, 2] : vector<1x12x12xf32> to vector<1xf32>
    %878 = vector.shape_cast %877 : vector<1xf32> to vector<1x1x1xf32>
    %879 = vector.extract %878[0, 0, 0] : f32 from vector<1x1x1xf32>
    %880 = arith.addf %872, %879 : f32
    %cst_230 = arith.constant 0.0069444445 : f32
    %881 = arith.mulf %880, %cst_230 : f32
    %882 = arith.addf %728, %881 : f32
    %cst_231 = arith.constant -5.000000e+05 : f32
    %883 = vector.broadcast %cst_231 : f32 to vector<12x12xf32>
    %884 = arith.mulf %575, %883 : vector<12x12xf32>
    %885 = math.exp %884 : vector<12x12xf32>
    %886 = vector.shape_cast %885 : vector<12x12xf32> to vector<1x12x12xf32>
    %cst_232 = arith.constant dense<0.000000e+00> : vector<1xf32>
    %887 = vector.multi_reduction <add>, %886, %cst_232 [1, 2] : vector<1x12x12xf32> to vector<1xf32>
    %888 = vector.shape_cast %887 : vector<1xf32> to vector<1x1x1xf32>
    %889 = vector.extract %888[0, 0, 0] : f32 from vector<1x1x1xf32>
    %cst_233 = arith.constant 0.000000e+00 : f32
    %890 = arith.addf %cst_233, %889 : f32
    %cst_234 = arith.constant -5.000000e+04 : f32
    %891 = vector.broadcast %cst_234 : f32 to vector<12x12xf32>
    %892 = arith.mulf %575, %891 : vector<12x12xf32>
    %893 = math.exp %892 : vector<12x12xf32>
    %894 = vector.shape_cast %893 : vector<12x12xf32> to vector<1x12x12xf32>
    %cst_235 = arith.constant dense<0.000000e+00> : vector<1xf32>
    %895 = vector.multi_reduction <add>, %894, %cst_235 [1, 2] : vector<1x12x12xf32> to vector<1xf32>
    %896 = vector.shape_cast %895 : vector<1xf32> to vector<1x1x1xf32>
    %897 = vector.extract %896[0, 0, 0] : f32 from vector<1x1x1xf32>
    %898 = arith.addf %890, %897 : f32
    %cst_236 = arith.constant -5.000000e+03 : f32
    %899 = vector.broadcast %cst_236 : f32 to vector<12x12xf32>
    %900 = arith.mulf %575, %899 : vector<12x12xf32>
    %901 = math.exp %900 : vector<12x12xf32>
    %902 = vector.shape_cast %901 : vector<12x12xf32> to vector<1x12x12xf32>
    %cst_237 = arith.constant dense<0.000000e+00> : vector<1xf32>
    %903 = vector.multi_reduction <add>, %902, %cst_237 [1, 2] : vector<1x12x12xf32> to vector<1xf32>
    %904 = vector.shape_cast %903 : vector<1xf32> to vector<1x1x1xf32>
    %905 = vector.extract %904[0, 0, 0] : f32 from vector<1x1x1xf32>
    %906 = arith.addf %898, %905 : f32
    %cst_238 = arith.constant -5.000000e+02 : f32
    %907 = vector.broadcast %cst_238 : f32 to vector<12x12xf32>
    %908 = arith.mulf %575, %907 : vector<12x12xf32>
    %909 = math.exp %908 : vector<12x12xf32>
    %910 = vector.shape_cast %909 : vector<12x12xf32> to vector<1x12x12xf32>
    %cst_239 = arith.constant dense<0.000000e+00> : vector<1xf32>
    %911 = vector.multi_reduction <add>, %910, %cst_239 [1, 2] : vector<1x12x12xf32> to vector<1xf32>
    %912 = vector.shape_cast %911 : vector<1xf32> to vector<1x1x1xf32>
    %913 = vector.extract %912[0, 0, 0] : f32 from vector<1x1x1xf32>
    %914 = arith.addf %906, %913 : f32
    %cst_240 = arith.constant -5.000000e+01 : f32
    %915 = vector.broadcast %cst_240 : f32 to vector<12x12xf32>
    %916 = arith.mulf %575, %915 : vector<12x12xf32>
    %917 = math.exp %916 : vector<12x12xf32>
    %918 = vector.shape_cast %917 : vector<12x12xf32> to vector<1x12x12xf32>
    %cst_241 = arith.constant dense<0.000000e+00> : vector<1xf32>
    %919 = vector.multi_reduction <add>, %918, %cst_241 [1, 2] : vector<1x12x12xf32> to vector<1xf32>
    %920 = vector.shape_cast %919 : vector<1xf32> to vector<1x1x1xf32>
    %921 = vector.extract %920[0, 0, 0] : f32 from vector<1x1x1xf32>
    %922 = arith.addf %914, %921 : f32
    %cst_242 = arith.constant -5.000000e+00 : f32
    %923 = vector.broadcast %cst_242 : f32 to vector<12x12xf32>
    %924 = arith.mulf %575, %923 : vector<12x12xf32>
    %925 = math.exp %924 : vector<12x12xf32>
    %926 = vector.shape_cast %925 : vector<12x12xf32> to vector<1x12x12xf32>
    %cst_243 = arith.constant dense<0.000000e+00> : vector<1xf32>
    %927 = vector.multi_reduction <add>, %926, %cst_243 [1, 2] : vector<1x12x12xf32> to vector<1xf32>
    %928 = vector.shape_cast %927 : vector<1xf32> to vector<1x1x1xf32>
    %929 = vector.extract %928[0, 0, 0] : f32 from vector<1x1x1xf32>
    %930 = arith.addf %922, %929 : f32
    %cst_244 = arith.constant -5.000000e-01 : f32
    %931 = vector.broadcast %cst_244 : f32 to vector<12x12xf32>
    %932 = arith.mulf %575, %931 : vector<12x12xf32>
    %933 = math.exp %932 : vector<12x12xf32>
    %934 = vector.shape_cast %933 : vector<12x12xf32> to vector<1x12x12xf32>
    %cst_245 = arith.constant dense<0.000000e+00> : vector<1xf32>
    %935 = vector.multi_reduction <add>, %934, %cst_245 [1, 2] : vector<1x12x12xf32> to vector<1xf32>
    %936 = vector.shape_cast %935 : vector<1xf32> to vector<1x1x1xf32>
    %937 = vector.extract %936[0, 0, 0] : f32 from vector<1x1x1xf32>
    %938 = arith.addf %930, %937 : f32
    %cst_246 = arith.constant -1.000000e-01 : f32
    %939 = vector.broadcast %cst_246 : f32 to vector<12x12xf32>
    %940 = arith.mulf %575, %939 : vector<12x12xf32>
    %941 = math.exp %940 : vector<12x12xf32>
    %942 = vector.shape_cast %941 : vector<12x12xf32> to vector<1x12x12xf32>
    %cst_247 = arith.constant dense<0.000000e+00> : vector<1xf32>
    %943 = vector.multi_reduction <add>, %942, %cst_247 [1, 2] : vector<1x12x12xf32> to vector<1xf32>
    %944 = vector.shape_cast %943 : vector<1xf32> to vector<1x1x1xf32>
    %945 = vector.extract %944[0, 0, 0] : f32 from vector<1x1x1xf32>
    %946 = arith.addf %938, %945 : f32
    %cst_248 = arith.constant -5.000000e-02 : f32
    %947 = vector.broadcast %cst_248 : f32 to vector<12x12xf32>
    %948 = arith.mulf %575, %947 : vector<12x12xf32>
    %949 = math.exp %948 : vector<12x12xf32>
    %950 = vector.shape_cast %949 : vector<12x12xf32> to vector<1x12x12xf32>
    %cst_249 = arith.constant dense<0.000000e+00> : vector<1xf32>
    %951 = vector.multi_reduction <add>, %950, %cst_249 [1, 2] : vector<1x12x12xf32> to vector<1xf32>
    %952 = vector.shape_cast %951 : vector<1xf32> to vector<1x1x1xf32>
    %953 = vector.extract %952[0, 0, 0] : f32 from vector<1x1x1xf32>
    %954 = arith.addf %946, %953 : f32
    %cst_250 = arith.constant -0.0333333351 : f32
    %955 = vector.broadcast %cst_250 : f32 to vector<12x12xf32>
    %956 = arith.mulf %575, %955 : vector<12x12xf32>
    %957 = math.exp %956 : vector<12x12xf32>
    %958 = vector.shape_cast %957 : vector<12x12xf32> to vector<1x12x12xf32>
    %cst_251 = arith.constant dense<0.000000e+00> : vector<1xf32>
    %959 = vector.multi_reduction <add>, %958, %cst_251 [1, 2] : vector<1x12x12xf32> to vector<1xf32>
    %960 = vector.shape_cast %959 : vector<1xf32> to vector<1x1x1xf32>
    %961 = vector.extract %960[0, 0, 0] : f32 from vector<1x1x1xf32>
    %962 = arith.addf %954, %961 : f32
    %cst_252 = arith.constant -2.500000e-02 : f32
    %963 = vector.broadcast %cst_252 : f32 to vector<12x12xf32>
    %964 = arith.mulf %575, %963 : vector<12x12xf32>
    %965 = math.exp %964 : vector<12x12xf32>
    %966 = vector.shape_cast %965 : vector<12x12xf32> to vector<1x12x12xf32>
    %cst_253 = arith.constant dense<0.000000e+00> : vector<1xf32>
    %967 = vector.multi_reduction <add>, %966, %cst_253 [1, 2] : vector<1x12x12xf32> to vector<1xf32>
    %968 = vector.shape_cast %967 : vector<1xf32> to vector<1x1x1xf32>
    %969 = vector.extract %968[0, 0, 0] : f32 from vector<1x1x1xf32>
    %970 = arith.addf %962, %969 : f32
    %cst_254 = arith.constant -2.000000e-02 : f32
    %971 = vector.broadcast %cst_254 : f32 to vector<12x12xf32>
    %972 = arith.mulf %575, %971 : vector<12x12xf32>
    %973 = math.exp %972 : vector<12x12xf32>
    %974 = vector.shape_cast %973 : vector<12x12xf32> to vector<1x12x12xf32>
    %cst_255 = arith.constant dense<0.000000e+00> : vector<1xf32>
    %975 = vector.multi_reduction <add>, %974, %cst_255 [1, 2] : vector<1x12x12xf32> to vector<1xf32>
    %976 = vector.shape_cast %975 : vector<1xf32> to vector<1x1x1xf32>
    %977 = vector.extract %976[0, 0, 0] : f32 from vector<1x1x1xf32>
    %978 = arith.addf %970, %977 : f32
    %cst_256 = arith.constant -0.0166666675 : f32
    %979 = vector.broadcast %cst_256 : f32 to vector<12x12xf32>
    %980 = arith.mulf %575, %979 : vector<12x12xf32>
    %981 = math.exp %980 : vector<12x12xf32>
    %982 = vector.shape_cast %981 : vector<12x12xf32> to vector<1x12x12xf32>
    %cst_257 = arith.constant dense<0.000000e+00> : vector<1xf32>
    %983 = vector.multi_reduction <add>, %982, %cst_257 [1, 2] : vector<1x12x12xf32> to vector<1xf32>
    %984 = vector.shape_cast %983 : vector<1xf32> to vector<1x1x1xf32>
    %985 = vector.extract %984[0, 0, 0] : f32 from vector<1x1x1xf32>
    %986 = arith.addf %978, %985 : f32
    %cst_258 = arith.constant -0.0142857144 : f32
    %987 = vector.broadcast %cst_258 : f32 to vector<12x12xf32>
    %988 = arith.mulf %575, %987 : vector<12x12xf32>
    %989 = math.exp %988 : vector<12x12xf32>
    %990 = vector.shape_cast %989 : vector<12x12xf32> to vector<1x12x12xf32>
    %cst_259 = arith.constant dense<0.000000e+00> : vector<1xf32>
    %991 = vector.multi_reduction <add>, %990, %cst_259 [1, 2] : vector<1x12x12xf32> to vector<1xf32>
    %992 = vector.shape_cast %991 : vector<1xf32> to vector<1x1x1xf32>
    %993 = vector.extract %992[0, 0, 0] : f32 from vector<1x1x1xf32>
    %994 = arith.addf %986, %993 : f32
    %cst_260 = arith.constant -5.000000e-03 : f32
    %995 = vector.broadcast %cst_260 : f32 to vector<12x12xf32>
    %996 = arith.mulf %575, %995 : vector<12x12xf32>
    %997 = math.exp %996 : vector<12x12xf32>
    %998 = vector.shape_cast %997 : vector<12x12xf32> to vector<1x12x12xf32>
    %cst_261 = arith.constant dense<0.000000e+00> : vector<1xf32>
    %999 = vector.multi_reduction <add>, %998, %cst_261 [1, 2] : vector<1x12x12xf32> to vector<1xf32>
    %1000 = vector.shape_cast %999 : vector<1xf32> to vector<1x1x1xf32>
    %1001 = vector.extract %1000[0, 0, 0] : f32 from vector<1x1x1xf32>
    %1002 = arith.addf %994, %1001 : f32
    %cst_262 = arith.constant -5.000000e-04 : f32
    %1003 = vector.broadcast %cst_262 : f32 to vector<12x12xf32>
    %1004 = arith.mulf %575, %1003 : vector<12x12xf32>
    %1005 = math.exp %1004 : vector<12x12xf32>
    %1006 = vector.shape_cast %1005 : vector<12x12xf32> to vector<1x12x12xf32>
    %cst_263 = arith.constant dense<0.000000e+00> : vector<1xf32>
    %1007 = vector.multi_reduction <add>, %1006, %cst_263 [1, 2] : vector<1x12x12xf32> to vector<1xf32>
    %1008 = vector.shape_cast %1007 : vector<1xf32> to vector<1x1x1xf32>
    %1009 = vector.extract %1008[0, 0, 0] : f32 from vector<1x1x1xf32>
    %1010 = arith.addf %1002, %1009 : f32
    %cst_264 = arith.constant -5.000000e-05 : f32
    %1011 = vector.broadcast %cst_264 : f32 to vector<12x12xf32>
    %1012 = arith.mulf %575, %1011 : vector<12x12xf32>
    %1013 = math.exp %1012 : vector<12x12xf32>
    %1014 = vector.shape_cast %1013 : vector<12x12xf32> to vector<1x12x12xf32>
    %cst_265 = arith.constant dense<0.000000e+00> : vector<1xf32>
    %1015 = vector.multi_reduction <add>, %1014, %cst_265 [1, 2] : vector<1x12x12xf32> to vector<1xf32>
    %1016 = vector.shape_cast %1015 : vector<1xf32> to vector<1x1x1xf32>
    %1017 = vector.extract %1016[0, 0, 0] : f32 from vector<1x1x1xf32>
    %1018 = arith.addf %1010, %1017 : f32
    %cst_266 = arith.constant -5.000000e-06 : f32
    %1019 = vector.broadcast %cst_266 : f32 to vector<12x12xf32>
    %1020 = arith.mulf %575, %1019 : vector<12x12xf32>
    %1021 = math.exp %1020 : vector<12x12xf32>
    %1022 = vector.shape_cast %1021 : vector<12x12xf32> to vector<1x12x12xf32>
    %cst_267 = arith.constant dense<0.000000e+00> : vector<1xf32>
    %1023 = vector.multi_reduction <add>, %1022, %cst_267 [1, 2] : vector<1x12x12xf32> to vector<1xf32>
    %1024 = vector.shape_cast %1023 : vector<1xf32> to vector<1x1x1xf32>
    %1025 = vector.extract %1024[0, 0, 0] : f32 from vector<1x1x1xf32>
    %1026 = arith.addf %1018, %1025 : f32
    %cst_268 = arith.constant -5.000000e-07 : f32
    %1027 = vector.broadcast %cst_268 : f32 to vector<12x12xf32>
    %1028 = arith.mulf %575, %1027 : vector<12x12xf32>
    %1029 = math.exp %1028 : vector<12x12xf32>
    %1030 = vector.shape_cast %1029 : vector<12x12xf32> to vector<1x12x12xf32>
    %cst_269 = arith.constant dense<0.000000e+00> : vector<1xf32>
    %1031 = vector.multi_reduction <add>, %1030, %cst_269 [1, 2] : vector<1x12x12xf32> to vector<1xf32>
    %1032 = vector.shape_cast %1031 : vector<1xf32> to vector<1x1x1xf32>
    %1033 = vector.extract %1032[0, 0, 0] : f32 from vector<1x1x1xf32>
    %1034 = arith.addf %1026, %1033 : f32
    %cst_270 = arith.constant 0.0069444445 : f32
    %1035 = arith.mulf %1034, %cst_270 : f32
    %cst_271 = arith.constant 2.000000e+00 : f32
    %1036 = arith.mulf %cst_271, %1035 : f32
    %1037 = arith.subf %882, %1036 : f32
    %c0_272 = arith.constant 0 : index
    %1038 = memref.load %arg2[%c0_272] : memref<2xf32, #tpu.memory_space<smem>>
    memref.store %551, %arg2[%c0_272] : memref<2xf32, #tpu.memory_space<smem>>
    %c1 = arith.constant 1 : index
    %1039 = memref.load %arg2[%c1] : memref<2xf32, #tpu.memory_space<smem>>
    memref.store %1037, %arg2[%c1] : memref<2xf32, #tpu.memory_space<smem>>
    return
  }
}

</mosaic_0001>

<bundles_post_ra>
// kernel: tpu_custom_call.1
= control target key start
LH: loop header
LB: loop body
LE: loop exit
PB: predicated region body
PF: predicated region fallthrough
CT: control target
= control target key end

     0   :  { %s4457_s0 = inlined_call_operand.hbm [shape: f32[8,32], index: 0, kind: input, shape index: {}]   ;;  %s4458_s1 = inlined_call_operand.hbm [shape: f32[8,32], index: 1, kind: input, shape index: {}]   ;;  %s4459_s2 = inlined_call_operand.hbm [shape: f32[2], index: 2, kind: output, shape index: {}]  }
   0x1   :  { %4520 = sst [smem:[#allocation71_spill]] %s4459_s2 }
   0x2   :  { %7 = vsyncpa [#allocation3], 0 }
   0x3   :  { %8 = vsyncpa [#allocation6], 0 }
   0x4   :  { %9 = vsyncpa [#allocation4], 0  ;;  %s15_s11 = sshll.u32 %s4457_s0, 4  ;;  %s3027_s12 = smov [#allocation2]   ;;  %s16_s11 = int_to_ptr.hbm [resolvable:$true] %s15_s11 }
   0x5   :  { %s17_s13 = sshll.u32 %s3027_s12, 4  ;;  %s26_s16 = sshll.u32 %s4458_s1, 4  ;;  %s18_s13 = int_to_ptr.vmem [resolvable:$true] %s17_s13  ;;  %s27_s16 = int_to_ptr.hbm [resolvable:$true] %s26_s16 }
   0x6   :  { %20 = dma.hbm_to_vmem [thread:$0]  %s16_s11, 128, %s18_s13, [#allocation3]  }
   0x7   :  { %s3028_s17 = smov [#allocation5]  }
   0x8   :  { %s28_s18 = sshll.u32 %s3028_s17, 4  ;;  %s29_s18 = int_to_ptr.vmem [resolvable:$true] %s28_s18 }
   0x9   :  { %31 = dma.hbm_to_vmem [thread:$0]  %s27_s16, 128, %s29_s18, [#allocation6]  }
   0xa   :  { %3021 = dma.done.wait [#allocation3], 128  }
   0xb   :  { %3022 = vsyncadd [#allocation3], 4294967168 }
   0xc   :  { %3023 = dma.done.wait [#allocation6], 128  }
   0xd   :  { %3024 = vsyncadd [#allocation6], 4294967168  ;;  %vm42_vm0 = vcmask 261120   ;;  %v40_v0 = vld [vmem:[#allocation2] sm:$0xff]  ;;  %v41_v1 = vld [vmem:[#allocation5] sm:$0xff]  ;;  %v66_v2 = vlaneseq  ;;  %vm72_vm2 = vcmask 64512  }
   0xe   :  { %2515 = vmatpush.xpose.msk.msra.mxu0 %vm42_vm0, %v40_v0  ;;  %2517 = vmatpush.xpose.msk.msra.mxu1 %vm42_vm0, %v41_v1  ;;  %s3029_s0 = smov 122   ;;  %s3030_s1 = smov 126   ;;  %vm135_vm3 = vcmask 1041408   ;;  %vm137_vm4 = vcmask 1043456   ;;  %vm190_vm5 = vcmask 15360   ;;  %vm139_vm6 = vcmask 1045504  }
   0xf   :  { %v3056_v3 = vshrl.u32 %v66_v2, 7  ;;  %v3058_v4 = vand.u32 127, %v66_v2  ;;  %s3031_s19 = smov 124   ;;  %vm224_vm7 = vcmask 130048   ;;  %vm1199_vm9 = vcmask 195584   ;;  %s3032_s20 = smov 120  }
  0x10   :  { %vm1238_vm11 = vcmask 97280   ;;  %vm1240_vm12 = vcmask 93184   ;;  %s3033_s21 = smov 116  }
  0x11   :  { %2516 = vmatmul.msk.f32.vlgmr.msra.gmra.mxu0 %vm42_vm0, %v40_v0  ;;  %2518 = vmatmul.msk.f32.vlgmr.msra.gmra.mxu1 %vm42_vm0, %v41_v1  ;;  %vm3062_vm1 = vcmp.eq.s32.totalorder %v3056_v3, %v3058_v4 }
  0x8e   :  { %v63_v6 = vpop.f32.mrf.mxu0  ;;  %v107_v9 = vpop.f32.mrf.mxu1 }
  0x8f   :  { %v71_v7 = vsel %vm3062_vm1, %v63_v6, 0.0  ;;  %v110_v10 = vsel %vm3062_vm1, %v107_v9, 0.0  ;;  %v83_v23 = vmul.f32 2.0, %v63_v6  ;;  %v121_v32 = vmul.f32 2.0, %v107_v9 }
  0x90   :  { %v73_v8 = vsel %vm72_vm2, %v71_v7, 0.0  ;;  %v111_v11 = vsel %vm72_vm2, %v110_v10, 0.0 }
  0x91   :  { %74 = vadd.xlane.f32.xlu0 %v73_v8  ;;  %v76_v12 = vrot.slane %v73_v8, 4  ;;  %v114_v15 = vrot.slane %v111_v11, 4 }
  0x93   :  { %v77_v13 = vadd.f32 %v76_v12, %v73_v8  ;;  %v115_v16 = vadd.f32 %v114_v15, %v111_v11 }
  0x95   :  { %v78_v14 = vrot.slane %v77_v13, 2  ;;  %v116_v18 = vrot.slane %v115_v16, 2 }
  0x97   :  { %v79_v17 = vadd.f32 %v78_v14, %v77_v13  ;;  %v117_v21 = vadd.f32 %v116_v18, %v115_v16 }
  0x99   :  { %112 = vadd.xlane.f32.xlu0 %v111_v11  ;;  %v80_v19 = vrot.slane %v79_v17, 1  ;;  %v118_v26 = vrot.slane %v117_v21, 1 }
  0x9b   :  { %v81_v20 = vadd.f32 %v80_v19, %v79_v17  ;;  %v119_v29 = vadd.f32 %v118_v26, %v117_v21  ;;  %v3113_v17 = vadd.s32 8, %v3056_v3 }
  0x9d   :  { %vm221_vm8 = vcmp.eq.s32.totalorder %v3113_v17, %v3058_v4 }
 0x104   :  { %v75_v22 = vpop.xlane.xlu0 %74 }
 0x105   :  { %v82_v24 = vadd.f32 %v81_v20, %v75_v22 }
 0x107   :  { %v84_v25 = vsub.f32 %v82_v24, %v83_v23 }
 0x109   :  { %v85_v27 = vmax.f32 %v84_v25, 0.0 }
 0x10b   :  { %v86_v28 = vsel %vm3062_vm1, 0.0, %v85_v27 }
 0x10c   :  { %v113_v30 = vpop.xlane.xlu0 %112  ;;  %132 = vrot.lane.b32.xlu2 %v86_v28, %s3029_s0  ;;  %126 = vrot.lane.b32.xlu1 %v86_v28, %s3030_s1  ;;  %v145_v31 = vrot.slane %v86_v28, 4  ;;  %v141_v38 = vrot.slane %v86_v28, 6  ;;  %v152_v39 = vrot.slane %v86_v28, 2 }
 0x10d   :  { %v120_v33 = vadd.f32 %v119_v29, %v113_v30 }
 0x10e   :  { %146 = vrot.lane.b32.xlu0 %v145_v31, %s3031_s19 }
 0x10f   :  { %v122_v34 = vsub.f32 %v120_v33, %v121_v32 }
 0x111   :  { %v123_v35 = vmax.f32 %v122_v34, 0.0 }
 0x113   :  { %v124_v36 = vsel %vm3062_vm1, 0.0, %v123_v35 }
 0x114   :  { %163 = vrot.lane.b32.xlu2 %v124_v36, %s3031_s19  ;;  %129 = vrot.lane.b32.xlu1 %v86_v28, %s3031_s19  ;;  %v176_v37 = vrot.slane %v124_v36, 4  ;;  %v172_v40 = vrot.slane %v124_v36, 6  ;;  %v183_v41 = vrot.slane %v124_v36, 2 }
 0x116   :  { %177 = vrot.lane.b32.xlu0 %v176_v37, %s3031_s19 }
 0x11c   :  { %160 = vrot.lane.b32.xlu1 %v124_v36, %s3030_s1  ;;  %142 = vrot.lane.b32.xlu2 %v141_v38, %s3030_s1 }
 0x124   :  { %166 = vrot.lane.b32.xlu1 %v124_v36, %s3029_s0  ;;  %153 = vrot.lane.b32.xlu2 %v152_v39, %s3031_s19 }
 0x12c   :  { %149 = vrot.lane.b32.xlu1 %v145_v31, %s3030_s1  ;;  %173 = vrot.lane.b32.xlu2 %v172_v40, %s3030_s1  ;;  %v3145_v40 = vadd.s32 16, %v3056_v3 }
 0x12e   :  { %vm1195_vm10 = vcmp.eq.s32.totalorder %v3145_v40, %v3058_v4 }
 0x134   :  { %180 = vrot.lane.b32.xlu1 %v176_v37, %s3030_s1  ;;  %184 = vrot.lane.b32.xlu2 %v183_v41, %s3031_s19 }
 0x166   :  { %v133_v42 = vpop.permute.xlu2 %132 }
 0x16e   :  { %v164_v43 = vpop.permute.xlu2 %163 }
 0x176   :  { %v143_v46 = vpop.permute.xlu2 %142 }
 0x177   :  { %v156_v58 = vsel %vm135_vm3, %v86_v28, %v143_v46 }
 0x17e   :  { %v127_v44 = vpop.permute.xlu1 %126  ;;  %v154_v48 = vpop.permute.xlu2 %153 }
 0x17f   :  { %v136_v52 = vsel %vm135_vm3, %v86_v28, %v127_v44 }
 0x180   :  { %v147_v55 = vpop.permute.xlu0 %146 }
 0x181   :  { %v157_v59 = vsel %vm137_vm4, %v156_v58, %v147_v55 }
 0x186   :  { %v130_v45 = vpop.permute.xlu1 %129  ;;  %v174_v56 = vpop.permute.xlu2 %173 }
 0x187   :  { %v138_v54 = vsel %vm137_vm4, %v136_v52, %v130_v45  ;;  %v187_v62 = vsel %vm135_vm3, %v124_v36, %v174_v56 }
 0x188   :  { %v140_v57 = vsel %vm139_vm6, %v138_v54, %v133_v42  ;;  %v178_v63 = vpop.permute.xlu0 %177 }
 0x189   :  { %v188_v1 = vsel %vm137_vm4, %v187_v62, %v178_v63 }
 0x18e   :  { %v161_v47 = vpop.permute.xlu1 %160  ;;  %v185_v0 = vpop.permute.xlu2 %184 }
 0x18f   :  { %v169_v49 = vsel %vm135_vm3, %v124_v36, %v161_v47  ;;  %v1150_v7 = vrot.slane %v185_v0, 4 }
 0x190   :  { %v170_v51 = vsel %vm137_vm4, %v169_v49, %v164_v43 }
 0x196   :  { %v167_v50 = vpop.permute.xlu1 %166 }
 0x197   :  { %v171_v53 = vsel %vm139_vm6, %v170_v51, %v167_v50 }
 0x198   :  { %2519 = vmatpush.xpose.msk.msra.mxu2 %vm190_vm5, %v171_v53 }
 0x19c   :  { %2520 = vmatpush.xpose.msk.msra.mxu2 %vm190_vm5, %v140_v57 }
 0x19e   :  { %v150_v60 = vpop.permute.xlu1 %149 }
 0x19f   :  { %2521 = vmatmul.msk.f32.vlgmr.msra.gmra.mxu2 %vm190_vm5, %v140_v57  ;;  %v158_v61 = vsel %vm139_vm6, %v157_v59, %v150_v60 }
 0x1a0   :  { %1156 = vrot.lane.b32.xlu1 %v158_v61, %s3030_s1 }
 0x1a6   :  { %v181_v2 = vpop.permute.xlu1 %180 }
 0x1a7   :  { %v189_v6 = vsel %vm139_vm6, %v188_v1, %v181_v2  ;;  %2522 = vmatmul.msk.f32.gmra.mxu2 %vm190_vm5, %v171_v53 }
 0x1a8   :  { %v1149_v8 = vrot.slane %v189_v6, 4 }
 0x1aa   :  { %v1153_v9 = vsel %vm137_vm4, %v154_v48, %v1149_v8  ;;  %v1151_v10 = vsel %vm137_vm4, %v1149_v8, %v1150_v7 }
 0x1ab   :  { %1158 = vrot.lane.b32.xlu2 %v1153_v9, %s3030_s1  ;;  %1160 = vrot.lane.b32.xlu1 %v1151_v10, %s3030_s1 }
 0x205   :  { %v1159_v13 = vpop.permute.xlu2 %1158 }
 0x212   :  { %v1157_v11 = vpop.permute.xlu1 %1156 }
 0x21d   :  { %v1161_v12 = vpop.permute.xlu1 %1160 }
 0x21e   :  { %2523 = vmatpush.xpose.msk.msrb.mxu0 %vm190_vm5, %v1161_v12  ;;  %2529 = vmatpush.xpose.msk.msrb.mxu1 %vm190_vm5, %v1161_v12 }
 0x21f   :  { %2530 = vmatpush.xpose.msk.msra.mxu3 %vm190_vm5, %v1161_v12 }
 0x222   :  { %v214_v14 = vpop.f32.mrf.mxu2  ;;  %2524 = vmatpush.xpose.msk.msrb.mxu0 %vm190_vm5, %v1159_v13  ;;  %2531 = vmatpush.xpose.msk.msrb.mxu1 %vm190_vm5, %v1159_v13 }
 0x223   :  { %2532 = vmatpush.xpose.msk.msra.mxu3 %vm190_vm5, %v1159_v13  ;;  %v222_v15 = vsel %vm3062_vm1, %v214_v14, 0.0  ;;  %v240_v29 = vmul.f32 2.0, %v214_v14 }
 0x224   :  { %v225_v16 = vsel %vm224_vm7, %v222_v15, 0.0 }
 0x225   :  { %226 = vadd.xlane.f32.xlu0 %v225_v16 }
 0x226   :  { %2525 = vmatpush.xpose.msk.msrb.mxu0 %vm190_vm5, %v1157_v11  ;;  %2533 = vmatpush.xpose.msk.msrb.mxu1 %vm190_vm5, %v1157_v11 }
 0x227   :  { %2534 = vmatpush.xpose.msk.msra.mxu3 %vm190_vm5, %v1157_v11 }
 0x229   :  { %2526 = vmatmul.msk.f32.vlgmr.msrb.gmra.mxu0 %vm190_vm5, %v1157_v11  ;;  %2527 = vmatmul.msk.f32.vlgmr.msrb.gmra.mxu1 %vm190_vm5, %v1159_v13 }
 0x22a   :  { %2528 = vmatmul.msk.f32.vlgmr.msra.gmra.mxu3 %vm190_vm5, %v1161_v12  ;;  %v217_v18 = vpop.f32.mrf.mxu2 }
 0x22b   :  { %v223_v19 = vsel %vm221_vm8, %v217_v18, 0.0  ;;  %v3127_v33 = vmul.f32 2.0, %v217_v18 }
 0x22c   :  { %v228_v20 = vsel %vm224_vm7, %v223_v19, 0.0 }
 0x22d   :  { %v231_v21 = vadd.f32 %v228_v20, %v225_v16  ;;  %229 = vadd.xlane.f32.xlu1 %v228_v20 }
 0x22f   :  { %v232_v22 = vrot.slane %v231_v21, 4 }
 0x231   :  { %v233_v23 = vadd.f32 %v232_v22, %v231_v21 }
 0x233   :  { %v234_v24 = vrot.slane %v233_v23, 2 }
 0x235   :  { %v235_v25 = vadd.f32 %v234_v24, %v233_v23 }
 0x237   :  { %v236_v26 = vrot.slane %v235_v25, 1 }
 0x239   :  { %v237_v27 = vadd.f32 %v236_v26, %v235_v25 }
 0x298   :  { %v227_v28 = vpop.xlane.xlu0 %226 }
 0x299   :  { %v238_v30 = vadd.f32 %v237_v27, %v227_v28 }
 0x29b   :  { %v242_v31 = vsub.f32 %v238_v30, %v240_v29 }
 0x29d   :  { %v244_v44 = vmax.f32 %v242_v31, 0.0 }
 0x29f   :  { %v3159_v3 = vsel %vm3062_vm1, 0.0, %v244_v44 }
 0x2a0   :  { %v230_v32 = vpop.xlane.xlu1 %229  ;;  %v262_v49 = vmul.f32 -50000.0, %v3159_v3  ;;  %v248_v50 = vmul.f32 -500000.0, %v3159_v3  ;;  %v290_v51 = vmul.f32 -500.0, %v3159_v3  ;;  %v276_v55 = vmul.f32 -5000.0, %v3159_v3 }
 0x2a1   :  { %v3129_v34 = vadd.f32 %v237_v27, %v230_v32  ;;  %v304_v56 = vmul.f32 -50.0, %v3159_v3  ;;  %v332_v57 = vmul.f32 -0.5, %v3159_v3  ;;  %v318_v63 = vmul.f32 -5.0, %v3159_v3 }
 0x2a2   :  { %v263_v52 = vmul.f32 1.442695, %v262_v49  ;;  %v249_v53 = vmul.f32 1.442695, %v248_v50  ;;  %v291_v54 = vmul.f32 1.442695, %v290_v51 }
 0x2a3   :  { %v243_v35 = vsub.f32 %v3129_v34, %v3127_v33  ;;  %v277_v58 = vmul.f32 1.442695, %v276_v55  ;;  %v305_v59 = vmul.f32 1.442695, %v304_v56  ;;  %v333_v62 = vmul.f32 1.442695, %v332_v57 }
 0x2a4   :  { %2771 = vpow2.f32 %v263_v52  ;;  %v360_v1 = vmul.f32 -0.05, %v3159_v3  ;;  %v346_v2 = vmul.f32 -0.1, %v3159_v3  ;;  %v319_v6 = vmul.f32 1.442695, %v318_v63 }
 0x2a5   :  { %2773 = vpow2.f32 %v249_v53  ;;  %v374_v11 = vmul.f32 -0.033333335, %v3159_v3  ;;  %v458_v13 = vmul.f32 -0.0005, %v3159_v3  ;;  %v388_v14 = vmul.f32 -0.025, %v3159_v3 }
 0x2a6   :  { %v3133_v36 = vpop.f32.mrf.mxu0  ;;  %v3135_v37 = vpop.f32.mrf.mxu1  ;;  %2775 = vpow2.f32 %v291_v54  ;;  %v361_v7 = vmul.f32 1.442695, %v360_v1  ;;  %v347_v10 = vmul.f32 1.442695, %v346_v2  ;;  %v472_v21 = vmul.f32 -5e-05, %v3159_v3 }
 0x2a7   :  { %v1196_v38 = vsel %vm3062_vm1, %v3133_v36, 0.0  ;;  %v1197_v39 = vsel %vm221_vm8, %v3135_v37, 0.0  ;;  %2777 = vpow2.f32 %v277_v58  ;;  %v375_v15 = vmul.f32 1.442695, %v374_v11 }
 0x2a8   :  { %v1203_v41 = vsel %vm1199_vm9, %v1197_v39, 0.0  ;;  %v1200_v42 = vsel %vm1199_vm9, %v1196_v38, 0.0  ;;  %2779 = vpow2.f32 %v305_v59  ;;  %v459_v16 = vmul.f32 1.442695, %v458_v13 }
 0x2a9   :  { %1204 = vadd.xlane.f32.xlu2 %v1203_v41  ;;  %1201 = vadd.xlane.f32.xlu1 %v1200_v42  ;;  %v1209_v43 = vadd.f32 %v1203_v41, %v1200_v42  ;;  %2781 = vpow2.f32 %v333_v62  ;;  %v389_v20 = vmul.f32 1.442695, %v388_v14  ;;  %v402_v23 = vmul.f32 -0.02, %v3159_v3 }
 0x2aa   :  { %v3170_v60 = vpop.eup %2771  ;;  %2783 = vpow2.f32 %v319_v6  ;;  %v473_v24 = vmul.f32 1.442695, %v472_v21  ;;  %v486_v28 = vmul.f32 -5e-06, %v3159_v3  ;;  %v416_v30 = vmul.f32 -0.016666668, %v3159_v3 }
 0x2ab   :  { %v3172_v61 = vpop.eup %2773  ;;  %2785 = vpow2.f32 %v361_v7  ;;  %v403_v27 = vmul.f32 1.442695, %v402_v23  ;;  %v430_v41 = vmul.f32 -0.014285714, %v3159_v3  ;;  %v500_v50 = vmul.f32 -5e-07, %v3159_v3 }
 0x2ac   :  { %v3179_v0 = vpop.eup %2775  ;;  %2787 = vpow2.f32 %v347_v10  ;;  %v487_v31 = vmul.f32 1.442695, %v486_v28  ;;  %v417_v38 = vmul.f32 1.442695, %v416_v30  ;;  %v251_v58 = vsel %vm72_vm2, %v3172_v61, 0.0 }
 0x2ad   :  { %v3151_v45 = vpop.f32.mrf.mxu3  ;;  %v3185_v8 = vpop.eup %2777  ;;  %2789 = vpow2.f32 %v375_v15  ;;  %v501_v51 = vmul.f32 1.442695, %v500_v50  ;;  %v293_v54 = vsel %vm72_vm2, %v3179_v0, 0.0  ;;  %v3260_v7 = vmul.f32 2.0, %v3133_v36 }
 0x2ae   :  { %v1198_v46 = vsel %vm1195_vm10, %v3151_v45, 0.0  ;;  %v3187_v9 = vpop.eup %2779  ;;  %2791 = vpow2.f32 %v459_v16  ;;  %v265_v21 = vsel %vm72_vm2, %v3170_v60, 0.0 }
 0x2af   :  { %v1206_v47 = vsel %vm1199_vm9, %v1198_v46, 0.0  ;;  %v3194_v12 = vpop.eup %2781  ;;  %2793 = vpow2.f32 %v389_v20  ;;  %v444_v46 = vmul.f32 -0.005, %v3159_v3 }
 0x2b0   :  { %1207 = vadd.xlane.f32.xlu0 %v1206_v47  ;;  %v3162_v48 = vadd.f32 %v1209_v43, %v1206_v47  ;;  %v3200_v18 = vpop.eup %2783  ;;  %2795 = vpow2.f32 %v473_v24  ;;  %v431_v43 = vmul.f32 1.442695, %v430_v41  ;;  %v335_v57 = vsel %vm72_vm2, %v3194_v12, 0.0 }
 0x2b1   :  { %v3202_v19 = vpop.eup %2785  ;;  %2797 = vpow2.f32 %v403_v27  ;;  %v445_v47 = vmul.f32 1.442695, %v444_v46  ;;  %v321_v13 = vsel %vm72_vm2, %v3200_v18, 0.0  ;;  %v307_v24 = vsel %vm72_vm2, %v3187_v9, 0.0 }
 0x2b2   :  { %v3209_v22 = vpop.eup %2787  ;;  %2799 = vpow2.f32 %v487_v31  ;;  %v1211_v55 = vrot.slane %v3162_v48, 4  ;;  %v363_v20 = vsel %vm72_vm2, %v3202_v19, 0.0 }
 0x2b3   :  { %v2790_v25 = vpop.eup %2789  ;;  %2801 = vpow2.f32 %v417_v38  ;;  %v349_v34 = vsel %vm72_vm2, %v3209_v22, 0.0 }
 0x2b4   :  { %v3214_v26 = vpop.eup %2791  ;;  %2803 = vpow2.f32 %v431_v43  ;;  %v1212_v56 = vadd.f32 %v1211_v55, %v3162_v48  ;;  %v377_v62 = vsel %vm72_vm2, %v2790_v25, 0.0 }
 0x2b5   :  { %v3220_v29 = vpop.eup %2793  ;;  %2805 = vpow2.f32 %v445_v47  ;;  %v461_v36 = vsel %vm72_vm2, %v3214_v26, 0.0 }
 0x2b6   :  { %v3225_v32 = vpop.eup %2795  ;;  %2807 = vpow2.f32 %v501_v51  ;;  %v1213_v3 = vrot.slane %v1212_v56, 2  ;;  %v391_v28 = vsel %vm72_vm2, %v3220_v29, 0.0 }
 0x2b7   :  { %v3229_v39 = vpop.eup %2797 }
 0x2b8   :  { %v3234_v42 = vpop.eup %2799  ;;  %v1214_v59 = vadd.f32 %v1213_v3, %v1212_v56  ;;  %v405_v23 = vsel %vm72_vm2, %v3229_v39, 0.0 }
 0x2b9   :  { %v2802_v44 = vpop.eup %2801 }
 0x2ba   :  { %v3240_v49 = vpop.eup %2803  ;;  %v1215_v63 = vrot.slane %v1214_v59, 1  ;;  %v419_v48 = vsel %vm72_vm2, %v2802_v44, 0.0 }
 0x2bb   :  { %v2806_v52 = vpop.eup %2805 }
 0x2bc   :  { %v2808_v53 = vpop.eup %2807  ;;  %v1216_v1 = vadd.f32 %v1215_v63, %v1214_v59 }
 0x2c1   :  { %875 = vrot.lane.b32.xlu2 %v3170_v60, %s3032_s20 }
 0x2c2   :  { %860 = vrot.lane.b32.xlu1 %v3172_v61, %s3032_s20  ;;  %v3263_v61 = vmul.f32 2.0, %v3135_v37  ;;  %v3278_v37 = vmul.f32 2.0, %v3151_v45  ;;  %v245_v45 = vmax.f32 %v243_v35, 0.0 }
 0x2c4   :  { %905 = vrot.lane.b32.xlu0 %v3179_v0, %s3032_s20  ;;  %v279_v0 = vsel %vm72_vm2, %v3185_v8, 0.0 }
 0x2c9   :  { %890 = vrot.lane.b32.xlu2 %v3185_v8, %s3032_s20 }
 0x2ca   :  { %920 = vrot.lane.b32.xlu1 %v3187_v9, %s3032_s20 }
 0x2cc   :  { %950 = vrot.lane.b32.xlu0 %v3194_v12, %s3032_s20 }
 0x2d1   :  { %935 = vrot.lane.b32.xlu2 %v3200_v18, %s3032_s20  ;;  %v503_v18 = vsel %vm72_vm2, %v2808_v53, 0.0 }
 0x2d2   :  { %980 = vrot.lane.b32.xlu1 %v3202_v19, %s3032_s20  ;;  %v3297_v19 = vsel %vm221_vm8, 0.0, %v245_v45 }
 0x2d3   :  { %v533_v60 = vmul.f32 -50000.0, %v3297_v19  ;;  %v569_v35 = vmul.f32 -500.0, %v3297_v19  ;;  %v659_v30 = vmul.f32 -0.05, %v3297_v19  ;;  %v587_v47 = vmul.f32 -50.0, %v3297_v19 }
 0x2d4   :  { %965 = vrot.lane.b32.xlu0 %v3209_v22, %s3032_s20  ;;  %v677_v55 = vmul.f32 -0.033333335, %v3297_v19  ;;  %v695_v63 = vmul.f32 -0.025, %v3297_v19 }
 0x2d5   :  { %v534_v33 = vmul.f32 1.442695, %v533_v60  ;;  %v570_v27 = vmul.f32 1.442695, %v569_v35  ;;  %v660_v31 = vmul.f32 1.442695, %v659_v30 }
 0x2d7   :  { %2809 = vpow2.f32 %v534_v33  ;;  %v641_v33 = vmul.f32 -0.1, %v3297_v19 }
 0x2d8   :  { %2811 = vpow2.f32 %v570_v27 }
 0x2d9   :  { %995 = vrot.lane.b32.xlu2 %v2790_v25, %s3032_s20  ;;  %v447_v25 = vsel %vm72_vm2, %v2806_v52, 0.0  ;;  %2813 = vpow2.f32 %v660_v31 }
 0x2da   :  { %1085 = vrot.lane.b32.xlu1 %v3214_v26, %s3032_s20  ;;  %v489_v26 = vsel %vm72_vm2, %v3234_v42, 0.0 }
 0x2dc   :  { %1010 = vrot.lane.b32.xlu0 %v3220_v29, %s3032_s20  ;;  %v731_v29 = vmul.f32 -0.016666668, %v3297_v19 }
 0x2dd   :  { %v2810_v9 = vpop.eup %2809 }
 0x2de   :  { %v2812_v41 = vpop.eup %2811 }
 0x2df   :  { %v2814_v50 = vpop.eup %2813 }
 0x2e1   :  { %1100 = vrot.lane.b32.xlu2 %v3225_v32, %s3032_s20 }
 0x2e4   :  { %1025 = vrot.lane.b32.xlu0 %v3229_v39, %s3032_s20  ;;  %v551_v39 = vmul.f32 -5000.0, %v3297_v19 }
 0x2e6   :  { %v552_v43 = vmul.f32 1.442695, %v551_v39 }
 0x2e8   :  { %2815 = vpow2.f32 %v552_v43 }
 0x2e9   :  { %1115 = vrot.lane.b32.xlu2 %v3234_v42, %s3032_s20  ;;  %v433_v42 = vsel %vm72_vm2, %v3240_v49, 0.0 }
 0x2ec   :  { %1040 = vrot.lane.b32.xlu0 %v2802_v44, %s3032_s20  ;;  %v732_v44 = vmul.f32 1.442695, %v731_v29 }
 0x2ee   :  { %2817 = vpow2.f32 %v732_v44 }
 0x2f4   :  { %1055 = vrot.lane.b32.xlu0 %v3240_v49, %s3032_s20  ;;  %v588_v49 = vmul.f32 1.442695, %v587_v47 }
 0x2f6   :  { %2819 = vpow2.f32 %v588_v49 }
 0x2fc   :  { %1070 = vrot.lane.b32.xlu0 %v2806_v52, %s3032_s20  ;;  %v475_v52 = vsel %vm72_vm2, %v3225_v32, 0.0 }
 0x304   :  { %1130 = vrot.lane.b32.xlu0 %v2808_v53, %s3032_s20  ;;  %294 = vadd.xlane.f32.xlu1 %v293_v54  ;;  %v2816_v53 = vpop.eup %2815  ;;  %v515_v54 = vmul.f32 -500000.0, %v3297_v19 }
 0x305   :  { %v2818_v56 = vpop.eup %2817 }
 0x306   :  { %v516_v3 = vmul.f32 1.442695, %v515_v54  ;;  %v2820_v59 = vpop.eup %2819  ;;  %v785_v54 = vmul.f32 -0.0005, %v3297_v19 }
 0x308   :  { %2821 = vpow2.f32 %v516_v3 }
 0x30c   :  { %336 = vadd.xlane.f32.xlu1 %v335_v57 }
 0x312   :  { %252 = vadd.xlane.f32.xlu2 %v251_v58  ;;  %v678_v58 = vmul.f32 1.442695, %v677_v55 }
 0x314   :  { %378 = vadd.xlane.f32.xlu1 %v377_v62  ;;  %v605_v62 = vmul.f32 -5.0, %v3297_v19  ;;  %2823 = vpow2.f32 %v678_v58 }
 0x31a   :  { %280 = vadd.xlane.f32.xlu2 %v279_v0 }
 0x31c   :  { %v1205_v2 = vpop.xlane.xlu2 %1204  ;;  %420 = vadd.xlane.f32.xlu1 %v419_v48  ;;  %v1202_v6 = vpop.xlane.xlu1 %1201 }
 0x31d   :  { %v3265_v10 = vadd.f32 %v1216_v1, %v1205_v2  ;;  %v3267_v11 = vadd.f32 %v1216_v1, %v1202_v6  ;;  %v696_v2 = vmul.f32 1.442695, %v695_v63  ;;  %v2822_v6 = vpop.eup %2821 }
 0x31f   :  { %v1224_v8 = vsub.f32 %v3265_v10, %v3263_v61  ;;  %v1223_v12 = vsub.f32 %v3267_v11, %v3260_v7  ;;  %v839_v61 = vmul.f32 -5e-07, %v3297_v19 }
 0x322   :  { %322 = vadd.xlane.f32.xlu2 %v321_v13  ;;  %v2824_v13 = vpop.eup %2823 }
 0x323   :  { %v1208_v14 = vpop.xlane.xlu0 %1207 }
 0x324   :  { %v3280_v15 = vadd.f32 %v1216_v1, %v1208_v14  ;;  %462 = vadd.xlane.f32.xlu1 %v461_v36  ;;  %v3314_v38 = vpop.permute.xlu2 %875  ;;  %v606_v1 = vmul.f32 1.442695, %v605_v62  ;;  %v623_v36 = vmul.f32 -0.5, %v3297_v19 }
 0x325   :  { %v878_v47 = vsel %vm72_vm2, %v3314_v38, 0.0  ;;  %v786_v38 = vmul.f32 1.442695, %v785_v54 }
 0x326   :  { %v1225_v16 = vsub.f32 %v3280_v15, %v3278_v37  ;;  %2825 = vpow2.f32 %v606_v1 }
 0x327   :  { %2827 = vpow2.f32 %v696_v2  ;;  %v803_v2 = vmul.f32 -5e-05, %v3297_v19 }
 0x32a   :  { %364 = vadd.xlane.f32.xlu2 %v363_v20  ;;  %v749_v20 = vmul.f32 -0.014285714, %v3297_v19 }
 0x32c   :  { %504 = vadd.xlane.f32.xlu1 %v503_v18  ;;  %v3324_v51 = vpop.permute.xlu2 %890  ;;  %v624_v18 = vmul.f32 1.442695, %v623_v36  ;;  %v2826_v45 = vpop.eup %2825 }
 0x32e   :  { %266 = vadd.xlane.f32.xlu0 %v265_v21  ;;  %v750_v21 = vmul.f32 1.442695, %v749_v20  ;;  %2829 = vpow2.f32 %v624_v18  ;;  %v804_v20 = vmul.f32 1.442695, %v803_v2 }
 0x330   :  { %2831 = vpow2.f32 %v750_v21 }
 0x332   :  { %406 = vadd.xlane.f32.xlu2 %v405_v23 }
 0x334   :  { %v3335_v32 = vpop.permute.xlu2 %935  ;;  %v3340_v0 = vpop.permute.xlu1 %860 }
 0x335   :  { %v938_v58 = vsel %vm72_vm2, %v3335_v32, 0.0 }
 0x336   :  { %308 = vadd.xlane.f32.xlu0 %v307_v24  ;;  %v3312_v22 = vpop.permute.xlu0 %905  ;;  %v2828_v24 = vpop.eup %2827 }
 0x337   :  { %v2830_v35 = vpop.eup %2829 }
 0x33a   :  { %448 = vadd.xlane.f32.xlu2 %v447_v25 }
 0x33c   :  { %v996_v14 = vpop.permute.xlu2 %995  ;;  %v3348_v23 = vpop.permute.xlu1 %920 }
 0x33d   :  { %v923_v17 = vsel %vm72_vm2, %v3348_v23, 0.0 }
 0x33e   :  { %350 = vadd.xlane.f32.xlu0 %v349_v34  ;;  %v3321_v46 = vpop.permute.xlu0 %950  ;;  %v642_v34 = vmul.f32 1.442695, %v641_v33  ;;  %v1226_v33 = vmax.f32 %v1223_v12, 0.0 }
 0x340   :  { %2833 = vpow2.f32 %v642_v34 }
 0x342   :  { %490 = vadd.xlane.f32.xlu2 %v489_v26  ;;  %v2832_v26 = vpop.eup %2831 }
 0x344   :  { %v3354_v25 = vpop.permute.xlu2 %1100  ;;  %v3357_v27 = vpop.permute.xlu1 %980 }
 0x345   :  { %537 = vrot.lane.b32.xlu1 %v2810_v9, %s3032_s20 }
 0x346   :  { %392 = vadd.xlane.f32.xlu0 %v391_v28  ;;  %v3332_v57 = vpop.permute.xlu0 %965  ;;  %v713_v28 = vmul.f32 -0.02, %v3297_v19  ;;  %v2834_v39 = vpop.eup %2833 }
 0x348   :  { %v714_v31 = vmul.f32 1.442695, %v713_v28  ;;  %v1227_v28 = vmax.f32 %v1224_v8, 0.0 }
 0x34a   :  { %2835 = vpow2.f32 %v714_v31  ;;  %v3406_v5 = vsel %vm221_vm8, 0.0, %v1227_v28 }
 0x34c   :  { %v3364_v30 = vpop.permute.xlu2 %1115 }
 0x34d   :  { %573 = vrot.lane.b32.xlu1 %v2812_v41, %s3032_s20  ;;  %v767_v41 = vmul.f32 -0.005, %v3297_v19 }
 0x34e   :  { %434 = vadd.xlane.f32.xlu0 %v433_v42  ;;  %v3342_v48 = vpop.permute.xlu0 %1010  ;;  %v3368_v42 = vpop.permute.xlu1 %1085 }
 0x350   :  { %v2836_v49 = vpop.eup %2835 }
 0x355   :  { %663 = vrot.lane.b32.xlu1 %v2814_v50, %s3032_s20  ;;  %v768_v50 = vmul.f32 1.442695, %v767_v41  ;;  %v3397_v41 = vsel %vm3062_vm1, 0.0, %v1226_v33 }
 0x356   :  { %476 = vadd.xlane.f32.xlu0 %v475_v52  ;;  %v3350_v60 = vpop.permute.xlu0 %1025  ;;  %v1329_v8 = vmul.f32 -5.0, %v3397_v41  ;;  %v1386_v23 = vmul.f32 -0.05, %v3397_v41 }
 0x357   :  { %2837 = vpow2.f32 %v768_v50 }
 0x358   :  { %2839 = vpow2.f32 %v786_v38 }
 0x359   :  { %2841 = vpow2.f32 %v804_v20 }
 0x35a   :  { %555 = vrot.lane.b32.xlu2 %v2816_v53, %s3032_s20 }
 0x35d   :  { %735 = vrot.lane.b32.xlu1 %v2818_v56, %s3032_s20  ;;  %v2838_v1 = vpop.eup %2837 }
 0x35e   :  { %v3361_v9 = vpop.permute.xlu0 %1040  ;;  %v2840_v32 = vpop.eup %2839 }
 0x362   :  { %591 = vrot.lane.b32.xlu2 %v2820_v59, %s3032_s20 }
 0x366   :  { %v3370_v29 = vpop.permute.xlu0 %1055 }
 0x36a   :  { %519 = vrot.lane.b32.xlu0 %v2822_v6, %s3032_s20  ;;  %681 = vrot.lane.b32.xlu2 %v2824_v13, %s3032_s20  ;;  %v998_v13 = vsel %vm72_vm2, %v996_v14, 0.0  ;;  %v1028_v14 = vsel %vm72_vm2, %v3350_v60, 0.0  ;;  %v893_v60 = vsel %vm72_vm2, %v3324_v51, 0.0 }
 0x36e   :  { %v3378_v62 = vpop.permute.xlu0 %1070 }
 0x372   :  { %609 = vrot.lane.b32.xlu0 %v2826_v45, %s3032_s20  ;;  %699 = vrot.lane.b32.xlu2 %v2828_v24, %s3032_s20  ;;  %v821_v24 = vmul.f32 -5e-06, %v3297_v19  ;;  %v1330_v19 = vmul.f32 -5.0, %v3406_v5 }
 0x376   :  { %v3383_v18 = vpop.permute.xlu0 %1130 }
 0x377   :  { %v295_v56 = vpop.xlane.xlu1 %294 }
 0x378   :  { %v296_v21 = vrot.slane %v295_v56, 4 }
 0x37a   :  { %627 = vrot.lane.b32.xlu0 %v2830_v35, %s3032_s20  ;;  %753 = vrot.lane.b32.xlu2 %v2832_v26, %s3032_s20  ;;  %v297_v34 = vadd.f32 %v296_v21, %v295_v56  ;;  %v822_v26 = vmul.f32 1.442695, %v821_v24  ;;  %v840_v56 = vmul.f32 1.442695, %v839_v61 }
 0x37c   :  { %2843 = vpow2.f32 %v822_v26 }
 0x37d   :  { %2845 = vpow2.f32 %v840_v56 }
 0x37f   :  { %v337_v36 = vpop.xlane.xlu1 %336 }
 0x382   :  { %645 = vrot.lane.b32.xlu0 %v2834_v39, %s3032_s20  ;;  %v2842_v39 = vpop.eup %2841 }
 0x385   :  { %v253_v43 = vpop.xlane.xlu2 %252 }
 0x386   :  { %v254_v44 = vrot.slane %v253_v43, 4 }
 0x387   :  { %879 = vadd.xlane.f32.xlu1 %v878_v47  ;;  %v338_v47 = vrot.slane %v337_v36, 4 }
 0x388   :  { %v255_v52 = vadd.f32 %v254_v44, %v253_v43  ;;  %v379_v43 = vpop.xlane.xlu1 %378  ;;  %v298_v44 = vrot.slane %v297_v34, 2 }
 0x389   :  { %v339_v54 = vadd.f32 %v338_v47, %v337_v36 }
 0x38a   :  { %717 = vrot.lane.b32.xlu0 %v2836_v49, %s3032_s20  ;;  %v256_v53 = vrot.slane %v255_v52, 2 }
 0x38c   :  { %v257_v55 = vadd.f32 %v256_v53, %v255_v52  ;;  %v299_v53 = vadd.f32 %v298_v44, %v297_v34  ;;  %v1388_v44 = vmul.f32 1.442695, %v1386_v23 }
 0x38d   :  { %v281_v3 = vpop.xlane.xlu2 %280 }
 0x38e   :  { %v258_v59 = vrot.slane %v257_v55, 1  ;;  %v282_v45 = vrot.slane %v281_v3, 4  ;;  %v300_v2 = vrot.slane %v299_v53, 1 }
 0x38f   :  { %939 = vadd.xlane.f32.xlu1 %v938_v58  ;;  %v1331_v58 = vmul.f32 1.442695, %v1329_v8 }
 0x390   :  { %v259_v63 = vadd.f32 %v258_v59, %v257_v55  ;;  %v283_v35 = vadd.f32 %v282_v45, %v281_v3  ;;  %v1043_v55 = vsel %vm72_vm2, %v3361_v9, 0.0  ;;  %v2844_v59 = vpop.eup %2843  ;;  %v421_v21 = vpop.xlane.xlu1 %420  ;;  %v1333_v45 = vmul.f32 1.442695, %v1330_v19 }
 0x391   :  { %2847 = vpow2.f32 %v1331_v58 }
 0x392   :  { %771 = vrot.lane.b32.xlu0 %v2838_v1, %s3032_s20  ;;  %2535 = vpush %v259_v63  ;;  %v284_v12 = vrot.slane %v283_v35, 2  ;;  %2849 = vpow2.f32 %v1333_v45 }
 0x393   :  { %2851 = vpow2.f32 %v1388_v44 }
 0x394   :  { %v285_v49 = vadd.f32 %v284_v12, %v283_v35  ;;  %v1387_v12 = vmul.f32 -0.05, %v3406_v5 }
 0x395   :  { %v323_v6 = vpop.xlane.xlu2 %322 }
 0x396   :  { %v324_v7 = vrot.slane %v323_v6, 4  ;;  %v286_v1 = vrot.slane %v285_v49, 1 }
 0x397   :  { %999 = vadd.xlane.f32.xlu1 %v998_v13  ;;  %v380_v13 = vrot.slane %v379_v43, 4 }
 0x398   :  { %v325_v52 = vadd.f32 %v324_v7, %v323_v6  ;;  %v287_v35 = vadd.f32 %v286_v1, %v285_v49  ;;  %v463_v58 = vpop.xlane.xlu1 %462 }
 0x399   :  { %v381_v28 = vadd.f32 %v380_v13, %v379_v43 }
 0x39a   :  { %789 = vrot.lane.b32.xlu0 %v2840_v32, %s3032_s20  ;;  %v326_v6 = vrot.slane %v325_v52, 2  ;;  %v340_v32 = vrot.slane %v339_v54, 2 }
 0x39c   :  { %v327_v26 = vadd.f32 %v326_v6, %v325_v52 }
 0x39d   :  { %v365_v31 = vpop.xlane.xlu2 %364 }
 0x39e   :  { %v366_v38 = vrot.slane %v365_v31, 4  ;;  %v328_v43 = vrot.slane %v327_v26, 1 }
 0x39f   :  { %1029 = vadd.xlane.f32.xlu1 %v1028_v14  ;;  %v1058_v14 = vsel %vm72_vm2, %v3370_v29, 0.0 }
 0x3a0   :  { %v367_v34 = vadd.f32 %v366_v38, %v365_v31  ;;  %v953_v31 = vsel %vm72_vm2, %v3321_v46, 0.0  ;;  %v1443_v46 = vmul.f32 -0.02, %v3397_v41  ;;  %v329_v38 = vadd.f32 %v328_v43, %v327_v26 }
 0x3a1   :  { %v267_v11 = vpop.xlane.xlu0 %266 }
 0x3a2   :  { %v268_v50 = vrot.slane %v267_v11, 4  ;;  %807 = vrot.lane.b32.xlu0 %v2842_v39, %s3032_s20  ;;  %v301_v39 = vadd.f32 %v300_v2, %v299_v53  ;;  %v1103_v2 = vsel %vm72_vm2, %v3354_v25, 0.0 }
 0x3a3   :  { %894 = vadd.xlane.f32.xlu2 %v893_v60  ;;  %v422_v60 = vrot.slane %v421_v21, 4 }
 0x3a4   :  { %v269_v10 = vadd.f32 %v268_v50, %v267_v11  ;;  %v341_v11 = vadd.f32 %v340_v32, %v339_v54  ;;  %v2846_v50 = vpop.eup %2845  ;;  %v382_v54 = vrot.slane %v381_v28, 2  ;;  %v983_v32 = vsel %vm72_vm2, %v3357_v27, 0.0 }
 0x3a5   :  { %v407_v36 = vpop.xlane.xlu2 %406  ;;  %v3421_v8 = vpop.eup %2847 }
 0x3a6   :  { %v270_v51 = vrot.slane %v269_v10, 2  ;;  %v408_v29 = vrot.slane %v407_v36, 4  ;;  %4523 = vst [vmem:[#allocation11_spill] sm:$0xff] %v3421_v8  ;;  %v342_v53 = vrot.slane %v341_v11, 1  ;;  %v383_v13 = vadd.f32 %v382_v54, %v381_v28 }
 0x3a7   :  { %1044 = vadd.xlane.f32.xlu1 %v1043_v55  ;;  %v1390_v55 = vmul.f32 1.442695, %v1387_v12  ;;  %v1013_v54 = vsel %vm72_vm2, %v3342_v48, 0.0  ;;  %v1310_v48 = vmul.f32 -50.0, %v3397_v41 }
 0x3a8   :  { %v271_v3 = vadd.f32 %v270_v51, %v269_v10  ;;  %v368_v10 = vrot.slane %v367_v34, 2  ;;  %v343_v1 = vadd.f32 %v342_v53, %v341_v11  ;;  %v1501_v53 = vmul.f32 -0.005, %v3406_v5 }
 0x3a9   :  { %v309_v63 = vpop.xlane.xlu0 %308  ;;  %2853 = vpow2.f32 %v1390_v55 }
 0x3aa   :  { %v310_v20 = vrot.slane %v309_v63, 4  ;;  %825 = vrot.lane.b32.xlu0 %v2844_v59, %s3032_s20  ;;  %v272_v9 = vrot.slane %v271_v3, 1  ;;  %v409_v59 = vadd.f32 %v408_v29, %v407_v36 }
 0x3ab   :  { %924 = vadd.xlane.f32.xlu2 %v923_v17  ;;  %v3425_v17 = vpop.eup %2849 }
 0x3ac   :  { %v311_v24 = vadd.f32 %v310_v20, %v309_v63  ;;  %v273_v33 = vadd.f32 %v272_v9, %v271_v3  ;;  %4524 = vst [vmem:[#allocation12_spill] sm:$0xff] %v3425_v17  ;;  %v423_v3 = vadd.f32 %v422_v60, %v421_v21  ;;  %v369_v63 = vadd.f32 %v368_v10, %v367_v34  ;;  %v3436_v25 = vpop.eup %2851 }
 0x3ad   :  { %v449_v51 = vpop.xlane.xlu2 %448  ;;  %v1444_v20 = vmul.f32 -0.02, %v3406_v5  ;;  %v1445_v9 = vmul.f32 1.442695, %v1443_v46  ;;  %v1335_v21 = vsel %vm1238_vm11, %v3421_v8, 0.0  ;;  %v1336_v45 = vsel %vm1240_vm12, %v3425_v17, 0.0 }
 0x3ae   :  { %2537 = vpush %v273_v33  ;;  %v312_v7 = vrot.slane %v311_v24, 2  ;;  %v450_v23 = vrot.slane %v449_v51, 4  ;;  %v370_v33 = vrot.slane %v369_v63, 1  ;;  %v410_v34 = vrot.slane %v409_v59, 2 }
 0x3af   :  { %2539 = vpush %v287_v35  ;;  %1059 = vadd.xlane.f32.xlu1 %v1058_v14  ;;  %v424_v35 = vrot.slane %v423_v3, 2  ;;  %v464_v14 = vrot.slane %v463_v58, 4  ;;  %v1447_v27 = vmul.f32 1.442695, %v1444_v20  ;;  %v1337_v12 = vadd.f32 %v1336_v45, %v1335_v21  ;;  %v3438_v44 = vpop.eup %2853 }
 0x3b0   :  { %2541 = vpush %v301_v39  ;;  %v313_v47 = vadd.f32 %v312_v7, %v311_v24  ;;  %v384_v39 = vrot.slane %v383_v13, 1  ;;  %2855 = vpow2.f32 %v1445_v9  ;;  %v1392_v46 = vsel %vm1238_vm11, %v3436_v25, 0.0 }
 0x3b1   :  { %v351_v61 = vpop.xlane.xlu0 %350  ;;  %4525 = vst [vmem:[#allocation13_spill] sm:$0xff] %v3436_v25  ;;  %v425_v60 = vadd.f32 %v424_v35, %v423_v3  ;;  %v465_v29 = vadd.f32 %v464_v14, %v463_v58  ;;  %2857 = vpow2.f32 %v1447_v27 }
 0x3b2   :  { %v352_v52 = vrot.slane %v351_v61, 4  ;;  %843 = vrot.lane.b32.xlu0 %v2846_v50, %s3032_s20  ;;  %v314_v49 = vrot.slane %v313_v47, 1  ;;  %4526 = vst [vmem:[#allocation14_spill] sm:$0xff] %v3438_v44  ;;  %v411_v50 = vadd.f32 %v410_v34, %v409_v59  ;;  %v385_v43 = vadd.f32 %v384_v39, %v383_v13 }
 0x3b3   :  { %954 = vadd.xlane.f32.xlu2 %v953_v31  ;;  %v451_v31 = vadd.f32 %v450_v23, %v449_v51  ;;  %v1393_v51 = vsel %vm1240_vm12, %v3438_v44, 0.0  ;;  %v426_v58 = vrot.slane %v425_v60, 1 }
 0x3b4   :  { %v353_v56 = vadd.f32 %v352_v52, %v351_v61  ;;  %v315_v19 = vadd.f32 %v314_v49, %v313_v47  ;;  %v371_v47 = vadd.f32 %v370_v33, %v369_v63  ;;  %v505_v52 = vpop.xlane.xlu1 %504  ;;  %v1500_v49 = vmul.f32 -0.005, %v3397_v41 }
 0x3b5   :  { %v491_v61 = vpop.xlane.xlu2 %490  ;;  %v412_v3 = vrot.slane %v411_v50, 1  ;;  %v452_v59 = vrot.slane %v451_v31, 2  ;;  %v427_v35 = vadd.f32 %v426_v58, %v425_v60 }
 0x3b6   :  { %2543 = vpush %v315_v19  ;;  %v354_v6 = vrot.slane %v353_v56, 2  ;;  %v3449_v13 = vpop.eup %2855 }
 0x3b7   :  { %2545 = vpush %v329_v38  ;;  %1104 = vadd.xlane.f32.xlu1 %v1103_v2  ;;  %v506_v38 = vrot.slane %v505_v52, 4  ;;  %v466_v2 = vrot.slane %v465_v29, 2  ;;  %v3452_v21 = vpop.eup %2857  ;;  %v413_v23 = vadd.f32 %v412_v3, %v411_v50  ;;  %v453_v33 = vadd.f32 %v452_v59, %v451_v31 }
 0x3b8   :  { %2547 = vpush %v343_v1  ;;  %v355_v36 = vadd.f32 %v354_v6, %v353_v56  ;;  %v492_v56 = vrot.slane %v491_v61, 4  ;;  %v1502_v6 = vmul.f32 1.442695, %v1500_v49  ;;  %v1449_v27 = vsel %vm1238_vm11, %v3449_v13, 0.0 }
 0x3b9   :  { %v393_v24 = vpop.xlane.xlu0 %392  ;;  %4527 = vst [vmem:[#allocation15_spill] sm:$0xff] %v3449_v13  ;;  %v507_v34 = vadd.f32 %v506_v38, %v505_v52  ;;  %v454_v31 = vrot.slane %v453_v33, 1 }
 0x3ba   :  { %v394_v26 = vrot.slane %v393_v24, 4  ;;  %v356_v28 = vrot.slane %v355_v36, 1  ;;  %4528 = vst [vmem:[#allocation16_spill] sm:$0xff] %v3452_v21  ;;  %v493_v45 = vadd.f32 %v492_v56, %v491_v61  ;;  %2859 = vpow2.f32 %v1502_v6 }
 0x3bb   :  { %984 = vadd.xlane.f32.xlu2 %v983_v32  ;;  %v1504_v32 = vmul.f32 1.442695, %v1501_v53  ;;  %v1368_v53 = vmul.f32 -0.1, %v3406_v5 }
 0x3bc   :  { %v395_v7 = vadd.f32 %v394_v26, %v393_v24  ;;  %v357_v11 = vadd.f32 %v356_v28, %v355_v36  ;;  %v1311_v36 = vmul.f32 -50.0, %v3406_v5  ;;  %v1394_v24 = vadd.f32 %v1393_v51, %v1392_v46  ;;  %v3466_v38 = vpop.permute.xlu1 %537 }
 0x3bd   :  { %v467_v26 = vadd.f32 %v466_v2, %v465_v29  ;;  %v1312_v28 = vmul.f32 1.442695, %v1310_v48  ;;  %2861 = vpow2.f32 %v1504_v32  ;;  %v494_v50 = vrot.slane %v493_v45, 2 }
 0x3be   :  { %2549 = vpush %v357_v11  ;;  %v396_v10 = vrot.slane %v395_v7, 2  ;;  %v1371_v2 = vmul.f32 1.442695, %v1368_v53  ;;  %v1118_v48 = vsel %vm72_vm2, %v3364_v30, 0.0 }
 0x3bf   :  { %2551 = vpush %v371_v47  ;;  %1338 = vadd.xlane.f32.xlu1 %v1337_v12  ;;  %v1073_v12 = vsel %vm72_vm2, %v3378_v62, 0.0  ;;  %v1450_v47 = vsel %vm1240_vm12, %v3452_v21, 0.0  ;;  %v468_v61 = vrot.slane %v467_v26, 1  ;;  %2863 = vpow2.f32 %v1312_v28 }
 0x3c0   :  { %2553 = vpush %v385_v43  ;;  %v397_v55 = vadd.f32 %v396_v10, %v395_v7  ;;  %v1314_v7 = vmul.f32 1.442695, %v1311_v36  ;;  %v508_v43 = vrot.slane %v507_v34, 2  ;;  %v1367_v10 = vmul.f32 -0.1, %v3397_v41 }
 0x3c1   :  { %v435_v19 = vpop.xlane.xlu0 %434  ;;  %v455_v62 = vadd.f32 %v454_v31, %v453_v33  ;;  %v495_v46 = vadd.f32 %v494_v50, %v493_v45  ;;  %v469_v56 = vadd.f32 %v468_v61, %v467_v26  ;;  %v3478_v45 = vpop.permute.xlu2 %555  ;;  %v863_v31 = vsel %vm72_vm2, %v3340_v0, 0.0 }
 0x3c2   :  { %v436_v63 = vrot.slane %v435_v19, 4  ;;  %v398_v1 = vrot.slane %v397_v55, 1  ;;  %2865 = vpow2.f32 %v1314_v7  ;;  %v509_v3 = vadd.f32 %v508_v43, %v507_v34 }
 0x3c3   :  { %1014 = vadd.xlane.f32.xlu2 %v1013_v54  ;;  %v3462_v54 = vpop.eup %2859  ;;  %v1369_v59 = vmul.f32 1.442695, %v1367_v10  ;;  %v1481_v50 = vmul.f32 -0.014285714, %v3397_v41  ;;  %s3923_s22 = spop %2535 }
 0x3c4   :  { %v437_v20 = vadd.f32 %v436_v63, %v435_v19  ;;  %v399_v9 = vadd.f32 %v398_v1, %v397_v55  ;;  %4529 = vst [vmem:[#allocation17_spill] sm:$0xff] %v3462_v54  ;;  %v1451_v55 = vadd.f32 %v1450_v47, %v1449_v27  ;;  %v3464_v51 = vpop.eup %2861  ;;  %v496_v63 = vrot.slane %v495_v46, 1 }
 0x3c5   :  { %4530 = vst [vmem:[#allocation18_spill] sm:$0xff] %v3464_v51  ;;  %v1506_v1 = vsel %vm1238_vm11, %v3462_v54, 0.0  ;;  %v3470_v6 = vpop.eup %2863  ;;  %v1507_v32 = vsel %vm1240_vm12, %v3464_v51, 0.0  ;;  %2867 = vpow2.f32 %v1369_v59  ;;  %v1483_v0 = vmul.f32 1.442695, %v1481_v50 }
 0x3c6   :  { %2555 = vpush %v399_v9  ;;  %v438_v14 = vrot.slane %v437_v20, 2  ;;  %v510_v9 = vrot.slane %v509_v3, 1  ;;  %v497_v33 = vadd.f32 %v496_v63, %v495_v46  ;;  %v1508_v34 = vadd.f32 %v1507_v32, %v1506_v1 }
 0x3c7   :  { %2557 = vpush %v413_v23  ;;  %1395 = vadd.xlane.f32.xlu1 %v1394_v24  ;;  %v1424_v24 = vmul.f32 -0.025, %v3397_v41  ;;  %2869 = vpow2.f32 %v1371_v2  ;;  %v968_v2 = vsel %vm72_vm2, %v3332_v57, 0.0  ;;  %v1577_v54 = vmul.f32 -5e-07, %v3406_v5 }
 0x3c8   :  { %2559 = vpush %v427_v35  ;;  %v439_v39 = vadd.f32 %v438_v14, %v437_v20  ;;  %v3476_v36 = vpop.eup %2865  ;;  %v1425_v35 = vmul.f32 -0.025, %v3406_v5  ;;  %v511_v30 = vadd.f32 %v510_v9, %v509_v3  ;;  %v1316_v14 = vsel %vm1238_vm11, %v3470_v6, 0.0 }
 0x3c9   :  { %v477_v11 = vpop.xlane.xlu0 %476  ;;  %4531 = vst [vmem:[#allocation19_spill] sm:$0xff] %v3470_v6  ;;  %v1317_v26 = vsel %vm1240_vm12, %v3476_v36, 0.0  ;;  %v1426_v28 = vmul.f32 1.442695, %v1424_v24  ;;  %v1233_v24 = vmul.f32 -500000.0, %v3406_v5 }
 0x3ca   :  { %v478_v60 = vrot.slane %v477_v11, 4  ;;  %v440_v29 = vrot.slane %v439_v39, 1  ;;  %4532 = vst [vmem:[#allocation20_spill] sm:$0xff] %v3476_v36  ;;  %v1428_v27 = vmul.f32 1.442695, %v1425_v35 }
 0x3cb   :  { %1074 = vadd.xlane.f32.xlu2 %v1073_v12  ;;  %v3486_v7 = vpop.eup %2867  ;;  %v574_v12 = vpop.permute.xlu1 %573  ;;  %2871 = vpow2.f32 %v1426_v28  ;;  %v1253_v28 = vmul.f32 -50000.0, %v3397_v41 }
 0x3cc   :  { %v479_v52 = vadd.f32 %v478_v60, %v477_v11  ;;  %v441_v49 = vadd.f32 %v440_v29, %v439_v39  ;;  %v1318_v39 = vadd.f32 %v1317_v26, %v1316_v14  ;;  %4533 = vst [vmem:[#allocation21_spill] sm:$0xff] %v3486_v7  ;;  %v3493_v60 = vpop.permute.xlu2 %591  ;;  %2873 = vpow2.f32 %v1428_v27 }
 0x3cd   :  { %v3488_v11 = vpop.eup %2869  ;;  %v1482_v29 = vmul.f32 -0.014285714, %v3406_v5  ;;  %v576_v61 = vsel %vm72_vm2, %v574_v12, 0.0  ;;  %v1373_v43 = vsel %vm1238_vm11, %v3486_v7, 0.0  ;;  %2875 = vpow2.f32 %v1483_v0 }
 0x3ce   :  { %2561 = vpush %v441_v49  ;;  %v480_v19 = vrot.slane %v479_v52, 2  ;;  %v1374_v10 = vsel %vm1240_vm12, %v3488_v11, 0.0  ;;  %v1088_v14 = vsel %vm72_vm2, %v3368_v42, 0.0  ;;  %v1254_v27 = vmul.f32 -50000.0, %v3406_v5 }
 0x3cf   :  { %2563 = vpush %v455_v62  ;;  %1452 = vadd.xlane.f32.xlu1 %v1451_v55  ;;  %v1485_v49 = vmul.f32 1.442695, %v1482_v29  ;;  %v908_v55 = vsel %vm72_vm2, %v3312_v22, 0.0  ;;  %v1255_v12 = vmul.f32 1.442695, %v1253_v28 }
 0x3d0   :  { %2565 = vpush %v469_v56  ;;  %v481_v58 = vadd.f32 %v480_v19, %v479_v52  ;;  %v1375_v52 = vadd.f32 %v1374_v10, %v1373_v43  ;;  %v1257_v29 = vmul.f32 1.442695, %v1254_v27  ;;  %v1133_v43 = vsel %vm72_vm2, %v3383_v18, 0.0 }
 0x3d1   :  { %4534 = vst [vmem:[#allocation22_spill] sm:$0xff] %v3488_v11  ;;  %v3501_v53 = vpop.eup %2871  ;;  %2877 = vpow2.f32 %v1485_v49 }
 0x3d2   :  { %v482_v20 = vrot.slane %v481_v58, 1  ;;  %4535 = vst [vmem:[#allocation23_spill] sm:$0xff] %v3501_v53  ;;  %v3503_v62 = vpop.eup %2873  ;;  %v1430_v19 = vsel %vm1238_vm11, %v3501_v53, 0.0 }
 0x3d3   :  { %1119 = vadd.xlane.f32.xlu2 %v1118_v48  ;;  %4536 = vst [vmem:[#allocation24_spill] sm:$0xff] %v3503_v62  ;;  %v1431_v3 = vsel %vm1240_vm12, %v3503_v62, 0.0  ;;  %v3512_v59 = vpop.permute.xlu1 %663  ;;  %v3514_v1 = vpop.eup %2875 }
 0x3d4   :  { %v483_v23 = vadd.f32 %v482_v20, %v481_v58  ;;  %v682_v58 = vpop.permute.xlu2 %681  ;;  %v1432_v63 = vadd.f32 %v1431_v3, %v1430_v19  ;;  %4537 = vst [vmem:[#allocation25_spill] sm:$0xff] %v3514_v1  ;;  %v1232_v20 = vmul.f32 -500000.0, %v3397_v41  ;;  %v1487_v32 = vsel %vm1238_vm11, %v3514_v1, 0.0 }
 0x3d5   :  { %v540_v19 = vsel %vm72_vm2, %v3466_v38, 0.0 }
 0x3d6   :  { %2567 = vpush %v483_v23  ;;  %v1234_v57 = vmul.f32 1.442695, %v1232_v20  ;;  %v1291_v20 = vmul.f32 -500.0, %v3397_v41 }
 0x3d7   :  { %2569 = vpush %v497_v33  ;;  %1509 = vadd.xlane.f32.xlu1 %v1508_v34  ;;  %v3516_v22 = vpop.eup %2877 }
 0x3d8   :  { %2571 = vpush %v511_v30  ;;  %v1488_v23 = vsel %vm1240_vm12, %v3516_v22, 0.0  ;;  %v1236_v30 = vmul.f32 1.442695, %v1233_v24  ;;  %2879 = vpow2.f32 %v1234_v57 }
 0x3d9   :  { %4538 = vst [vmem:[#allocation26_spill] sm:$0xff] %v3516_v22  ;;  %v1489_v34 = vadd.f32 %v1488_v23, %v1487_v32  ;;  %v1293_v23 = vmul.f32 1.442695, %v1291_v20 }
 0x3da   :  { %2881 = vpow2.f32 %v1236_v30 }
 0x3db   :  { %1319 = vadd.xlane.f32.xlu2 %v1318_v39  ;;  %v3529_v35 = vpop.permute.xlu1 %735  ;;  %v684_v39 = vsel %vm72_vm2, %v682_v58, 0.0  ;;  %2883 = vpow2.f32 %v1255_v12  ;;  %v1348_v12 = vmul.f32 -0.5, %v3397_v41 }
 0x3dc   :  { %v520_v47 = vpop.permute.xlu0 %519  ;;  %864 = vadd.xlane.f32.xlu0 %v863_v31  ;;  %v3527_v33 = vpop.permute.xlu2 %699  ;;  %2885 = vpow2.f32 %v1257_v29 }
 0x3dd   :  { %v522_v50 = vsel %vm72_vm2, %v520_v47, 0.0  ;;  %v1273_v47 = vmul.f32 -5000.0, %v3406_v5 }
 0x3de   :  { %v3541_v42 = vpop.eup %2879 }
 0x3df   :  { %577 = vadd.xlane.f32.xlu1 %v576_v61  ;;  %4539 = vst [vmem:[#allocation27_spill] sm:$0xff] %v3541_v42  ;;  %v1276_v58 = vmul.f32 1.442695, %v1273_v47  ;;  %s3926_s23 = spop %2537 }
 0x3e0   :  { %v3545_v10 = vpop.eup %2881  ;;  %s3933_s24 = spop %2539  ;;  %s275_s12 = sadd.f32 %s3926_s23, %s3923_s22 }
 0x3e1   :  { %4540 = vst [vmem:[#allocation28_spill] sm:$0xff] %v3545_v10  ;;  %v1241_v18 = vsel %vm1240_vm12, %v3545_v10, 0.0  ;;  %s3937_s25 = spop %2541 }
 0x3e2   :  { %s4071_s16 = sadd.f32 %s3933_s24, %s275_s12 }
 0x3e3   :  { %1376 = vadd.xlane.f32.xlu2 %v1375_v52  ;;  %v1272_v52 = vmul.f32 -5000.0, %v3397_v41 }
 0x3e4   :  { %v610_v46 = vpop.permute.xlu0 %609  ;;  %909 = vadd.xlane.f32.xlu0 %v908_v55  ;;  %v754_v61 = vpop.permute.xlu2 %753  ;;  %v1239_v55 = vsel %vm1238_vm11, %v3541_v42, 0.0  ;;  %s303_s1 = sadd.f32 %s3937_s25, %s4071_s16 }
 0x3e5   :  { %v612_v56 = vsel %vm72_vm2, %v610_v46, 0.0  ;;  %v756_v49 = vsel %vm72_vm2, %v754_v61, 0.0  ;;  %v1274_v46 = vmul.f32 1.442695, %v1272_v52  ;;  %v1242_v3 = vadd.f32 %v1241_v18, %v1239_v55 }
 0x3e6   :  { %v1557_v61 = vmul.f32 -5e-06, %v3397_v41  ;;  %v1350_v52 = vmul.f32 1.442695, %v1348_v12 }
 0x3e7   :  { %613 = vadd.xlane.f32.xlu1 %v612_v56  ;;  %2887 = vpow2.f32 %v1274_v46  ;;  %s3940_s26 = spop %2543 }
 0x3e8   :  { %2889 = vpow2.f32 %v1276_v58  ;;  %s3951_s27 = spop %2545  ;;  %s4089_s22 = sadd.f32 %s3940_s26, %s303_s1 }
 0x3e9   :  { %2891 = vpow2.f32 %v1293_v23  ;;  %s3959_s28 = spop %2547 }
 0x3ea   :  { %s331_s12 = sadd.f32 %s3951_s27, %s4089_s22 }
 0x3eb   :  { %1433 = vadd.xlane.f32.xlu2 %v1432_v63  ;;  %v3560_v63 = vpop.eup %2883 }
 0x3ec   :  { %v628_v48 = vpop.permute.xlu0 %627  ;;  %969 = vadd.xlane.f32.xlu0 %v968_v2  ;;  %4541 = vst [vmem:[#allocation29_spill] sm:$0xff] %v3560_v63  ;;  %v3562_v2 = vpop.eup %2885  ;;  %v1259_v32 = vsel %vm1238_vm11, %v3560_v63, 0.0 }
 0x3ed   :  { %v630_v9 = vsel %vm72_vm2, %v628_v48, 0.0  ;;  %4542 = vst [vmem:[#allocation30_spill] sm:$0xff] %v3562_v2  ;;  %v1260_v38 = vsel %vm1240_vm12, %v3562_v2, 0.0 }
 0x3ee   :  { %v1261_v57 = vadd.f32 %v1260_v38, %v1259_v32  ;;  %v1405_v32 = vmul.f32 -0.033333335, %v3397_v41 }
 0x3ef   :  { %631 = vadd.xlane.f32.xlu1 %v630_v9  ;;  %v1292_v9 = vmul.f32 -500.0, %v3406_v5  ;;  %s3965_s29 = spop %2549 }
 0x3f0   :  { %s3972_s30 = spop %2551 }
 0x3f1   :  { %v1295_v30 = vmul.f32 1.442695, %v1292_v9  ;;  %s3985_s3 = spop %2553 }
 0x3f3   :  { %1490 = vadd.xlane.f32.xlu2 %v1489_v34  ;;  %v594_v34 = vsel %vm72_vm2, %v3493_v60, 0.0  ;;  %2893 = vpow2.f32 %v1295_v30 }
 0x3f4   :  { %v3533_v26 = vpop.permute.xlu0 %645  ;;  %1089 = vadd.xlane.f32.xlu0 %v1088_v14  ;;  %v3576_v14 = vpop.eup %2887  ;;  %2895 = vpow2.f32 %v1350_v52  ;;  %v1462_v52 = vmul.f32 -0.016666668, %v3397_v41 }
 0x3f5   :  { %4543 = vst [vmem:[#allocation31_spill] sm:$0xff] %v3576_v14  ;;  %v3578_v28 = vpop.eup %2889  ;;  %v1278_v60 = vsel %vm1238_vm11, %v3576_v14, 0.0  ;;  %v648_v47 = vsel %vm72_vm2, %v3533_v26, 0.0  ;;  %v1406_v26 = vmul.f32 -0.033333335, %v3406_v5 }
 0x3f6   :  { %4544 = vst [vmem:[#allocation32_spill] sm:$0xff] %v3578_v28  ;;  %v1279_v29 = vsel %vm1240_vm12, %v3578_v28, 0.0  ;;  %v3593_v46 = vpop.eup %2891 }
 0x3f7   :  { %685 = vadd.xlane.f32.xlu1 %v684_v39  ;;  %v1280_v55 = vadd.f32 %v1279_v29, %v1278_v60  ;;  %4545 = vst [vmem:[#allocation33_spill] sm:$0xff] %v3593_v46  ;;  %v1297_v23 = vsel %vm1238_vm11, %v3593_v46, 0.0  ;;  %v1409_v12 = vmul.f32 1.442695, %v1406_v26  ;;  %v738_v26 = vsel %vm72_vm2, %v3529_v35, 0.0  ;;  %s3990_s4 = spop %2555 }
 0x3f8   :  { %s3999_s5 = spop %2557 }
 0x3f9   :  { %s4010_s6 = spop %2559 }
 0x3fa   :  { %v3538_v31 = vpop.xlane.xlu1 %879 }
 0x3fb   :  { %523 = vadd.xlane.f32.xlu2 %v522_v50  ;;  %v1349_v50 = vmul.f32 -0.5, %v3406_v5 }
 0x3fc   :  { %v3547_v0 = vpop.permute.xlu0 %717  ;;  %1134 = vadd.xlane.f32.xlu0 %v1133_v43  ;;  %v1558_v43 = vmul.f32 -5e-06, %v3406_v5 }
 0x3fd   :  { %v1352_v18 = vmul.f32 1.442695, %v1349_v50 }
 0x3fe   :  { %v1561_v20 = vmul.f32 1.442695, %v1558_v43 }
 0x3ff   :  { %757 = vadd.xlane.f32.xlu1 %v756_v49  ;;  %2897 = vpow2.f32 %v1352_v18  ;;  %s4014_s7 = spop %2561 }
 0x400   :  { %s4021_s8 = spop %2563 }
 0x401   :  { %s4030_s9 = spop %2565 }
 0x402   :  { %v3556_v56 = vpop.xlane.xlu1 %939 }
 0x403   :  { %541 = vadd.xlane.f32.xlu2 %v540_v19  ;;  %v1559_v19 = vmul.f32 1.442695, %v1557_v61 }
 0x404   :  { %v3564_v48 = vpop.permute.xlu0 %771  ;;  %1243 = vadd.xlane.f32.xlu0 %v1242_v3  ;;  %v3595_v3 = vpop.eup %2893 }
 0x405   :  { %4546 = vst [vmem:[#allocation34_spill] sm:$0xff] %v3595_v3  ;;  %2899 = vpow2.f32 %v1559_v19  ;;  %v3610_v50 = vpop.eup %2895  ;;  %v774_v15 = vsel %vm72_vm2, %v3564_v48, 0.0 }
 0x406   :  { %2901 = vpow2.f32 %v1561_v20  ;;  %4547 = vst [vmem:[#allocation35_spill] sm:$0xff] %v3610_v50  ;;  %v3612_v60 = vpop.eup %2897  ;;  %v1354_v18 = vsel %vm1238_vm11, %v3610_v50, 0.0 }
 0x407   :  { %4548 = vst [vmem:[#allocation36_spill] sm:$0xff] %v3612_v60  ;;  %v1355_v19 = vsel %vm1240_vm12, %v3612_v60, 0.0  ;;  %s4034_s10 = spop %2567 }
 0x408   :  { %s4042_s11 = spop %2569 }
 0x409   :  { %s4049_s13 = spop %2571 }
 0x40a   :  { %v3572_v24 = vpop.xlane.xlu1 %999  ;;  %4589 = sst [smem:[#allocation62_spill]] %s4049_s13 }
 0x40b   :  { %595 = vadd.xlane.f32.xlu2 %v594_v34  ;;  %v1298_v34 = vsel %vm1240_vm12, %v3595_v3, 0.0  ;;  %v3614_v61 = vpop.eup %2899 }
 0x40c   :  { %v790_v39 = vpop.permute.xlu0 %789  ;;  %1262 = vadd.xlane.f32.xlu0 %v1261_v57  ;;  %v1407_v57 = vmul.f32 1.442695, %v1405_v32  ;;  %4549 = vst [vmem:[#allocation37_spill] sm:$0xff] %v3614_v61 }
 0x40d   :  { %v792_v27 = vsel %vm72_vm2, %v790_v39, 0.0  ;;  %v702_v39 = vsel %vm72_vm2, %v3527_v33, 0.0 }
 0x40e   :  { %793 = vadd.xlane.f32.xlu1 %v792_v27  ;;  %v1299_v27 = vadd.f32 %v1298_v34, %v1297_v23  ;;  %2903 = vpow2.f32 %v1407_v57  ;;  %v1356_v23 = vadd.f32 %v1355_v19, %v1354_v18 }
 0x40f   :  { %2905 = vpow2.f32 %v1409_v12  ;;  %v1538_v12 = vmul.f32 -5e-05, %v3397_v41 }
 0x411   :  { %v1540_v18 = vmul.f32 1.442695, %v1538_v12 }
 0x412   :  { %v3589_v49 = vpop.xlane.xlu1 %1029 }
 0x413   :  { %649 = vadd.xlane.f32.xlu2 %v648_v47  ;;  %v3618_v47 = vpop.eup %2901 }
 0x414   :  { %v808_v58 = vpop.permute.xlu0 %807  ;;  %1281 = vadd.xlane.f32.xlu0 %v1280_v55  ;;  %4550 = vst [vmem:[#allocation38_spill] sm:$0xff] %v3618_v47  ;;  %v1463_v55 = vmul.f32 -0.016666668, %v3406_v5  ;;  %v1564_v20 = vsel %vm1240_vm12, %v3618_v47, 0.0  ;;  %v3635_v57 = vpop.eup %2903 }
 0x415   :  { %v810_v9 = vsel %vm72_vm2, %v808_v58, 0.0  ;;  %v1563_v58 = vsel %vm1238_vm11, %v3614_v61, 0.0  ;;  %4551 = vst [vmem:[#allocation39_spill] sm:$0xff] %v3635_v57 }
 0x416   :  { %811 = vadd.xlane.f32.xlu1 %v810_v9  ;;  %v3599_v38 = vpop.xlane.xlu2 %894  ;;  %v1464_v9 = vmul.f32 1.442695, %v1462_v52  ;;  %v1466_v34 = vmul.f32 1.442695, %v1463_v55  ;;  %v1411_v52 = vsel %vm1238_vm11, %v3635_v57, 0.0  ;;  %v1655_v57 = vrot.slane %v3578_v28, 4 }
 0x418   :  { %2907 = vpow2.f32 %v1464_v9 }
 0x419   :  { %2909 = vpow2.f32 %v1466_v34 }
 0x41a   :  { %v3606_v30 = vpop.xlane.xlu1 %1044  ;;  %2911 = vpow2.f32 %v1540_v18 }
 0x41b   :  { %703 = vadd.xlane.f32.xlu2 %v702_v39  ;;  %v3637_v39 = vpop.eup %2905  ;;  %v1046_v47 = vrot.slane %v3606_v30, 4 }
 0x41c   :  { %v826_v29 = vpop.permute.xlu0 %825  ;;  %1300 = vadd.xlane.f32.xlu0 %v1299_v27  ;;  %4552 = vst [vmem:[#allocation40_spill] sm:$0xff] %v3637_v39  ;;  %v1565_v27 = vadd.f32 %v1564_v20, %v1563_v58  ;;  %v1412_v55 = vsel %vm1240_vm12, %v3637_v39, 0.0 }
 0x41d   :  { %v828_v43 = vsel %vm72_vm2, %v826_v29, 0.0  ;;  %v1228_v29 = vmax.f32 %v1225_v16, 0.0  ;;  %v1413_v16 = vadd.f32 %v1412_v55, %v1411_v52 }
 0x41e   :  { %829 = vadd.xlane.f32.xlu1 %v828_v43  ;;  %v3620_v33 = vpop.xlane.xlu2 %924  ;;  %v1539_v43 = vmul.f32 -5e-05, %v3406_v5  ;;  %v3657_v58 = vpop.eup %2907 }
 0x41f   :  { %v3653_v19 = vsel %vm1195_vm10, 0.0, %v1228_v29  ;;  %4554 = vst [vmem:[#allocation42_spill] sm:$0xff] %v3657_v58  ;;  %v3659_v20 = vpop.eup %2909  ;;  %v926_v51 = vrot.slane %v3620_v33, 4 }
 0x420   :  { %4553 = vst [vmem:[#allocation41_spill] sm:$0xff] %v3653_v19  ;;  %v1542_v37 = vmul.f32 1.442695, %v1539_v43  ;;  %v1469_v48 = vsel %vm1240_vm12, %v3659_v20, 0.0  ;;  %v3671_v12 = vpop.eup %2911 }
 0x421   :  { %4555 = vst [vmem:[#allocation43_spill] sm:$0xff] %v3659_v20  ;;  %v927_v21 = vadd.f32 %v926_v51, %v3620_v33 }
 0x422   :  { %v3631_v32 = vpop.xlane.xlu1 %1059  ;;  %2913 = vpow2.f32 %v1542_v37  ;;  %4556 = vst [vmem:[#allocation44_spill] sm:$0xff] %v3671_v12 }
 0x423   :  { %739 = vadd.xlane.f32.xlu2 %v738_v26  ;;  %v1596_v26 = vmul.f32 -500000.0, %v3653_v19  ;;  %v928_v17 = vrot.slane %v927_v21, 2 }
 0x424   :  { %1357 = vadd.xlane.f32.xlu0 %v1356_v23  ;;  %v844_v40 = vpop.permute.xlu0 %843  ;;  %v1468_v23 = vsel %vm1238_vm11, %v3657_v58, 0.0 }
 0x425   :  { %v1597_v34 = vmul.f32 1.442695, %v1596_v26  ;;  %v846_v29 = vsel %vm72_vm2, %v844_v40, 0.0  ;;  %v1470_v43 = vadd.f32 %v1469_v48, %v1468_v23  ;;  %v558_v23 = vsel %vm72_vm2, %v3478_v45, 0.0 }
 0x426   :  { %1566 = vadd.xlane.f32.xlu1 %v1565_v27  ;;  %v3644_v35 = vpop.xlane.xlu2 %954  ;;  %v1704_v27 = vmul.f32 -50.0, %v3653_v19  ;;  %v666_v45 = vsel %vm72_vm2, %v3512_v59, 0.0  ;;  %v1580_v59 = vmul.f32 1.442695, %v1577_v54 }
 0x427   :  { %2915 = vpow2.f32 %v1597_v34  ;;  %v1519_v34 = vmul.f32 -0.0005, %v3397_v41  ;;  %v956_v62 = vrot.slane %v3644_v35, 4 }
 0x428   :  { %v3674_v52 = vpop.eup %2913  ;;  %v1705_v55 = vmul.f32 1.442695, %v1704_v27 }
 0x429   :  { %4557 = vst [vmem:[#allocation45_spill] sm:$0xff] %v3674_v52  ;;  %v957_v33 = vadd.f32 %v956_v62, %v3644_v35 }
 0x42a   :  { %v3661_v9 = vpop.xlane.xlu1 %1104  ;;  %2917 = vpow2.f32 %v1705_v55  ;;  %v1521_v55 = vmul.f32 1.442695, %v1519_v34  ;;  %v1623_v34 = vmul.f32 -50000.0, %v3653_v19 }
 0x42b   :  { %775 = vadd.xlane.f32.xlu2 %v774_v15  ;;  %v1544_v15 = vsel %vm1238_vm11, %v3671_v12, 0.0  ;;  %v958_v35 = vrot.slane %v957_v33, 2 }
 0x42c   :  { %1414 = vadd.xlane.f32.xlu0 %v1413_v16  ;;  %v1545_v16 = vsel %vm1240_vm12, %v3674_v52, 0.0  ;;  %2919 = vpow2.f32 %v1521_v55 }
 0x42d   :  { %v1546_v26 = vadd.f32 %v1545_v16, %v1544_v15  ;;  %v2916_v40 = vpop.eup %2915 }
 0x42e   :  { %v3664_v4 = vpop.xlane.xlu2 %984  ;;  %v1602_v48 = vrot.slane %v2916_v40, 4  ;;  %v1709_v40 = vrot.slane %v3476_v36, 4 }
 0x432   :  { %v3676_v18 = vpop.xlane.xlu1 %1338 }
 0x433   :  { %847 = vadd.xlane.f32.xlu2 %v846_v29  ;;  %v1520_v29 = vmul.f32 -0.0005, %v3406_v5  ;;  %v1650_v5 = vmul.f32 -5000.0, %v3653_v19 }
 0x434   :  { %1471 = vadd.xlane.f32.xlu0 %v1470_v43  ;;  %v3690_v43 = vpop.eup %2917 }
 0x435   :  { %v1710_v16 = vrot.slane %v3690_v43, 4  ;;  %v1651_v1 = vmul.f32 1.442695, %v1650_v5 }
 0x436   :  { %v3678_v37 = vpop.xlane.xlu2 %1014 }
 0x437   :  { %v1711_v61 = vsel %vm137_vm4, %v1709_v40, %v1710_v16  ;;  %v1624_v40 = vmul.f32 1.442695, %v1623_v34 }
 0x43a   :  { %v3693_v15 = vpop.xlane.xlu1 %1395 }
 0x43b   :  { %1547 = vadd.xlane.f32.xlu2 %v1546_v26  ;;  %v1523_v26 = vmul.f32 1.442695, %v1520_v29 }
 0x43c   :  { %559 = vadd.xlane.f32.xlu0 %v558_v23  ;;  %v1576_v23 = vmul.f32 -5e-07, %v3397_v41  ;;  %v720_v41 = vsel %vm72_vm2, %v3547_v0, 0.0  ;;  %v1601_v0 = vrot.slane %v3545_v10, 4 }
 0x43d   :  { %2921 = vpow2.f32 %v1523_v26 }
 0x43e   :  { %v3687_v27 = vpop.xlane.xlu2 %1074  ;;  %v1578_v29 = vmul.f32 1.442695, %v1576_v23  ;;  %v1603_v34 = vsel %vm137_vm4, %v1601_v0, %v1602_v48 }
 0x43f   :  { %1606 = vrot.lane.b32.xlu1 %v1602_v48, %s3033_s21 }
 0x440   :  { %2923 = vpow2.f32 %v1578_v29 }
 0x441   :  { %2925 = vpow2.f32 %v1580_v59 }
 0x442   :  { %v3706_v43 = vpop.xlane.xlu1 %1452  ;;  %2927 = vpow2.f32 %v1624_v40 }
 0x443   :  { %2929 = vpow2.f32 %v1651_v1 }
 0x444   :  { %667 = vadd.xlane.f32.xlu0 %v666_v45  ;;  %v3708_v45 = vpop.eup %2919 }
 0x445   :  { %4558 = vst [vmem:[#allocation46_spill] sm:$0xff] %v3708_v45  ;;  %v3712_v55 = vpop.eup %2921  ;;  %v1525_v54 = vsel %vm1238_vm11, %v3708_v45, 0.0 }
 0x446   :  { %v3700_v12 = vpop.xlane.xlu2 %1119  ;;  %4559 = vst [vmem:[#allocation47_spill] sm:$0xff] %v3712_v55  ;;  %v1526_v23 = vsel %vm1240_vm12, %v3712_v55, 0.0 }
 0x447   :  { %1712 = vrot.lane.b32.xlu1 %v1711_v61, %s3033_s21  ;;  %v1527_v29 = vadd.f32 %v1526_v23, %v1525_v54 }
 0x44a   :  { %v3730_v58 = vpop.xlane.xlu1 %1509 }
 0x44c   :  { %721 = vadd.xlane.f32.xlu0 %v720_v41  ;;  %v3725_v41 = vpop.eup %2923 }
 0x44d   :  { %4560 = vst [vmem:[#allocation48_spill] sm:$0xff] %v3725_v41  ;;  %v3728_v59 = vpop.eup %2925  ;;  %v1582_v40 = vsel %vm1238_vm11, %v3725_v41, 0.0 }
 0x44e   :  { %v3715_v26 = vpop.xlane.xlu2 %1319  ;;  %4561 = vst [vmem:[#allocation49_spill] sm:$0xff] %v3728_v59  ;;  %v2928_v45 = vpop.eup %2927  ;;  %v1583_v48 = vsel %vm1240_vm12, %v3728_v59, 0.0 }
 0x44f   :  { %v3717_v61 = vpop.xlane.xlu0 %864  ;;  %v1629_v5 = vrot.slane %v2928_v45, 4  ;;  %v1584_v54 = vadd.f32 %v1583_v48, %v1582_v40  ;;  %v2930_v23 = vpop.eup %2929  ;;  %v1677_v48 = vmul.f32 -500.0, %v3653_v19 }
 0x451   :  { %v1678_v7 = vmul.f32 1.442695, %v1677_v48 }
 0x452   :  { %v3741_v0 = vpop.xlane.xlu1 %577 }
 0x453   :  { %1604 = vrot.lane.b32.xlu2 %v1603_v34, %s3033_s21  ;;  %v1656_v34 = vrot.slane %v2930_v23, 4  ;;  %2931 = vpow2.f32 %v1678_v7 }
 0x454   :  { %1528 = vadd.xlane.f32.xlu0 %v1527_v29 }
 0x455   :  { %v1657_v41 = vsel %vm137_vm4, %v1655_v57, %v1656_v34 }
 0x456   :  { %v3732_v13 = vpop.xlane.xlu2 %1376 }
 0x457   :  { %v3734_v53 = vpop.xlane.xlu0 %909 }
 0x459   :  { %v2932_v63 = vpop.eup %2931 }
 0x45a   :  { %v3754_v40 = vpop.xlane.xlu1 %613 }
 0x45b   :  { %1633 = vrot.lane.b32.xlu2 %v1629_v5, %s3033_s21 }
 0x45c   :  { %1585 = vadd.xlane.f32.xlu0 %v1584_v54  ;;  %v1628_v54 = vrot.slane %v3562_v2, 4 }
 0x45e   :  { %v3743_v1 = vpop.xlane.xlu2 %1433  ;;  %v1630_v57 = vsel %vm137_vm4, %v1628_v54, %v1629_v5  ;;  %v1683_v5 = vrot.slane %v2932_v63, 4 }
 0x45f   :  { %v3745_v29 = vpop.xlane.xlu0 %969 }
 0x462   :  { %v3763_v36 = vpop.xlane.xlu1 %631 }
 0x463   :  { %1658 = vrot.lane.b32.xlu2 %v1657_v41, %s3033_s21 }
 0x466   :  { %v3750_v25 = vpop.xlane.xlu2 %1490 }
 0x467   :  { %4562 = vst [vmem:[#allocation50_spill] sm:$0xff] %v3750_v25  ;;  %v3752_v45 = vpop.xlane.xlu0 %1089 }
 0x46a   :  { %v3768_v54 = vpop.xlane.xlu1 %685 }
 0x46b   :  { %1714 = vrot.lane.b32.xlu2 %v1710_v16, %s3033_s21 }
 0x46e   :  { %v524_v23 = vpop.xlane.xlu2 %523 }
 0x46f   :  { %v3759_v50 = vpop.xlane.xlu0 %1134  ;;  %v525_v8 = vrot.slane %v524_v23, 4 }
 0x470   :  { %1631 = vrot.lane.b32.xlu0 %v1630_v57, %s3033_s21 }
 0x471   :  { %v526_v41 = vadd.f32 %v525_v8, %v524_v23  ;;  %v1682_v8 = vrot.slane %v3595_v3, 4 }
 0x473   :  { %v527_v6 = vrot.slane %v526_v41, 2  ;;  %v1684_v57 = vsel %vm137_vm4, %v1682_v8, %v1683_v5  ;;  %v1001_v8 = vrot.slane %v3572_v24, 4 }
 0x475   :  { %v528_v46 = vadd.f32 %v527_v6, %v526_v41  ;;  %v1002_v59 = vadd.f32 %v1001_v8, %v3572_v24 }
 0x476   :  { %v542_v28 = vpop.xlane.xlu2 %541 }
 0x477   :  { %v543_v14 = vrot.slane %v542_v28, 4  ;;  %v3765_v16 = vpop.xlane.xlu0 %1243  ;;  %v529_v2 = vrot.slane %v528_v46, 1 }
 0x478   :  { %1660 = vrot.lane.b32.xlu0 %v1656_v34, %s3033_s21 }
 0x479   :  { %v544_v48 = vadd.f32 %v543_v14, %v542_v28  ;;  %v530_v10 = vadd.f32 %v529_v2, %v528_v46  ;;  %v3777_v2 = vpop.xlane.xlu1 %757  ;;  %v881_v46 = vrot.slane %v3538_v31, 4 }
 0x47b   :  { %v545_v42 = vrot.slane %v544_v48, 2  ;;  %2573 = vpush %v530_v10 }
 0x47d   :  { %v546_v7 = vadd.f32 %v545_v42, %v544_v48  ;;  %v941_v48 = vrot.slane %v3556_v56, 4 }
 0x47e   :  { %v3771_v23 = vpop.xlane.xlu2 %595 }
 0x47f   :  { %v3773_v6 = vpop.xlane.xlu0 %1262  ;;  %v547_v41 = vrot.slane %v546_v7, 1 }
 0x480   :  { %1685 = vrot.lane.b32.xlu0 %v1684_v57, %s3033_s21 }
 0x481   :  { %v548_v34 = vadd.f32 %v547_v41, %v546_v7  ;;  %v3784_v42 = vpop.xlane.xlu1 %793  ;;  %v1031_v7 = vrot.slane %v3589_v49, 4  ;;  %v882_v41 = vadd.f32 %v881_v46, %v3538_v31  ;;  %v1003_v46 = vrot.slane %v1002_v59, 2 }
 0x483   :  { %2575 = vpush %v548_v34  ;;  %v896_v34 = vrot.slane %v3599_v38, 4  ;;  %v1032_v55 = vadd.f32 %v1031_v7, %v3589_v49  ;;  %v883_v20 = vrot.slane %v882_v41, 2 }
 0x485   :  { %v897_v22 = vadd.f32 %v896_v34, %v3599_v38  ;;  %v1033_v8 = vrot.slane %v1032_v55, 2  ;;  %v884_v49 = vadd.f32 %v883_v20, %v882_v41  ;;  %v1004_v34 = vadd.f32 %v1003_v46, %v1002_v59 }
 0x486   :  { %v3779_v10 = vpop.xlane.xlu2 %649  ;;  %v1340_v41 = vrot.slane %v3676_v18, 4  ;;  %v579_v59 = vrot.slane %v3741_v0, 4 }
 0x487   :  { %v3781_v63 = vpop.xlane.xlu0 %1281  ;;  %v898_v7 = vrot.slane %v897_v22, 2  ;;  %v1034_v51 = vadd.f32 %v1033_v8, %v1032_v55  ;;  %v885_v11 = vrot.slane %v884_v49, 1  ;;  %v1005_v25 = vrot.slane %v1004_v34, 1 }
 0x488   :  { %1687 = vrot.lane.b32.xlu0 %v1683_v5, %s3033_s21  ;;  %v942_v5 = vadd.f32 %v941_v48, %v3556_v56  ;;  %v1047_v56 = vadd.f32 %v1046_v47, %v3606_v30  ;;  %v1061_v48 = vrot.slane %v3631_v32, 4  ;;  %v1106_v30 = vrot.slane %v3661_v9, 4 }
 0x489   :  { %v3803_v52 = vpop.xlane.xlu1 %811  ;;  %v899_v19 = vadd.f32 %v898_v7, %v897_v22  ;;  %v1035_v46 = vrot.slane %v1034_v51, 1  ;;  %v3828_v55 = vadd.f32 %v885_v11, %v884_v49  ;;  %v597_v8 = vrot.slane %v3771_v23, 4 }
 0x48a   :  { %v943_v31 = vrot.slane %v942_v5, 2  ;;  %v1048_v38 = vrot.slane %v1047_v56, 2  ;;  %v1062_v60 = vadd.f32 %v1061_v48, %v3631_v32  ;;  %v1107_v32 = vadd.f32 %v1106_v30, %v3661_v9 }
 0x48b   :  { %v900_v62 = vrot.slane %v899_v19, 1  ;;  %v3834_v7 = vadd.f32 %v1005_v25, %v1004_v34  ;;  %v3837_v9 = vadd.f32 %v1340_v41, %v3676_v18  ;;  %v3842_v30 = vadd.f32 %v1035_v46, %v1034_v51 }
 0x48c   :  { %v944_v44 = vadd.f32 %v943_v31, %v942_v5  ;;  %v1063_v20 = vrot.slane %v1062_v60, 2  ;;  %v929_v31 = vadd.f32 %v928_v17, %v927_v21  ;;  %v580_v17 = vadd.f32 %v579_v59, %v3741_v0 }
 0x48d   :  { %4567 = vst [vmem:[#allocation55_spill] sm:$0xff] %v3834_v7  ;;  %v615_v21 = vrot.slane %v3754_v40, 4  ;;  %v1108_v49 = vrot.slane %v1107_v32, 2  ;;  %v651_v25 = vrot.slane %v3779_v10, 4  ;;  %v3846_v34 = vadd.f32 %v900_v62, %v899_v19 }
 0x48e   :  { %v3786_v14 = vpop.xlane.xlu2 %703  ;;  %v1064_v11 = vadd.f32 %v1063_v20, %v1062_v60  ;;  %4568 = vst [vmem:[#allocation56_spill] sm:$0xff] %v3842_v30  ;;  %v959_v7 = vadd.f32 %v958_v35, %v957_v33  ;;  %v1016_v0 = vrot.slane %v3678_v37, 4  ;;  %v598_v41 = vadd.f32 %v597_v8, %v3771_v23 }
 0x48f   :  { %v3788_v28 = vpop.xlane.xlu0 %1300  ;;  %v581_v59 = vrot.slane %v580_v17, 2  ;;  %v616_v46 = vadd.f32 %v615_v21, %v3754_v40  ;;  %v687_v33 = vrot.slane %v3768_v54, 4 }
 0x490   :  { %v1065_v30 = vrot.slane %v1064_v11, 1  ;;  %v960_v40 = vrot.slane %v959_v7, 1 }
 0x491   :  { %v3818_v47 = vpop.xlane.xlu1 %829  ;;  %v617_v51 = vrot.slane %v616_v46, 2 }
 0x496   :  { %v3794_v57 = vpop.xlane.xlu2 %739 }
 0x497   :  { %v3799_v3 = vpop.xlane.xlu0 %1357 }
 0x498   :  { %4563 = vst [vmem:[#allocation51_spill] sm:$0xff] %v3799_v3  ;;  %v945_v3 = vrot.slane %v944_v44, 1 }
 0x499   :  { %v3851_v60 = vpop.xlane.xlu1 %1566 }
 0x49a   :  { %v3830_v22 = vadd.f32 %v945_v3, %v944_v44  ;;  %v633_v44 = vrot.slane %v3763_v36, 4  ;;  %v930_v3 = vrot.slane %v929_v31, 1  ;;  %4569 = vst [vmem:[#allocation57_spill] sm:$0xff] %v3851_v60  ;;  %v582_v60 = vadd.f32 %v581_v59, %v580_v17 }
 0x49c   :  { %4566 = vst [vmem:[#allocation54_spill] sm:$0xff] %v3830_v22  ;;  %v634_v19 = vadd.f32 %v633_v44, %v3763_v36  ;;  %v3862_v35 = vadd.f32 %v930_v3, %v929_v31  ;;  %v599_v36 = vrot.slane %v598_v41, 2  ;;  %v3872_v44 = vadd.f32 %v1108_v49, %v1107_v32 }
 0x49d   :  { %v3874_v3 = vadd.f32 %v1065_v30, %v1064_v11  ;;  %v583_v59 = vrot.slane %v582_v60, 1 }
 0x49e   :  { %v3811_v24 = vpop.xlane.xlu2 %775  ;;  %v600_v11 = vadd.f32 %v599_v36, %v598_v41  ;;  %v1110_v30 = vrot.slane %v3872_v44, 1 }
 0x49f   :  { %v3814_v39 = vpop.xlane.xlu0 %1414  ;;  %4572 = vst [vmem:[#allocation60_spill] sm:$0xff] %v3874_v3 }
 0x4a0   :  { %4564 = vst [vmem:[#allocation52_spill] sm:$0xff] %v3814_v39  ;;  %v1049_v39 = vadd.f32 %v1048_v38, %v1047_v56  ;;  %v986_v56 = vrot.slane %v3664_v4, 4  ;;  %v601_v22 = vrot.slane %v600_v11, 1 }
 0x4a2   :  { %v1050_v38 = vrot.slane %v1049_v39, 1  ;;  %v987_v18 = vadd.f32 %v986_v56, %v3664_v4  ;;  %v705_v4 = vrot.slane %v3786_v14, 4  ;;  %v652_v56 = vadd.f32 %v651_v25, %v3779_v10 }
 0x4a4   :  { %v3853_v20 = vadd.f32 %v1050_v38, %v1049_v39  ;;  %v1076_v39 = vrot.slane %v3687_v27, 4  ;;  %v3870_v38 = vadd.f32 %v1016_v0, %v3678_v37  ;;  %v988_v31 = vrot.slane %v987_v18, 2 }
 0x4a5   :  { %v653_v0 = vrot.slane %v652_v56, 2 }
 0x4a6   :  { %v3824_v5 = vpop.xlane.xlu2 %847  ;;  %4570 = vst [vmem:[#allocation58_spill] sm:$0xff] %v3853_v20  ;;  %v3880_v37 = vadd.f32 %v1076_v39, %v3687_v27  ;;  %v3882_v20 = vadd.f32 %v960_v40, %v959_v7  ;;  %v741_v7 = vrot.slane %v3794_v57, 4 }
 0x4a7   :  { %v3826_v48 = vpop.xlane.xlu0 %1471  ;;  %v654_v36 = vadd.f32 %v653_v0, %v652_v56 }
 0x4a8   :  { %4565 = vst [vmem:[#allocation53_spill] sm:$0xff] %v3826_v48  ;;  %v1397_v48 = vrot.slane %v3693_v15, 4  ;;  %v742_v56 = vadd.f32 %v741_v7, %v3794_v57 }
 0x4a9   :  { %4573 = vst [vmem:[#allocation61_spill] sm:$0xff] %v3882_v20 }
 0x4aa   :  { %v3865_v23 = vadd.f32 %v1397_v48, %v3693_v15  ;;  %v635_v15 = vrot.slane %v634_v19, 2  ;;  %v688_v48 = vadd.f32 %v687_v33, %v3768_v54  ;;  %v759_v54 = vrot.slane %v3777_v2, 4 }
 0x4ab   :  { %v3887_v33 = vadd.f32 %v988_v31, %v987_v18  ;;  %v743_v7 = vrot.slane %v742_v56, 2 }
 0x4ac   :  { %v760_v18 = vadd.f32 %v759_v54, %v3777_v2  ;;  %v602_v2 = vadd.f32 %v601_v22, %v600_v11  ;;  %s4059_s14 = spop %2573 }
 0x4ae   :  { %v3860_v62 = vpop.xlane.xlu2 %1547 }
 0x4af   :  { %4571 = vst [vmem:[#allocation59_spill] sm:$0xff] %v3860_v62  ;;  %v560_v8 = vpop.xlane.xlu0 %559  ;;  %v706_v62 = vadd.f32 %v705_v4, %v3786_v14  ;;  %v618_v14 = vadd.f32 %v617_v51, %v616_v46  ;;  %v689_v4 = vrot.slane %v688_v48, 2  ;;  %v777_v51 = vrot.slane %v3811_v24, 4 }
 0x4b0   :  { %v561_v21 = vrot.slane %v560_v8, 4  ;;  %v584_v46 = vadd.f32 %v583_v59, %v582_v60  ;;  %v866_v60 = vrot.slane %v3717_v61, 4 }
 0x4b1   :  { %v1607_v17 = vpop.permute.xlu1 %1606  ;;  %v619_v31 = vrot.slane %v618_v14, 1  ;;  %v690_v0 = vadd.f32 %v689_v4, %v688_v48  ;;  %v778_v59 = vadd.f32 %v777_v51, %v3811_v24 }
 0x4b2   :  { %v562_v10 = vadd.f32 %v561_v21, %v560_v8  ;;  %v707_v8 = vrot.slane %v706_v62, 2  ;;  %v636_v21 = vadd.f32 %v635_v15, %v634_v19  ;;  %v1611_v40 = vsel %vm1240_vm12, %v1607_v17, 0.0 }
 0x4b3   :  { %v795_v19 = vrot.slane %v3784_v42, 4  ;;  %v691_v11 = vrot.slane %v690_v0, 1 }
 0x4b4   :  { %v563_v49 = vrot.slane %v562_v10, 2  ;;  %v637_v17 = vrot.slane %v636_v21, 1  ;;  %v708_v54 = vadd.f32 %v707_v8, %v706_v62  ;;  %s4064_s15 = spop %2575 }
 0x4b5   :  { %s550_s17 = sadd.f32 %s4064_s15, %s4059_s14 }
 0x4b6   :  { %v1605_v27 = vpop.permute.xlu2 %1604  ;;  %v564_v39 = vadd.f32 %v563_v49, %v562_v10  ;;  %v813_v49 = vrot.slane %v3803_v52, 4  ;;  %v638_v57 = vadd.f32 %v637_v17, %v636_v21  ;;  %v709_v51 = vrot.slane %v708_v54, 1 }
 0x4b7   :  { %v1610_v25 = vsel %vm1238_vm11, %v1605_v27, 0.0  ;;  %v668_v41 = vpop.xlane.xlu0 %667  ;;  %v831_v27 = vrot.slane %v3818_v47, 4  ;;  %v3907_v21 = vadd.f32 %v1110_v30, %v3872_v44  ;;  %v692_v17 = vadd.f32 %v691_v11, %v690_v0 }
 0x4b8   :  { %v1612_v32 = vadd.f32 %v1611_v40, %v1610_v25  ;;  %v669_v3 = vrot.slane %v668_v41, 4  ;;  %v565_v20 = vrot.slane %v564_v39, 1  ;;  %v655_v25 = vrot.slane %v654_v36, 1 }
 0x4b9   :  { %v814_v4 = vadd.f32 %v813_v49, %v3803_v52  ;;  %v832_v8 = vadd.f32 %v831_v27, %v3818_v47  ;;  %v867_v52 = vadd.f32 %v866_v60, %v3717_v61  ;;  %v4574_v47 = vrot.slane %v3706_v43, 4 }
 0x4ba   :  { %v670_v15 = vadd.f32 %v669_v3, %v668_v41  ;;  %1613 = vadd.xlane.f32.xlu0 %v1612_v32  ;;  %v566_v10 = vadd.f32 %v565_v20, %v564_v39  ;;  %v849_v3 = vrot.slane %v3824_v5, 4  ;;  %v620_v20 = vadd.f32 %v619_v31, %v618_v14 }
 0x4bb   :  { %v761_v32 = vrot.slane %v760_v18, 2  ;;  %v796_v39 = vadd.f32 %v795_v19, %v3784_v42  ;;  %v656_v22 = vadd.f32 %v655_v25, %v654_v36  ;;  %v911_v14 = vrot.slane %v3734_v53, 4 }
 0x4bc   :  { %v671_v40 = vrot.slane %v670_v15, 2  ;;  %2577 = vpush %v566_v10  ;;  %v850_v42 = vadd.f32 %v849_v3, %v3824_v5  ;;  %v815_v10 = vrot.slane %v814_v4, 2  ;;  %v744_v49 = vadd.f32 %v743_v7, %v742_v56 }
 0x4bd   :  { %2579 = vpush %v584_v46  ;;  %v779_v46 = vrot.slane %v778_v59, 2  ;;  %v797_v36 = vrot.slane %v796_v39, 2  ;;  %v833_v25 = vrot.slane %v832_v8, 2  ;;  %v710_v5 = vadd.f32 %v709_v51, %v708_v54 }
 0x4be   :  { %2581 = vpush %v602_v2  ;;  %v672_v48 = vadd.f32 %v671_v40, %v670_v15  ;;  %v3913_v15 = vadd.f32 %v4574_v47, %v3706_v43  ;;  %v762_v40 = vadd.f32 %v761_v32, %v760_v18  ;;  %v912_v44 = vadd.f32 %v911_v14, %v3734_v53 }
 0x4bf   :  { %2583 = vpush %v620_v20  ;;  %v722_v62 = vpop.xlane.xlu0 %721  ;;  %v971_v61 = vrot.slane %v3745_v29, 4  ;;  %v851_v30 = vrot.slane %v850_v42, 2  ;;  %v780_v2 = vadd.f32 %v779_v46, %v778_v59  ;;  %v798_v3 = vadd.f32 %v797_v36, %v796_v39 }
 0x4c0   :  { %2585 = vpush %v638_v57  ;;  %v723_v24 = vrot.slane %v722_v62, 4  ;;  %v673_v41 = vrot.slane %v672_v48, 1  ;;  %v868_v43 = vrot.slane %v867_v52, 2  ;;  %v990_v20 = vrot.slane %v3887_v33, 1 }
 0x4c1   :  { %2587 = vpush %v656_v22  ;;  %v1456_v56 = vrot.slane %v3913_v15, 2  ;;  %v1121_v0 = vrot.slane %v3700_v12, 4  ;;  %v745_v57 = vrot.slane %v744_v49, 1  ;;  %v816_v54 = vadd.f32 %v815_v10, %v814_v4 }
 0x4c2   :  { %v724_v31 = vadd.f32 %v723_v24, %v722_v62  ;;  %v674_v19 = vadd.f32 %v673_v41, %v672_v48  ;;  %v763_v32 = vrot.slane %v762_v40, 1  ;;  %v834_v53 = vadd.f32 %v833_v25, %v832_v8 }
 0x4c3   :  { %v4575_v48 = vrot.slane %v3837_v9, 2  ;;  %v972_v59 = vadd.f32 %v971_v61, %v3745_v29  ;;  %v781_v39 = vrot.slane %v780_v2, 1  ;;  %v852_v22 = vadd.f32 %v851_v30, %v850_v42 }
 0x4c4   :  { %v725_v27 = vrot.slane %v724_v31, 2  ;;  %2589 = vpush %v674_v19  ;;  %v913_v62 = vrot.slane %v912_v44, 2  ;;  %v799_v24 = vrot.slane %v798_v3, 1  ;;  %v869_v41 = vadd.f32 %v868_v43, %v867_v52 }
 0x4c5   :  { %2591 = vpush %v692_v17  ;;  %v1343_v7 = vadd.f32 %v4575_v48, %v3837_v9  ;;  %v1018_v4 = vrot.slane %v3870_v38, 2  ;;  %v1511_v8 = vrot.slane %v3730_v58, 4  ;;  %v746_v51 = vadd.f32 %v745_v57, %v744_v49 }
 0x4c6   :  { %2593 = vpush %v710_v5  ;;  %v726_v60 = vadd.f32 %v725_v27, %v724_v31  ;;  %v817_v14 = vrot.slane %v816_v54, 1  ;;  %v3931_v9 = vadd.f32 %v990_v20, %v3887_v33  ;;  %v1122_v29 = vadd.f32 %v1121_v0, %v3700_v12  ;;  %v3955_v20 = vpop.permute.xlu2 %1633 }
 0x4c7   :  { %v1091_v46 = vrot.slane %v3752_v45, 4  ;;  %v764_v42 = vadd.f32 %v763_v32, %v762_v40  ;;  %v835_v36 = vrot.slane %v834_v53, 1  ;;  %v782_v52 = vadd.f32 %v781_v39, %v780_v2  ;;  %v3949_v61 = vpop.xlane.xlu0 %1528 }
 0x4c8   :  { %v727_v18 = vrot.slane %v726_v60, 1  ;;  %v853_v31 = vrot.slane %v852_v22, 1  ;;  %v914_v19 = vadd.f32 %v913_v62, %v912_v44  ;;  %v973_v47 = vrot.slane %v972_v59, 2 }
 0x4c9   :  { %v800_v10 = vadd.f32 %v799_v24, %v798_v3  ;;  %v870_v33 = vrot.slane %v869_v41, 1  ;;  %v1019_v17 = vadd.f32 %v1018_v4, %v3870_v38  ;;  %v1344_v49 = vrot.slane %v1343_v7, 1 }
 0x4ca   :  { %v728_v11 = vadd.f32 %v727_v18, %v726_v60  ;;  %v3943_v12 = vadd.f32 %v1511_v8, %v3730_v58  ;;  %v1321_v25 = vrot.slane %v3715_v26, 4  ;;  %v818_v27 = vadd.f32 %v817_v14, %v816_v54  ;;  %v4577_v8 = vld [vmem:[#allocation50_spill] sm:$0xff]  ;;  %v4578_v14 = vld [vmem:[#allocation51_spill] sm:$0xff] }
 0x4cb   :  { %v1078_v5 = vrot.slane %v3880_v37, 2  ;;  %v1092_v40 = vadd.f32 %v1091_v46, %v3752_v45  ;;  %v1136_v44 = vrot.slane %v3759_v50, 4  ;;  %v836_v38 = vadd.f32 %v835_v36, %v834_v53 }
 0x4cc   :  { %2595 = vpush %v728_v11  ;;  %v1123_v30 = vrot.slane %v1122_v29, 2  ;;  %v1245_v58 = vrot.slane %v3765_v16, 4  ;;  %v854_v2 = vadd.f32 %v853_v31, %v852_v22  ;;  %v915_v60 = vrot.slane %v914_v19, 1 }
 0x4cd   :  { %2597 = vpush %v746_v51  ;;  %v974_v3 = vadd.f32 %v973_v47, %v972_v59  ;;  %v1264_v43 = vrot.slane %v3773_v6, 4  ;;  %v871_v45 = vadd.f32 %v870_v33, %v869_v41  ;;  %v1020_v0 = vrot.slane %v1019_v17, 1  ;;  %v4580_v47 = vld [vmem:[#allocation52_spill] sm:$0xff]  ;;  %v4581_v33 = vld [vmem:[#allocation61_spill] sm:$0xff] }
 0x4ce   :  { %2599 = vpush %v764_v42  ;;  %v3957_v57 = vadd.f32 %v1344_v49, %v1343_v7  ;;  %v1513_v54 = vrot.slane %v3943_v12, 2  ;;  %v1322_v18 = vadd.f32 %v1321_v25, %v3715_v26  ;;  %v1283_v32 = vrot.slane %v3781_v63, 4 }
 0x4cf   :  { %2601 = vpush %v782_v52  ;;  %v1079_v53 = vadd.f32 %v1078_v5, %v3880_v37  ;;  %v1378_v48 = vrot.slane %v3732_v13, 4  ;;  %v1137_v59 = vadd.f32 %v1136_v44, %v3759_v50  ;;  %v1302_v7 = vrot.slane %v3788_v28, 4  ;;  %v4007_v5 = vpop.permute.xlu2 %1658 }
 0x4d0   :  { %2603 = vpush %v800_v10  ;;  %v1093_v39 = vrot.slane %v1092_v40, 2  ;;  %v1246_v22 = vadd.f32 %v1245_v58, %v3765_v16  ;;  %v916_v26 = vadd.f32 %v915_v60, %v914_v19  ;;  %v975_v62 = vrot.slane %v974_v3, 1 }
 0x4d1   :  { %2605 = vpush %v818_v27  ;;  %v1124_v11 = vadd.f32 %v1123_v30, %v1122_v29  ;;  %v1435_v37 = vrot.slane %v3743_v1, 4  ;;  %v1265_v24 = vadd.f32 %v1264_v43, %v3773_v6  ;;  %v1021_v50 = vadd.f32 %v1020_v0, %v1019_v17  ;;  %v4582_v30 = vld [vmem:[#allocation53_spill] sm:$0xff] }
 0x4d2   :  { %2607 = vpush %v836_v38  ;;  %v4576_v41 = vrot.slane %v3865_v23, 2  ;;  %v1323_v16 = vrot.slane %v1322_v18, 2  ;;  %v1284_v51 = vadd.f32 %v1283_v32, %v3781_v63  ;;  %v1359_v29 = vrot.slane %v4578_v14, 4 }
 0x4d3   :  { %2609 = vpush %v854_v2  ;;  %v1379_v6 = vadd.f32 %v1378_v48, %v3732_v13  ;;  %v1094_v46 = vadd.f32 %v1093_v39, %v1092_v40  ;;  %v1138_v42 = vrot.slane %v1137_v59, 2  ;;  %v976_v36 = vadd.f32 %v975_v62, %v974_v3  ;;  %v4583_v2 = vld [vmem:[#allocation55_spill] sm:$0xff]  ;;  %v4584_v48 = vld [vmem:[#allocation56_spill] sm:$0xff] }
 0x4d4   :  { %2611 = vpush %v871_v45  ;;  %v3980_v4 = vadd.f32 %v4576_v41, %v3865_v23  ;;  %v4579_v23 = vld [vmem:[#allocation54_spill] sm:$0xff]  ;;  %v1080_v52 = vrot.slane %v1079_v53, 1  ;;  %v1125_v63 = vrot.slane %v1124_v11, 1  ;;  %v1247_v31 = vrot.slane %v1246_v22, 2  ;;  %v4587_v41 = vld [vmem:[#allocation60_spill] sm:$0xff] }
 0x4d5   :  { %2613 = vpush %v3828_v55  ;;  %v1492_v55 = vrot.slane %v4577_v8, 4  ;;  %v1436_v19 = vadd.f32 %v1435_v37, %v3743_v1  ;;  %v1416_v10 = vrot.slane %v4580_v47, 4  ;;  %v1266_v13 = vrot.slane %v1265_v24, 2 }
 0x4d6   :  { %2615 = vpush %v3846_v34  ;;  %v1303_v34 = vadd.f32 %v1302_v7, %v3788_v28  ;;  %v1401_v28 = vrot.slane %v3980_v4, 1  ;;  %v1360_v49 = vadd.f32 %v1359_v29, %v4578_v14  ;;  %v1285_v25 = vrot.slane %v1284_v51, 2 }
 0x4d7   :  { %2617 = vpush %v916_v26  ;;  %v4002_v17 = vadd.f32 %v1492_v55, %v4577_v8  ;;  %v4005_v27 = vadd.f32 %v1323_v16, %v1322_v18  ;;  %v1380_v1 = vrot.slane %v1379_v6, 2  ;;  %v1095_v40 = vrot.slane %v1094_v46, 1  ;;  %v4588_v55 = vld [vmem:[#allocation57_spill] sm:$0xff] }
 0x4d8   :  { %2619 = vpush %v3862_v35  ;;  %v3997_v35 = vpop.xlane.xlu0 %1585  ;;  %v1139_v44 = vadd.f32 %v1138_v42, %v1137_v59  ;;  %v1304_v38 = vrot.slane %v1303_v34, 2  ;;  %v1473_v58 = vrot.slane %v4582_v30, 4  ;;  %v1081_v60 = vadd.f32 %v1080_v52, %v1079_v53  ;;  %v4585_v53 = vld [vmem:[#allocation58_spill] sm:$0xff] }
 0x4d9   :  { %2621 = vpush %v4579_v23  ;;  %v1126_v3 = vadd.f32 %v1125_v63, %v1124_v11  ;;  %v1248_v43 = vadd.f32 %v1247_v31, %v1246_v22  ;;  %v1437_v45 = vrot.slane %v1436_v19, 2  ;;  %v1417_v0 = vadd.f32 %v1416_v10, %v4580_v47 }
 0x4da   :  { %2623 = vpush %v4581_v33  ;;  %v1530_v18 = vrot.slane %v3949_v61, 4  ;;  %v1494_v32 = vrot.slane %v4002_v17, 2  ;;  %v1286_v59 = vadd.f32 %v1285_v25, %v1284_v51  ;;  %v1325_v7 = vrot.slane %v4005_v27, 1 }
 0x4db   :  { %2625 = vpush %v976_v36  ;;  %v1361_v39 = vrot.slane %v1360_v49, 2  ;;  %v1096_v22 = vadd.f32 %v1095_v40, %v1094_v46  ;;  %v1140_v26 = vrot.slane %v1139_v44, 1  ;;  %v1305_v62 = vadd.f32 %v1304_v38, %v1303_v34  ;;  %v1713_v38 = vpop.permute.xlu1 %1712 }
 0x4dc   :  { %2627 = vpush %v3931_v9  ;;  %v1267_v9 = vadd.f32 %v1266_v13, %v1265_v24  ;;  %v4024_v11 = vadd.f32 %v1380_v1, %v1379_v6  ;;  %v1474_v37 = vadd.f32 %v1473_v58, %v4582_v30  ;;  %v4586_v24 = vld [vmem:[#allocation59_spill] sm:$0xff]  ;;  %v1249_v16 = vrot.slane %v1248_v43, 1  ;;  %v1715_v1 = vpop.permute.xlu2 %1714 }
 0x4dd   :  { %2629 = vpush %v4583_v2  ;;  %v1587_v8 = vrot.slane %v3997_v35, 4  ;;  %v1568_v51 = vrot.slane %v4588_v55, 4  ;;  %v1531_v14 = vadd.f32 %v1530_v18, %v3949_v61  ;;  %v1418_v34 = vrot.slane %v1417_v0, 2 }
 0x4de   :  { %2631 = vpush %v1021_v50  ;;  %v1549_v50 = vrot.slane %v4586_v24, 4  ;;  %v1268_v29 = vrot.slane %v1267_v9, 1  ;;  %v1638_v46 = vsel %vm1240_vm12, %v3955_v20, 0.0  ;;  %v1287_v42 = vrot.slane %v1286_v59, 1 }
 0x4df   :  { %2633 = vpush %v4584_v48  ;;  %v1362_v23 = vadd.f32 %v1361_v39, %v1360_v49  ;;  %v1141_v52 = vadd.f32 %v1140_v26, %v1139_v44  ;;  %v1306_v63 = vrot.slane %v1305_v62, 1  ;;  %v4040_v61 = vadd.f32 %v1437_v45, %v1436_v19 }
 0x4e0   :  { %2635 = vpush %v4585_v53  ;;  %v1550_v47 = vadd.f32 %v1549_v50, %v4586_v24  ;;  %v1250_v20 = vadd.f32 %v1249_v16, %v1248_v43  ;;  %v1475_v10 = vrot.slane %v1474_v37, 2  ;;  %v1588_v33 = vadd.f32 %v1587_v8, %v3997_v35  ;;  %v4590_v8 = vld [vmem:[#allocation41_spill] sm:$0xff] }
 0x4e1   :  { %2637 = vpush %v4587_v41  ;;  %v1569_v13 = vadd.f32 %v1568_v51, %v4588_v55  ;;  %v1532_v49 = vrot.slane %v1531_v14, 2  ;;  %v1419_v25 = vadd.f32 %v1418_v34, %v1417_v0  ;;  %v1288_v19 = vadd.f32 %v1287_v42, %v1286_v59 }
 0x4e2   :  { %2639 = vpush %v1081_v60  ;;  %v1632_v6 = vpop.permute.xlu0 %1631  ;;  %v1363_v40 = vrot.slane %v1362_v23, 1  ;;  %v1457_v44 = vadd.f32 %v1456_v56, %v3913_v15  ;;  %v4057_v35 = vadd.f32 %v1513_v54, %v3943_v12  ;;  %v1307_v30 = vadd.f32 %v1306_v63, %v1305_v62 }
 0x4e3   :  { %2641 = vpush %v1096_v22  ;;  %v1637_v36 = vsel %vm1238_vm11, %v1632_v6, 0.0  ;;  %v1326_v58 = vadd.f32 %v1325_v7, %v4005_v27  ;;  %v1382_v2 = vrot.slane %v4024_v11, 1  ;;  %v1439_v60 = vrot.slane %v4040_v61, 1 }
 0x4e4   :  { %2643 = vpush %v3907_v21  ;;  %v1639_v31 = vadd.f32 %v1638_v46, %v1637_v36  ;;  %v1269_v21 = vadd.f32 %v1268_v29, %v1267_v9  ;;  %v1476_v15 = vadd.f32 %v1475_v10, %v1474_v37  ;;  %v1719_v56 = vsel %vm1240_vm12, %v1715_v1, 0.0 }
 0x4e5   :  { %2645 = vpush %v1126_v3  ;;  %v1551_v3 = vrot.slane %v1550_v47, 2  ;;  %v1589_v12 = vrot.slane %v1588_v33, 2  ;;  %v1570_v54 = vrot.slane %v1569_v13, 2  ;;  %v1420_v43 = vrot.slane %v1419_v25, 1 }
 0x4e6   :  { %2647 = vpush %v1141_v52  ;;  %1640 = vadd.xlane.f32.xlu1 %v1639_v31  ;;  %v1495_v27 = vadd.f32 %v1494_v32, %v4002_v17  ;;  %v1533_v45 = vadd.f32 %v1532_v49, %v1531_v14  ;;  %v1718_v18 = vsel %vm1238_vm11, %v1713_v38, 0.0  ;;  %v1664_v9 = vsel %vm1238_vm11, %v4007_v5, 0.0 }
 0x4e7   :  { %2649 = vpush %v1250_v20  ;;  %v1364_v48 = vadd.f32 %v1363_v40, %v1362_v23  ;;  %v1383_v7 = vadd.f32 %v1382_v2, %v4024_v11  ;;  %v1458_v39 = vrot.slane %v1457_v44, 1  ;;  %v1720_v32 = vadd.f32 %v1719_v56, %v1718_v18  ;;  %v4594_v2 = vld [vmem:[#allocation36_spill] sm:$0xff] }
 0x4e8   :  { %2651 = vpush %v1269_v21  ;;  %v1402_v53 = vadd.f32 %v1401_v28, %v3980_v4  ;;  %v1477_v5 = vrot.slane %v1476_v15, 1  ;;  %v1552_v22 = vadd.f32 %v1551_v3, %v1550_v47  ;;  %v1590_v26 = vadd.f32 %v1589_v12, %v1588_v33  ;;  %v4592_v21 = vld [vmem:[#allocation22_spill] sm:$0xff] }
 0x4e9   :  { %2653 = vpush %v1288_v19  ;;  %v1421_v62 = vadd.f32 %v1420_v43, %v1419_v25  ;;  %v1534_v37 = vrot.slane %v1533_v45, 1  ;;  %v1571_v11 = vadd.f32 %v1570_v54, %v1569_v13  ;;  %v1440_v24 = vadd.f32 %v1439_v60, %v4040_v61 }
 0x4ea   :  { %2655 = vpush %v1307_v30  ;;  %v1661_v0 = vpop.permute.xlu0 %1660  ;;  %v1515_v50 = vrot.slane %v4057_v35, 1  ;;  %v1459_v4 = vadd.f32 %v1458_v39, %v1457_v44  ;;  %v1478_v28 = vadd.f32 %v1477_v5, %v1476_v15  ;;  %v1553_v41 = vrot.slane %v1552_v22, 1  ;;  %v4593_v44 = vld [vmem:[#allocation12_spill] sm:$0xff] }
 0x4eb   :  { %2657 = vpush %v1326_v58  ;;  %v1665_v59 = vsel %vm1240_vm12, %v1661_v0, 0.0  ;;  %v1591_v16 = vrot.slane %v1590_v26, 1  ;;  %v1785_v55 = vmul.f32 -0.1, %v4590_v8  ;;  %v1535_v14 = vadd.f32 %v1534_v37, %v1533_v45 }
 0x4ec   :  { %2659 = vpush %v3957_v57  ;;  %v1666_v17 = vadd.f32 %v1665_v59, %v1664_v9  ;;  %v1496_v57 = vrot.slane %v1495_v27, 1  ;;  %v1572_v29 = vrot.slane %v1571_v11, 1  ;;  %v1516_v6 = vadd.f32 %v1515_v50, %v4057_v35 }
 0x4ed   :  { %2661 = vpush %v1364_v48  ;;  %s2578_s18 = spop %2577  ;;  %v1731_v46 = vmul.f32 -5.0, %v4590_v8  ;;  %v1554_v42 = vadd.f32 %v1553_v41, %v1552_v22  ;;  %v1592_v23 = vadd.f32 %v1591_v16, %v1590_v26  ;;  %v1786_v36 = vmul.f32 1.442695, %v1785_v55 }
 0x4ee   :  { %2663 = vpush %v1383_v7  ;;  %s568_s0 = sadd.f32 %s2578_s18, %s550_s17  ;;  %1721 = vadd.xlane.f32.xlu1 %v1720_v32  ;;  %1667 = vadd.xlane.f32.xlu2 %v1666_v17  ;;  %s2580_s19 = spop %2579  ;;  %v1497_v51 = vadd.f32 %v1496_v57, %v1495_v27  ;;  %v1573_v52 = vadd.f32 %v1572_v29, %v1571_v11  ;;  %v1790_v25 = vrot.slane %v4592_v21, 4  ;;  %v1758_v1 = vmul.f32 -0.5, %v4590_v8 }
 0x4ef   :  { %2665 = vpush %v1402_v53  ;;  %s2582_s23 = spop %2581  ;;  %v1732_v63 = vmul.f32 1.442695, %v1731_v46  ;;  %2933 = vpow2.f32 %v1786_v36  ;;  %v1736_v35 = vrot.slane %v4593_v44, 4  ;;  %v1763_v60 = vrot.slane %v4594_v2, 4 }
 0x4f0   :  { %2667 = vpush %v1421_v62  ;;  %s586_s20 = sadd.f32 %s2580_s19, %s568_s0  ;;  %s2584_s25 = spop %2583  ;;  %v1759_v40 = vmul.f32 1.442695, %v1758_v1 }
 0x4f1   :  { %2669 = vpush %v1440_v24  ;;  %s2586_s14 = spop %2585  ;;  %s345_s0 = sadd.f32 %s3959_s28, %s331_s12  ;;  %2935 = vpow2.f32 %v1732_v63 }
 0x4f2   :  { %2671 = vpush %v1459_v4  ;;  %s604_s24 = sadd.f32 %s2582_s23, %s586_s20  ;;  %v1686_v34 = vpop.permute.xlu0 %1685  ;;  %s2588_s16 = spop %2587  ;;  %2937 = vpow2.f32 %v1759_v40  ;;  %v4597_v40 = vld [vmem:[#allocation14_spill] sm:$0xff] }
 0x4f3   :  { %2673 = vpush %v1478_v28  ;;  %s359_s1 = sadd.f32 %s3965_s29, %s345_s0  ;;  %v1691_v31 = vsel %vm1238_vm11, %v1686_v34, 0.0 }
 0x4f4   :  { %2675 = vpush %v1497_v51  ;;  %s622_s26 = sadd.f32 %s2584_s25, %s604_s24 }
 0x4f5   :  { %2677 = vpush %v1516_v6  ;;  %s2590_s18 = spop %2589  ;;  %v4104_v10 = vpop.eup %2933  ;;  %s373_s28 = sadd.f32 %s3972_s30, %s359_s1 }
 0x4f6   :  { %2679 = vpush %v1535_v14  ;;  %s640_s15 = sadd.f32 %s2586_s14, %s622_s26  ;;  %s2592_s27 = spop %2591  ;;  %v1791_v13 = vrot.slane %v4104_v10, 4 }
 0x4f7   :  { %2681 = vpush %v1554_v42  ;;  %s2594_s20 = spop %2593  ;;  %v2936_v33 = vpop.eup %2935  ;;  %s387_s14 = sadd.f32 %s3985_s3, %s373_s28 }
 0x4f8   :  { %2683 = vpush %v1573_v52  ;;  %s658_s17 = sadd.f32 %s2588_s16, %s640_s15  ;;  %v1737_v49 = vrot.slane %v2936_v33, 4  ;;  %v1792_v19 = vsel %vm137_vm4, %v1790_v25, %v1791_v13  ;;  %v2938_v30 = vpop.eup %2937 }
 0x4f9   :  { %2685 = vpush %v1592_v23  ;;  %v1764_v58 = vrot.slane %v2938_v30, 4 }
 0x4fa   :  { %v1688_v61 = vpop.permute.xlu0 %1687  ;;  %s676_s19 = sadd.f32 %s2590_s18, %s658_s17  ;;  %v1738_v38 = vsel %vm137_vm4, %v1736_v35, %v1737_v49  ;;  %v1817_v35 = vrot.slane %v4597_v40, 4 }
 0x4fb   :  { %v1692_v47 = vsel %vm1240_vm12, %v1688_v61, 0.0  ;;  %s401_s18 = sadd.f32 %s3990_s4, %s387_s14  ;;  %v1765_v3 = vsel %vm137_vm4, %v1763_v60, %v1764_v58  ;;  %v4598_v60 = vld [vmem:[#allocation40_spill] sm:$0xff] }
 0x4fc   :  { %v1693_v20 = vadd.f32 %v1692_v47, %v1691_v31  ;;  %s694_s29 = sadd.f32 %s2592_s27, %s676_s19  ;;  %v1812_v47 = vmul.f32 -0.05, %v4590_v8 }
 0x4fd   :  { %s4100_s22 = spop %2595 }
 0x4fe   :  { %s4102_s23 = spop %2597  ;;  %1694 = vadd.xlane.f32.xlu0 %v1693_v20  ;;  %s712_s16 = sadd.f32 %s2594_s20, %s694_s29  ;;  %v1813_v33 = vmul.f32 1.442695, %v1812_v47 }
 0x4ff   :  { %s4107_s24 = spop %2599  ;;  %s415_s20 = sadd.f32 %s3999_s5, %s401_s18 }
 0x500   :  { %s4109_s25 = spop %2601  ;;  %s730_s27 = sadd.f32 %s4100_s22, %s712_s16  ;;  %2939 = vpow2.f32 %v1813_v33 }
 0x501   :  { %s4111_s26 = spop %2603  ;;  %s429_s13 = sadd.f32 %s4010_s6, %s415_s20 }
 0x502   :  { %s4113_s12 = spop %2605  ;;  %s748_s29 = sadd.f32 %s4102_s23, %s730_s27 }
 0x503   :  { %s4117_s15 = spop %2607  ;;  %s443_s5 = sadd.f32 %s4014_s7, %s429_s13 }
 0x504   :  { %s4119_s30 = spop %2609 }
 0x505   :  { %4591 = sst [smem:[#allocation63_spill]] %s4119_s30  ;;  %s2612_s17 = spop %2611 }
 0x506   :  { %s2614_s0 = spop %2613  ;;  %1741 = vrot.lane.b32.xlu2 %v1737_v49, %s3033_s21  ;;  %v1839_v49 = vmul.f32 -0.033333335, %v4590_v8  ;;  %v2940_v1 = vpop.eup %2939 }
 0x507   :  { %s888_s3 = sadd.f32 %s2614_s0, %s2612_s17  ;;  %1793 = vrot.lane.b32.xlu1 %v1792_v19, %s3033_s21  ;;  %s2616_s1 = spop %2615  ;;  %v1818_v19 = vrot.slane %v2940_v1, 4 }
 0x508   :  { %s2618_s28 = spop %2617  ;;  %s766_s0 = sadd.f32 %s4107_s24, %s748_s29  ;;  %v1840_v25 = vmul.f32 1.442695, %v1839_v49 }
 0x509   :  { %s903_s19 = sadd.f32 %s2616_s1, %s888_s3  ;;  %s2620_s14 = spop %2619 }
 0x50a   :  { %s2622_s30 = spop %2621  ;;  %s784_s3 = sadd.f32 %s4109_s25, %s766_s0  ;;  %2941 = vpow2.f32 %v1840_v25 }
 0x50b   :  { %s918_s4 = sadd.f32 %s2618_s28, %s903_s19  ;;  %s2624_s22 = spop %2623 }
 0x50c   :  { %s2626_s23 = spop %2625  ;;  %s802_s1 = sadd.f32 %s4111_s26, %s784_s3 }
 0x50d   :  { %s933_s2 = sadd.f32 %s2620_s14, %s918_s4  ;;  %s2628_s6 = spop %2627 }
 0x50e   :  { %s2630_s24 = spop %2629  ;;  %s4595_s25 = sld [smem:[#allocation63_spill]] }
 0x50f   :  { %s948_s17 = sadd.f32 %s2622_s30, %s933_s2  ;;  %s2632_s19 = spop %2631 }
 0x510   :  { %s457_s2 = sadd.f32 %s4021_s8, %s443_s5  ;;  %s2634_s20 = spop %2633  ;;  %v2942_v30 = vpop.eup %2941 }
 0x511   :  { %s963_s16 = sadd.f32 %s2624_s22, %s948_s17  ;;  %s2636_s8 = spop %2635 }
 0x512   :  { %1739 = vrot.lane.b32.xlu0 %v1738_v38, %s3033_s21  ;;  %s471_s13 = sadd.f32 %s4030_s9, %s457_s2  ;;  %s2638_s0 = spop %2637  ;;  %v1819_v38 = vsel %vm137_vm4, %v1817_v35, %v1818_v19 }
 0x513   :  { %s978_s18 = sadd.f32 %s2626_s23, %s963_s16  ;;  %s2640_s26 = spop %2639 }
 0x514   :  { %s820_s4 = sadd.f32 %s4113_s12, %s802_s1 }
 0x515   :  { %s993_s27 = sadd.f32 %s2628_s6, %s978_s18  ;;  %s2642_s18 = spop %2641 }
 0x516   :  { %s4596_s29 = sld [smem:[#allocation62_spill]]  ;;  %s2644_s6 = spop %2643 }
 0x517   :  { %s1008_s30 = sadd.f32 %s2630_s24, %s993_s27  ;;  %s2646_s24 = spop %2645 }
 0x518   :  { %s485_s17 = sadd.f32 %s4034_s10, %s471_s13 }
 0x519   :  { %s1023_s7 = sadd.f32 %s2632_s19, %s1008_s30  ;;  %s2648_s30 = spop %2647 }
 0x51a   :  { %1766 = vrot.lane.b32.xlu0 %v1765_v3, %s3033_s21  ;;  %s838_s16 = sadd.f32 %s4117_s15, %s820_s4  ;;  %v1844_v3 = vrot.slane %v4598_v60, 4 }
 0x51b   :  { %s1038_s28 = sadd.f32 %s2634_s20, %s1023_s7 }
 0x51c   :  { %s499_s23 = sadd.f32 %s4042_s11, %s485_s17 }
 0x51d   :  { %s1053_s14 = sadd.f32 %s2636_s8, %s1038_s28 }
 0x51e   :  { %s856_s3 = sadd.f32 %s4595_s25, %s838_s16 }
 0x51f   :  { %s1068_s22 = sadd.f32 %s2638_s0, %s1053_s14 }
 0x520   :  { %s513_s2 = sadd.f32 %s4596_s29, %s499_s23  ;;  %s857_s1 = smul.f32 0.015625, %s856_s3 }
 0x521   :  { %s1083_s5 = sadd.f32 %s2640_s26, %s1068_s22 }
 0x522   :  { %1768 = vrot.lane.b32.xlu0 %v1764_v58, %s3033_s21  ;;  %s514_s10 = smul.f32 0.015625, %s513_s2  ;;  %v1845_v58 = vrot.slane %v2942_v30, 4 }
 0x523   :  { %s1098_s9 = sadd.f32 %s2642_s18, %s1083_s5 }
 0x524   :  { %s858_s13 = sadd.f32 %s857_s1, %s514_s10 }
 0x525   :  { %s1113_s27 = sadd.f32 %s2644_s6, %s1098_s9 }
 0x527   :  { %s1128_s12 = sadd.f32 %s2646_s24, %s1113_s27 }
 0x529   :  { %s1143_s19 = sadd.f32 %s2648_s30, %s1128_s12 }
 0x52b   :  { %s1144_s7 = smul.f32 0.015625, %s1143_s19 }
 0x52d   :  { %s1145_s15 = smul.f32 2.0, %s1144_s7  ;;  %v1614_v15 = vpop.xlane.xlu0 %1613 }
 0x52e   :  { %v1615_v56 = vrot.slane %v1614_v15, 4 }
 0x52f   :  { %s1146_s11 = ssub.f32 %s858_s13, %s1145_s15 }
 0x530   :  { %v1616_v12 = vadd.f32 %v1615_v56, %v1614_v15  ;;  %v1846_v15 = vsel %vm137_vm4, %v1844_v3, %v1845_v58 }
 0x531   :  { %2495 = sst [smem:[#allocation7]] %s1146_s11 }
 0x532   :  { %v1617_v54 = vrot.slane %v1616_v12, 2 }
 0x534   :  { %v1618_v43 = vadd.f32 %v1617_v54, %v1616_v12 }
 0x536   :  { %v1619_v27 = vrot.slane %v1618_v43, 1 }
 0x538   :  { %v1620_v45 = vadd.f32 %v1619_v27, %v1618_v43 }
 0x53a   :  { %2687 = vpush %v1620_v45 }
 0x559   :  { %v1641_v0 = vpop.xlane.xlu1 %1640 }
 0x55a   :  { %v1642_v18 = vrot.slane %v1641_v0, 4 }
 0x55c   :  { %v1643_v9 = vadd.f32 %v1642_v18, %v1641_v0 }
 0x55e   :  { %v1644_v48 = vrot.slane %v1643_v9, 2 }
 0x560   :  { %v1645_v59 = vadd.f32 %v1644_v48, %v1643_v9 }
 0x561   :  { %v1668_v7 = vpop.xlane.xlu2 %1667  ;;  %v1722_v5 = vpop.xlane.xlu1 %1721 }
 0x562   :  { %v1669_v39 = vrot.slane %v1668_v7, 4  ;;  %v1646_v17 = vrot.slane %v1645_v59, 1  ;;  %v1723_v62 = vrot.slane %v1722_v5, 4 }
 0x564   :  { %v1670_v32 = vadd.f32 %v1669_v39, %v1668_v7  ;;  %v1647_v53 = vadd.f32 %v1646_v17, %v1645_v59  ;;  %v1724_v11 = vadd.f32 %v1723_v62, %v1722_v5 }
 0x566   :  { %v1671_v22 = vrot.slane %v1670_v32, 2  ;;  %2689 = vpush %v1647_v53  ;;  %v1725_v24 = vrot.slane %v1724_v11, 2  ;;  %v1866_v53 = vmul.f32 -0.025, %v4590_v8 }
 0x568   :  { %v1672_v26 = vadd.f32 %v1671_v22, %v1670_v32  ;;  %v1726_v41 = vadd.f32 %v1725_v24, %v1724_v11 }
 0x569   :  { %v1742_v6 = vpop.permute.xlu2 %1741 }
 0x56a   :  { %v1673_v57 = vrot.slane %v1672_v26, 1  ;;  %v1727_v51 = vrot.slane %v1726_v41, 1  ;;  %v1746_v42 = vsel %vm1240_vm12, %v1742_v6, 0.0 }
 0x56c   :  { %v1674_v37 = vadd.f32 %v1673_v57, %v1672_v26  ;;  %v1728_v34 = vadd.f32 %v1727_v51, %v1726_v41  ;;  %v1867_v26 = vmul.f32 1.442695, %v1866_v53 }
 0x56e   :  { %2691 = vpush %v1674_v37  ;;  %2943 = vpow2.f32 %v1867_v26 }
 0x571   :  { %v1695_v50 = vpop.xlane.xlu0 %1694 }
 0x572   :  { %v1696_v4 = vrot.slane %v1695_v50, 4 }
 0x574   :  { %v1697_v28 = vadd.f32 %v1696_v4, %v1695_v50  ;;  %v2944_v24 = vpop.eup %2943 }
 0x575   :  { %v1872_v4 = vrot.slane %v2944_v24, 4 }
 0x576   :  { %v1698_v16 = vrot.slane %v1697_v28, 2 }
 0x578   :  { %v1699_v55 = vadd.f32 %v1698_v16, %v1697_v28  ;;  %v4599_v28 = vld [vmem:[#allocation24_spill] sm:$0xff] }
 0x579   :  { %v1794_v54 = vpop.permute.xlu1 %1793  ;;  %v1871_v41 = vrot.slane %v4599_v28, 4 }
 0x57a   :  { %v1700_v14 = vrot.slane %v1699_v55, 1  ;;  %v1799_v45 = vsel %vm1238_vm11, %v1794_v54, 0.0 }
 0x57b   :  { %v1873_v16 = vsel %vm137_vm4, %v1871_v41, %v1872_v4 }
 0x57c   :  { %v1701_v29 = vadd.f32 %v1700_v14, %v1699_v55  ;;  %v1893_v55 = vmul.f32 -0.02, %v4590_v8 }
 0x57e   :  { %2693 = vpush %v1701_v29  ;;  %v1894_v51 = vmul.f32 1.442695, %v1893_v55 }
 0x57f   :  { %2695 = vpush %v1728_v34 }
 0x580   :  { %2945 = vpow2.f32 %v1894_v51 }
 0x584   :  { %v1740_v46 = vpop.permute.xlu0 %1739 }
 0x585   :  { %v1745_v23 = vsel %vm1238_vm11, %v1740_v46, 0.0 }
 0x586   :  { %v1747_v36 = vadd.f32 %v1746_v42, %v1745_v23  ;;  %v2946_v14 = vpop.eup %2945 }
 0x587   :  { %v1899_v29 = vrot.slane %v2946_v14, 4 }
 0x588   :  { %1748 = vadd.xlane.f32.xlu2 %v1747_v36 }
 0x58c   :  { %v1767_v52 = vpop.permute.xlu0 %1766 }
 0x58d   :  { %v1772_v61 = vsel %vm1238_vm11, %v1767_v52, 0.0 }
 0x594   :  { %v1769_v63 = vpop.permute.xlu0 %1768 }
 0x595   :  { %v1773_v31 = vsel %vm1240_vm12, %v1769_v63, 0.0 }
 0x596   :  { %v1774_v20 = vadd.f32 %v1773_v31, %v1772_v61 }
 0x598   :  { %1775 = vadd.xlane.f32.xlu0 %v1774_v20 }
 0x5a0   :  { %1795 = vrot.lane.b32.xlu2 %v1791_v13, %s3033_s21 }
 0x5a8   :  { %1822 = vrot.lane.b32.xlu2 %v1818_v19, %s3033_s21 }
 0x5ac   :  { %1820 = vrot.lane.b32.xlu0 %v1819_v38, %s3033_s21  ;;  %v1920_v38 = vmul.f32 -0.016666668, %v4590_v8 }
 0x5b4   :  { %1847 = vrot.lane.b32.xlu0 %v1846_v15, %s3033_s21 }
 0x5fb   :  { %v1749_v10 = vpop.xlane.xlu2 %1748 }
 0x5fc   :  { %v1750_v13 = vrot.slane %v1749_v10, 4 }
 0x5fe   :  { %v1751_v56 = vadd.f32 %v1750_v13, %v1749_v10 }
 0x600   :  { %v1752_v12 = vrot.slane %v1751_v56, 2 }
 0x602   :  { %v1753_v43 = vadd.f32 %v1752_v12, %v1751_v56  ;;  %v1921_v56 = vmul.f32 1.442695, %v1920_v38  ;;  %v4600_v12 = vld [vmem:[#allocation16_spill] sm:$0xff]  ;;  %v2028_v38 = vmul.f32 -5e-05, %v4590_v8 }
 0x603   :  { %v1796_v27 = vpop.permute.xlu2 %1795  ;;  %v1898_v54 = vrot.slane %v4600_v12, 4 }
 0x604   :  { %v1800_v0 = vsel %vm1240_vm12, %v1796_v27, 0.0  ;;  %v1754_v18 = vrot.slane %v1753_v43, 1  ;;  %2947 = vpow2.f32 %v1921_v56 }
 0x605   :  { %v1801_v9 = vadd.f32 %v1800_v0, %v1799_v45  ;;  %v1947_v45 = vmul.f32 -0.014285714, %v4590_v8 }
 0x606   :  { %v1755_v48 = vadd.f32 %v1754_v18, %v1753_v43  ;;  %v1900_v43 = vsel %vm137_vm4, %v1898_v54, %v1899_v29  ;;  %v4601_v18 = vld [vmem:[#allocation43_spill] sm:$0xff]  ;;  %v4605_v54 = vld [vmem:[#allocation45_spill] sm:$0xff] }
 0x607   :  { %1802 = vadd.xlane.f32.xlu1 %v1801_v9  ;;  %v1925_v9 = vrot.slane %v4601_v18, 4 }
 0x608   :  { %2697 = vpush %v1755_v48  ;;  %v1948_v48 = vmul.f32 1.442695, %v1947_v45 }
 0x60a   :  { %v2948_v27 = vpop.eup %2947  ;;  %2949 = vpow2.f32 %v1948_v48 }
 0x60b   :  { %v1776_v59 = vpop.xlane.xlu0 %1775  ;;  %v1823_v62 = vpop.permute.xlu2 %1822  ;;  %v1926_v0 = vrot.slane %v2948_v27, 4 }
 0x60c   :  { %v1777_v7 = vrot.slane %v1776_v59, 4  ;;  %v1827_v37 = vsel %vm1240_vm12, %v1823_v62, 0.0 }
 0x60e   :  { %v1778_v39 = vadd.f32 %v1777_v7, %v1776_v59  ;;  %v1927_v59 = vsel %vm137_vm4, %v1925_v9, %v1926_v0 }
 0x610   :  { %v1779_v17 = vrot.slane %v1778_v39, 2  ;;  %v2950_v7 = vpop.eup %2949 }
 0x612   :  { %v1780_v32 = vadd.f32 %v1779_v17, %v1778_v39  ;;  %v1953_v39 = vrot.slane %v2950_v7, 4  ;;  %v4602_v17 = vld [vmem:[#allocation26_spill] sm:$0xff] }
 0x614   :  { %v1781_v5 = vrot.slane %v1780_v32, 1 }
 0x616   :  { %v1782_v22 = vadd.f32 %v1781_v5, %v1780_v32  ;;  %v1952_v32 = vrot.slane %v4602_v17, 4 }
 0x618   :  { %2699 = vpush %v1782_v22  ;;  %v1954_v53 = vsel %vm137_vm4, %v1952_v32, %v1953_v39 }
 0x61e   :  { %v1821_v57 = vpop.permute.xlu0 %1820 }
 0x61f   :  { %v1826_v11 = vsel %vm1238_vm11, %v1821_v57, 0.0 }
 0x620   :  { %v1828_v50 = vadd.f32 %v1827_v37, %v1826_v11  ;;  %1849 = vrot.lane.b32.xlu1 %v1845_v58, %s3033_s21 }
 0x622   :  { %1829 = vadd.xlane.f32.xlu2 %v1828_v50 }
 0x626   :  { %v1848_v63 = vpop.permute.xlu0 %1847 }
 0x627   :  { %v1853_v31 = vsel %vm1238_vm11, %v1848_v63, 0.0 }
 0x628   :  { %1874 = vrot.lane.b32.xlu1 %v1873_v16, %s3033_s21 }
 0x63a   :  { %1876 = vrot.lane.b32.xlu2 %v1872_v4, %s3033_s21 }
 0x642   :  { %1903 = vrot.lane.b32.xlu2 %v1899_v29, %s3033_s21 }
 0x67a   :  { %v1803_v34 = vpop.xlane.xlu1 %1802 }
 0x67b   :  { %v1804_v6 = vrot.slane %v1803_v34, 4 }
 0x67d   :  { %v1805_v46 = vadd.f32 %v1804_v6, %v1803_v34 }
 0x67f   :  { %v1806_v42 = vrot.slane %v1805_v46, 2 }
 0x681   :  { %v1807_v23 = vadd.f32 %v1806_v42, %v1805_v46  ;;  %v1974_v42 = vmul.f32 -0.005, %v4590_v8 }
 0x683   :  { %v1808_v36 = vrot.slane %v1807_v23, 1 }
 0x685   :  { %v1809_v52 = vadd.f32 %v1808_v36, %v1807_v23  ;;  %v1975_v36 = vmul.f32 1.442695, %v1974_v42 }
 0x687   :  { %2701 = vpush %v1809_v52  ;;  %2951 = vpow2.f32 %v1975_v36  ;;  %v2001_v52 = vmul.f32 -0.0005, %v4590_v8 }
 0x692   :  { %v1850_v61 = vpop.permute.xlu1 %1849 }
 0x693   :  { %v1854_v47 = vsel %vm1240_vm12, %v1850_v61, 0.0 }
 0x694   :  { %v1855_v20 = vadd.f32 %v1854_v47, %v1853_v31 }
 0x695   :  { %v1830_v33 = vpop.xlane.xlu2 %1829 }
 0x696   :  { %v1831_v49 = vrot.slane %v1830_v33, 4  ;;  %1856 = vadd.xlane.f32.xlu0 %v1855_v20  ;;  %v2002_v20 = vmul.f32 1.442695, %v2001_v52  ;;  %v2082_v52 = vmul.f32 -5e-07, %v4590_v8 }
 0x698   :  { %v1832_v25 = vadd.f32 %v1831_v49, %v1830_v33  ;;  %v2952_v33 = vpop.eup %2951  ;;  %2953 = vpow2.f32 %v2002_v20 }
 0x699   :  { %v1980_v49 = vrot.slane %v2952_v33, 4 }
 0x69a   :  { %v1833_v1 = vrot.slane %v1832_v25, 2  ;;  %v1875_v19 = vpop.permute.xlu1 %1874 }
 0x69b   :  { %v1880_v58 = vsel %vm1238_vm11, %v1875_v19, 0.0 }
 0x69c   :  { %v1834_v35 = vadd.f32 %v1833_v1, %v1832_v25  ;;  %v4603_v25 = vld [vmem:[#allocation18_spill] sm:$0xff] }
 0x69d   :  { %v1877_v30 = vpop.permute.xlu2 %1876  ;;  %v1979_v1 = vrot.slane %v4603_v25, 4 }
 0x69e   :  { %v1881_v3 = vsel %vm1240_vm12, %v1877_v30, 0.0  ;;  %v1835_v15 = vrot.slane %v1834_v35, 1 }
 0x69f   :  { %v1882_v10 = vadd.f32 %v1881_v3, %v1880_v58  ;;  %v1981_v19 = vsel %vm137_vm4, %v1979_v1, %v1980_v49  ;;  %v4604_v58 = vld [vmem:[#allocation47_spill] sm:$0xff] }
 0x6a0   :  { %v1836_v13 = vadd.f32 %v1835_v15, %v1834_v35  ;;  %v2954_v35 = vpop.eup %2953  ;;  %v2006_v3 = vrot.slane %v4604_v58, 4  ;;  %v2029_v15 = vmul.f32 1.442695, %v2028_v38 }
 0x6a1   :  { %1883 = vadd.xlane.f32.xlu1 %v1882_v10  ;;  %v2007_v30 = vrot.slane %v2954_v35, 4 }
 0x6a2   :  { %2703 = vpush %v1836_v13  ;;  %2955 = vpow2.f32 %v2029_v15 }
 0x6a3   :  { %v2008_v10 = vsel %vm137_vm4, %v2006_v3, %v2007_v30 }
 0x6a5   :  { %v1904_v16 = vpop.permute.xlu2 %1903 }
 0x6a6   :  { %v1908_v14 = vsel %vm1240_vm12, %v1904_v16, 0.0 }
 0x6a8   :  { %v2956_v13 = vpop.eup %2955 }
 0x6a9   :  { %v2034_v56 = vrot.slane %v2956_v13, 4 }
 0x6aa   :  { %1901 = vrot.lane.b32.xlu0 %v1900_v43, %s3033_s21  ;;  %v2033_v43 = vrot.slane %v4605_v54, 4 }
 0x6ac   :  { %v2035_v27 = vsel %vm137_vm4, %v2033_v43, %v2034_v56 }
 0x6b2   :  { %1928 = vrot.lane.b32.xlu0 %v1927_v59, %s3033_s21 }
 0x6ba   :  { %1930 = vrot.lane.b32.xlu0 %v1926_v0, %s3033_s21 }
 0x6c2   :  { %1955 = vrot.lane.b32.xlu0 %v1954_v53, %s3033_s21 }
 0x709   :  { %v1857_v5 = vpop.xlane.xlu0 %1856 }
 0x70a   :  { %v1858_v22 = vrot.slane %v1857_v5, 4 }
 0x70c   :  { %v1859_v26 = vadd.f32 %v1858_v22, %v1857_v5 }
 0x70e   :  { %v1860_v62 = vrot.slane %v1859_v26, 2 }
 0x710   :  { %v1861_v57 = vadd.f32 %v1860_v62, %v1859_v26 }
 0x712   :  { %v1862_v37 = vrot.slane %v1861_v57, 1 }
 0x714   :  { %v1884_v11 = vpop.xlane.xlu1 %1883  ;;  %v1863_v24 = vadd.f32 %v1862_v37, %v1861_v57 }
 0x715   :  { %v1885_v50 = vrot.slane %v1884_v11, 4 }
 0x716   :  { %2705 = vpush %v1863_v24 }
 0x717   :  { %v1886_v4 = vadd.f32 %v1885_v50, %v1884_v11 }
 0x719   :  { %v1887_v41 = vrot.slane %v1886_v4, 2 }
 0x71b   :  { %v1888_v55 = vadd.f32 %v1887_v41, %v1886_v4 }
 0x71c   :  { %v1902_v51 = vpop.permute.xlu0 %1901 }
 0x71d   :  { %v1907_v29 = vsel %vm1238_vm11, %v1902_v51, 0.0  ;;  %v1889_v34 = vrot.slane %v1888_v55, 1 }
 0x71e   :  { %v1909_v6 = vadd.f32 %v1908_v14, %v1907_v29 }
 0x71f   :  { %v1890_v46 = vadd.f32 %v1889_v34, %v1888_v55 }
 0x720   :  { %1910 = vadd.xlane.f32.xlu2 %v1909_v6 }
 0x721   :  { %2707 = vpush %v1890_v46 }
 0x724   :  { %v1929_v23 = vpop.permute.xlu0 %1928 }
 0x725   :  { %v1934_v61 = vsel %vm1238_vm11, %v1929_v23, 0.0  ;;  %v2055_v23 = vmul.f32 -5e-06, %v4590_v8 }
 0x727   :  { %v2056_v36 = vmul.f32 1.442695, %v2055_v23 }
 0x729   :  { %2957 = vpow2.f32 %v2056_v36 }
 0x72c   :  { %v1931_v63 = vpop.permute.xlu0 %1930 }
 0x72d   :  { %v1935_v31 = vsel %vm1240_vm12, %v1931_v63, 0.0  ;;  %v2083_v63 = vmul.f32 1.442695, %v2082_v52 }
 0x72e   :  { %v1936_v47 = vadd.f32 %v1935_v31, %v1934_v61 }
 0x72f   :  { %v2958_v61 = vpop.eup %2957  ;;  %2959 = vpow2.f32 %v2083_v63 }
 0x730   :  { %1937 = vadd.xlane.f32.xlu1 %v1936_v47  ;;  %v2061_v31 = vrot.slane %v2958_v61, 4  ;;  %v4606_v47 = vld [vmem:[#allocation38_spill] sm:$0xff] }
 0x731   :  { %v2060_v20 = vrot.slane %v4606_v47, 4 }
 0x733   :  { %v2062_v33 = vsel %vm137_vm4, %v2060_v20, %v2061_v31 }
 0x734   :  { %v1956_v24 = vpop.permute.xlu0 %1955 }
 0x735   :  { %v1961_v4 = vsel %vm1238_vm11, %v1956_v24, 0.0 }
 0x738   :  { %1982 = vrot.lane.b32.xlu2 %v1981_v19, %s3033_s21  ;;  %v4607_v19 = vld [vmem:[#allocation49_spill] sm:$0xff] }
 0x739   :  { %v2087_v35 = vrot.slane %v4607_v19, 4 }
 0x740   :  { %2009 = vrot.lane.b32.xlu2 %v2008_v10, %s3033_s21 }
 0x748   :  { %2011 = vrot.lane.b32.xlu2 %v2007_v30, %s3033_s21 }
 0x749   :  { %1957 = vrot.lane.b32.xlu1 %v1953_v39, %s3033_s21 }
 0x750   :  { %2036 = vrot.lane.b32.xlu2 %v2035_v27, %s3033_s21 }
 0x751   :  { %1984 = vrot.lane.b32.xlu1 %v1980_v49, %s3033_s21  ;;  %v2960_v49 = vpop.eup %2959 }
 0x752   :  { %v2088_v1 = vrot.slane %v2960_v49, 4 }
 0x754   :  { %v2089_v8 = vsel %vm137_vm4, %v2087_v35, %v2088_v1 }
 0x793   :  { %v1911_v45 = vpop.xlane.xlu2 %1910 }
 0x794   :  { %v1912_v0 = vrot.slane %v1911_v45, 4 }
 0x796   :  { %v1913_v9 = vadd.f32 %v1912_v0, %v1911_v45 }
 0x798   :  { %v1914_v48 = vrot.slane %v1913_v9, 2 }
 0x79a   :  { %v1915_v59 = vadd.f32 %v1914_v48, %v1913_v9 }
 0x79b   :  { %v1983_v62 = vpop.permute.xlu2 %1982 }
 0x79c   :  { %v1916_v7 = vrot.slane %v1915_v59, 1  ;;  %v1988_v29 = vsel %vm1238_vm11, %v1983_v62, 0.0 }
 0x79e   :  { %v1917_v32 = vadd.f32 %v1916_v7, %v1915_v59 }
 0x7a0   :  { %2709 = vpush %v1917_v32 }
 0x7a3   :  { %v1938_v53 = vpop.xlane.xlu1 %1937  ;;  %v2010_v11 = vpop.permute.xlu2 %2009 }
 0x7a4   :  { %v1939_v5 = vrot.slane %v1938_v53, 4  ;;  %v2015_v34 = vsel %vm1238_vm11, %v2010_v11, 0.0 }
 0x7a6   :  { %v1940_v39 = vadd.f32 %v1939_v5, %v1938_v53 }
 0x7a8   :  { %v1941_v22 = vrot.slane %v1940_v39, 2 }
 0x7aa   :  { %v1942_v26 = vadd.f32 %v1941_v22, %v1940_v39 }
 0x7ab   :  { %v2012_v55 = vpop.permute.xlu2 %2011 }
 0x7ac   :  { %v1943_v57 = vrot.slane %v1942_v26, 1  ;;  %v2016_v51 = vsel %vm1240_vm12, %v2012_v55, 0.0 }
 0x7ad   :  { %v2017_v46 = vadd.f32 %v2016_v51, %v2015_v34  ;;  %v4608_v51 = vld [vmem:[#allocation27_spill] sm:$0xff] }
 0x7ae   :  { %v1944_v37 = vadd.f32 %v1943_v57, %v1942_v26 }
 0x7b0   :  { %2711 = vpush %v1944_v37 }
 0x7b3   :  { %v2037_v62 = vpop.permute.xlu2 %2036 }
 0x7b4   :  { %v2042_v37 = vsel %vm1238_vm11, %v2037_v62, 0.0 }
 0x7bb   :  { %v1958_v50 = vpop.permute.xlu1 %1957 }
 0x7bc   :  { %v1962_v41 = vsel %vm1240_vm12, %v1958_v50, 0.0 }
 0x7bd   :  { %v1963_v16 = vadd.f32 %v1962_v41, %v1961_v4 }
 0x7bf   :  { %1964 = vadd.xlane.f32.xlu0 %v1963_v16 }
 0x7c3   :  { %v1985_v14 = vpop.permute.xlu1 %1984 }
 0x7c4   :  { %v1989_v6 = vsel %vm1240_vm12, %v1985_v14, 0.0  ;;  %v4609_v14 = vld [vmem:[#allocation28_spill] sm:$0xff] }
 0x7c5   :  { %v1990_v42 = vadd.f32 %v1989_v6, %v1988_v29  ;;  %v4610_v29 = vld [vmem:[#allocation29_spill] sm:$0xff] }
 0x7c7   :  { %1991 = vadd.xlane.f32.xlu1 %v1990_v42  ;;  %2018 = vadd.xlane.f32.xlu0 %v2017_v46 }
 0x7db   :  { %2038 = vrot.lane.b32.xlu0 %v2034_v56, %s3033_s21 }
 0x7e0   :  { %2063 = vrot.lane.b32.xlu1 %v2062_v33, %s3033_s21 }
 0x7e3   :  { %2065 = vrot.lane.b32.xlu0 %v2061_v31, %s3033_s21 }
 0x7e8   :  { %2090 = vrot.lane.b32.xlu1 %v2089_v8, %s3033_s21 }
 0x832   :  { %v1965_v38 = vpop.xlane.xlu0 %1964 }
 0x833   :  { %v1966_v30 = vrot.slane %v1965_v38, 4 }
 0x835   :  { %v1967_v3 = vadd.f32 %v1966_v30, %v1965_v38 }
 0x837   :  { %v1968_v15 = vrot.slane %v1967_v3, 2 }
 0x839   :  { %v1969_v10 = vadd.f32 %v1968_v15, %v1967_v3 }
 0x83a   :  { %v1992_v13 = vpop.xlane.xlu1 %1991  ;;  %v2019_v56 = vpop.xlane.xlu0 %2018 }
 0x83b   :  { %v1993_v43 = vrot.slane %v1992_v13, 4  ;;  %v2020_v27 = vrot.slane %v2019_v56, 4  ;;  %v1970_v45 = vrot.slane %v1969_v10, 1 }
 0x83d   :  { %v1994_v0 = vadd.f32 %v1993_v43, %v1992_v13  ;;  %v2021_v9 = vadd.f32 %v2020_v27, %v2019_v56  ;;  %v1971_v48 = vadd.f32 %v1970_v45, %v1969_v10  ;;  %v4611_v27 = vld [vmem:[#allocation30_spill] sm:$0xff]  ;;  %v4612_v45 = vld [vmem:[#allocation31_spill] sm:$0xff] }
 0x83f   :  { %v1995_v59 = vrot.slane %v1994_v0, 2  ;;  %v2022_v7 = vrot.slane %v2021_v9, 2  ;;  %2713 = vpush %v1971_v48 }
 0x841   :  { %v1996_v32 = vadd.f32 %v1995_v59, %v1994_v0  ;;  %v2023_v53 = vadd.f32 %v2022_v7, %v2021_v9  ;;  %v4613_v0 = vld [vmem:[#allocation32_spill] sm:$0xff]  ;;  %v4614_v9 = vld [vmem:[#allocation34_spill] sm:$0xff] }
 0x843   :  { %v1997_v5 = vrot.slane %v1996_v32, 1  ;;  %v2024_v39 = vrot.slane %v2023_v53, 1 }
 0x845   :  { %v1998_v22 = vadd.f32 %v1997_v5, %v1996_v32  ;;  %v2025_v26 = vadd.f32 %v2024_v39, %v2023_v53 }
 0x847   :  { %2715 = vpush %v1998_v22 }
 0x848   :  { %2717 = vpush %v2025_v26 }
 0x84d   :  { %v2039_v57 = vpop.permute.xlu0 %2038 }
 0x84e   :  { %v2043_v11 = vsel %vm1240_vm12, %v2039_v57, 0.0 }
 0x84f   :  { %v2044_v24 = vadd.f32 %v2043_v11, %v2042_v37 }
 0x851   :  { %2045 = vadd.xlane.f32.xlu2 %v2044_v24 }
 0x852   :  { %v2064_v50 = vpop.permute.xlu1 %2063 }
 0x853   :  { %v2069_v41 = vsel %vm1238_vm11, %v2064_v50, 0.0 }
 0x855   :  { %v2066_v4 = vpop.permute.xlu0 %2065 }
 0x856   :  { %v2070_v16 = vsel %vm1240_vm12, %v2066_v4, 0.0 }
 0x857   :  { %v2071_v55 = vadd.f32 %v2070_v16, %v2069_v41 }
 0x859   :  { %2072 = vadd.xlane.f32.xlu0 %v2071_v55 }
 0x85a   :  { %v2091_v23 = vpop.permute.xlu1 %2090 }
 0x85b   :  { %v2096_v61 = vsel %vm1238_vm11, %v2091_v23, 0.0  ;;  %v4617_v23 = vld [vmem:[#allocation20_spill] sm:$0xff] }
 0x869   :  { %2092 = vrot.lane.b32.xlu2 %v2088_v1, %s3033_s21 }
 0x86d   :  { %2112 = vrot.lane.b32.xlu0 %v4608_v51, %s3033_s21 }
 0x871   :  { %2114 = vrot.lane.b32.xlu2 %v4609_v14, %s3033_s21 }
 0x875   :  { %2132 = vrot.lane.b32.xlu0 %v4610_v29, %s3033_s21 }
 0x8c4   :  { %v2046_v34 = vpop.xlane.xlu2 %2045 }
 0x8c5   :  { %v2047_v6 = vrot.slane %v2046_v34, 4 }
 0x8c7   :  { %v2048_v46 = vadd.f32 %v2047_v6, %v2046_v34 }
 0x8c9   :  { %v2049_v42 = vrot.slane %v2048_v46, 2 }
 0x8cb   :  { %v2050_v36 = vadd.f32 %v2049_v42, %v2048_v46  ;;  %v4615_v46 = vld [vmem:[#allocation33_spill] sm:$0xff]  ;;  %v4616_v42 = vld [vmem:[#allocation19_spill] sm:$0xff] }
 0x8cc   :  { %v2093_v52 = vpop.permute.xlu2 %2092  ;;  %v2073_v63 = vpop.xlane.xlu0 %2072 }
 0x8cd   :  { %v2097_v31 = vsel %vm1240_vm12, %v2093_v52, 0.0  ;;  %v2074_v20 = vrot.slane %v2073_v63, 4  ;;  %v2051_v33 = vrot.slane %v2050_v36, 1 }
 0x8ce   :  { %v2098_v49 = vadd.f32 %v2097_v31, %v2096_v61 }
 0x8cf   :  { %v2075_v1 = vadd.f32 %v2074_v20, %v2073_v63  ;;  %v2052_v35 = vadd.f32 %v2051_v33, %v2050_v36  ;;  %v4618_v36 = vld [vmem:[#allocation11_spill] sm:$0xff] }
 0x8d0   :  { %2099 = vadd.xlane.f32.xlu1 %v2098_v49 }
 0x8d1   :  { %v2076_v8 = vrot.slane %v2075_v1, 2  ;;  %2719 = vpush %v2052_v35 }
 0x8d3   :  { %v2077_v38 = vadd.f32 %v2076_v8, %v2075_v1 }
 0x8d4   :  { %v2115_v15 = vpop.permute.xlu2 %2114 }
 0x8d5   :  { %v2078_v30 = vrot.slane %v2077_v38, 1  ;;  %v2119_v13 = vsel %vm1240_vm12, %v2115_v15, 0.0 }
 0x8d7   :  { %v2079_v3 = vadd.f32 %v2078_v30, %v2077_v38 }
 0x8d9   :  { %2721 = vpush %v2079_v3 }
 0x8df   :  { %v2113_v10 = vpop.permute.xlu0 %2112 }
 0x8e0   :  { %v2118_v56 = vsel %vm1238_vm11, %v2113_v10, 0.0 }
 0x8e1   :  { %v2120_v43 = vadd.f32 %v2119_v13, %v2118_v56 }
 0x8e3   :  { %2121 = vadd.xlane.f32.xlu2 %v2120_v43 }
 0x8e7   :  { %v2133_v62 = vpop.permute.xlu0 %2132 }
 0x8e8   :  { %v2138_v24 = vsel %vm1238_vm11, %v2133_v62, 0.0 }
 0x8e9   :  { %2134 = vrot.lane.b32.xlu1 %v4611_v27, %s3033_s21 }
 0x8f1   :  { %2152 = vrot.lane.b32.xlu1 %v4612_v45, %s3033_s21 }
 0x8fb   :  { %2154 = vrot.lane.b32.xlu2 %v4613_v0, %s3033_s21 }
 0x903   :  { %2174 = vrot.lane.b32.xlu2 %v4614_v9, %s3033_s21 }
 0x943   :  { %v2100_v48 = vpop.xlane.xlu1 %2099 }
 0x944   :  { %v2101_v59 = vrot.slane %v2100_v48, 4 }
 0x946   :  { %v2102_v7 = vadd.f32 %v2101_v59, %v2100_v48 }
 0x948   :  { %v2103_v32 = vrot.slane %v2102_v7, 2 }
 0x94a   :  { %v2104_v53 = vadd.f32 %v2103_v32, %v2102_v7  ;;  %v4619_v7 = vld [vmem:[#allocation35_spill] sm:$0xff]  ;;  %v4620_v32 = vld [vmem:[#allocation21_spill] sm:$0xff] }
 0x94c   :  { %v2105_v5 = vrot.slane %v2104_v53, 1 }
 0x94e   :  { %v2106_v39 = vadd.f32 %v2105_v5, %v2104_v53 }
 0x950   :  { %2723 = vpush %v2106_v39 }
 0x956   :  { %v2122_v22 = vpop.xlane.xlu2 %2121 }
 0x957   :  { %v2123_v26 = vrot.slane %v2122_v22, 4 }
 0x959   :  { %v2124_v57 = vadd.f32 %v2123_v26, %v2122_v22 }
 0x95b   :  { %v2125_v37 = vrot.slane %v2124_v57, 2  ;;  %v2135_v11 = vpop.permute.xlu1 %2134 }
 0x95c   :  { %v2139_v50 = vsel %vm1240_vm12, %v2135_v11, 0.0 }
 0x95d   :  { %v2140_v4 = vadd.f32 %v2139_v50, %v2138_v24  ;;  %v2126_v41 = vadd.f32 %v2125_v37, %v2124_v57 }
 0x95e   :  { %v2155_v55 = vpop.permute.xlu2 %2154 }
 0x95f   :  { %2141 = vadd.xlane.f32.xlu0 %v2140_v4  ;;  %v2127_v16 = vrot.slane %v2126_v41, 1  ;;  %v2159_v29 = vsel %vm1240_vm12, %v2155_v55, 0.0 }
 0x961   :  { %v2128_v51 = vadd.f32 %v2127_v16, %v2126_v41 }
 0x963   :  { %v2153_v14 = vpop.permute.xlu1 %2152  ;;  %2725 = vpush %v2128_v51 }
 0x964   :  { %v2158_v34 = vsel %vm1238_vm11, %v2153_v14, 0.0 }
 0x965   :  { %v2160_v6 = vadd.f32 %v2159_v29, %v2158_v34 }
 0x966   :  { %v2175_v3 = vpop.permute.xlu2 %2174 }
 0x967   :  { %2161 = vadd.xlane.f32.xlu1 %v2160_v6  ;;  %v2179_v56 = vsel %vm1240_vm12, %v2175_v3, 0.0 }
 0x973   :  { %2172 = vrot.lane.b32.xlu0 %v4615_v46, %s3033_s21 }
 0x97b   :  { %2192 = vrot.lane.b32.xlu0 %v4616_v42, %s3033_s21 }
 0x983   :  { %2194 = vrot.lane.b32.xlu0 %v4617_v23, %s3033_s21  ;;  %v4621_v23 = vld [vmem:[#allocation13_spill] sm:$0xff] }
 0x98b   :  { %2212 = vrot.lane.b32.xlu0 %v4618_v36, %s3033_s21 }
 0x9d2   :  { %v2142_v52 = vpop.xlane.xlu0 %2141 }
 0x9d3   :  { %v2143_v63 = vrot.slane %v2142_v52, 4 }
 0x9d5   :  { %v2144_v61 = vadd.f32 %v2143_v63, %v2142_v52 }
 0x9d7   :  { %v2145_v31 = vrot.slane %v2144_v61, 2 }
 0x9d9   :  { %v2146_v20 = vadd.f32 %v2145_v31, %v2144_v61 }
 0x9da   :  { %v2162_v33 = vpop.xlane.xlu1 %2161 }
 0x9db   :  { %v2163_v49 = vrot.slane %v2162_v33, 4  ;;  %v2147_v1 = vrot.slane %v2146_v20, 1 }
 0x9dd   :  { %v2164_v35 = vadd.f32 %v2163_v49, %v2162_v33  ;;  %v2148_v8 = vadd.f32 %v2147_v1, %v2146_v20 }
 0x9df   :  { %v2165_v38 = vrot.slane %v2164_v35, 2  ;;  %2727 = vpush %v2148_v8 }
 0x9e1   :  { %v2166_v30 = vadd.f32 %v2165_v38, %v2164_v35 }
 0x9e3   :  { %v2167_v15 = vrot.slane %v2166_v30, 1 }
 0x9e5   :  { %v2173_v10 = vpop.permute.xlu0 %2172  ;;  %v2168_v13 = vadd.f32 %v2167_v15, %v2166_v30 }
 0x9e6   :  { %v2178_v43 = vsel %vm1238_vm11, %v2173_v10, 0.0 }
 0x9e7   :  { %v2180_v27 = vadd.f32 %v2179_v56, %v2178_v43  ;;  %2729 = vpush %v2168_v13 }
 0x9e9   :  { %2181 = vadd.xlane.f32.xlu2 %v2180_v27 }
 0x9ed   :  { %v2193_v45 = vpop.permute.xlu0 %2192 }
 0x9ee   :  { %v2198_v9 = vsel %vm1238_vm11, %v2193_v45, 0.0 }
 0x9f5   :  { %v2195_v0 = vpop.permute.xlu0 %2194 }
 0x9f6   :  { %v2199_v48 = vsel %vm1240_vm12, %v2195_v0, 0.0  ;;  %v4622_v0 = vld [vmem:[#allocation39_spill] sm:$0xff] }
 0x9f7   :  { %v2200_v59 = vadd.f32 %v2199_v48, %v2198_v9  ;;  %v4623_v9 = vld [vmem:[#allocation23_spill] sm:$0xff] }
 0x9f8   :  { %v4624_v48 = vld [vmem:[#allocation15_spill] sm:$0xff] }
 0x9f9   :  { %2201 = vadd.xlane.f32.xlu1 %v2200_v59  ;;  %v4625_v59 = vld [vmem:[#allocation42_spill] sm:$0xff] }
 0xa01   :  { %2232 = vrot.lane.b32.xlu2 %v4619_v7, %s3033_s21  ;;  %v4626_v7 = vld [vmem:[#allocation25_spill] sm:$0xff] }
 0xa09   :  { %2252 = vrot.lane.b32.xlu2 %v4620_v32, %s3033_s21  ;;  %v4627_v32 = vld [vmem:[#allocation17_spill] sm:$0xff] }
 0xa12   :  { %2214 = vrot.lane.b32.xlu1 %v4593_v44, %s3033_s21  ;;  %v2213_v44 = vpop.permute.xlu0 %2212 }
 0xa1a   :  { %2234 = vrot.lane.b32.xlu1 %v4594_v2, %s3033_s21  ;;  %v2218_v2 = vsel %vm1238_vm11, %v2213_v44, 0.0 }
 0xa5c   :  { %v2182_v53 = vpop.xlane.xlu2 %2181 }
 0xa5d   :  { %v2183_v5 = vrot.slane %v2182_v53, 4 }
 0xa5f   :  { %v2184_v39 = vadd.f32 %v2183_v5, %v2182_v53 }
 0xa61   :  { %v2185_v22 = vrot.slane %v2184_v39, 2 }
 0xa63   :  { %v2186_v26 = vadd.f32 %v2185_v22, %v2184_v39 }
 0xa64   :  { %v2233_v29 = vpop.permute.xlu2 %2232 }
 0xa65   :  { %v2187_v62 = vrot.slane %v2186_v26, 1  ;;  %v2238_v6 = vsel %vm1238_vm11, %v2233_v29, 0.0 }
 0xa67   :  { %v2188_v57 = vadd.f32 %v2187_v62, %v2186_v26 }
 0xa69   :  { %2731 = vpush %v2188_v57 }
 0xa6c   :  { %v2202_v37 = vpop.xlane.xlu1 %2201  ;;  %v2253_v38 = vpop.permute.xlu2 %2252 }
 0xa6d   :  { %v2203_v11 = vrot.slane %v2202_v37, 4  ;;  %v2258_v15 = vsel %vm1238_vm11, %v2253_v38, 0.0 }
 0xa6f   :  { %v2204_v24 = vadd.f32 %v2203_v11, %v2202_v37 }
 0xa71   :  { %v2205_v50 = vrot.slane %v2204_v24, 2 }
 0xa73   :  { %v2206_v4 = vadd.f32 %v2205_v50, %v2204_v24 }
 0xa75   :  { %v2207_v41 = vrot.slane %v2206_v4, 1 }
 0xa77   :  { %v2208_v16 = vadd.f32 %v2207_v41, %v2206_v4 }
 0xa79   :  { %2733 = vpush %v2208_v16 }
 0xa84   :  { %v2215_v55 = vpop.permute.xlu1 %2214 }
 0xa85   :  { %v2219_v51 = vsel %vm1240_vm12, %v2215_v55, 0.0 }
 0xa86   :  { %v2220_v14 = vadd.f32 %v2219_v51, %v2218_v2 }
 0xa88   :  { %2221 = vadd.xlane.f32.xlu0 %v2220_v14 }
 0xa8c   :  { %v2235_v34 = vpop.permute.xlu1 %2234 }
 0xa8d   :  { %v2239_v46 = vsel %vm1240_vm12, %v2235_v34, 0.0 }
 0xa8e   :  { %v2240_v42 = vadd.f32 %v2239_v46, %v2238_v6 }
 0xa90   :  { %2241 = vadd.xlane.f32.xlu1 %v2240_v42 }
 0xa9c   :  { %2254 = vrot.lane.b32.xlu0 %v4592_v21, %s3033_s21 }
 0xaa4   :  { %2272 = vrot.lane.b32.xlu0 %v4621_v23, %s3033_s21 }
 0xaa9   :  { %2274 = vrot.lane.b32.xlu1 %v4597_v40, %s3033_s21 }
 0xab1   :  { %2294 = vrot.lane.b32.xlu1 %v4598_v60, %s3033_s21 }
 0xafb   :  { %v2222_v36 = vpop.xlane.xlu0 %2221 }
 0xafc   :  { %v2223_v52 = vrot.slane %v2222_v36, 4 }
 0xafe   :  { %v2224_v63 = vadd.f32 %v2223_v52, %v2222_v36 }
 0xb00   :  { %v2225_v61 = vrot.slane %v2224_v63, 2 }
 0xb02   :  { %v2226_v31 = vadd.f32 %v2225_v61, %v2224_v63  ;;  %v4629_v63 = vld [vmem:[#allocation44_spill] sm:$0xff] }
 0xb03   :  { %v2242_v20 = vpop.xlane.xlu1 %2241 }
 0xb04   :  { %v2243_v33 = vrot.slane %v2242_v20, 4  ;;  %v2227_v49 = vrot.slane %v2226_v31, 1 }
 0xb06   :  { %v2244_v1 = vadd.f32 %v2243_v33, %v2242_v20  ;;  %v2228_v35 = vadd.f32 %v2227_v49, %v2226_v31 }
 0xb08   :  { %v2245_v21 = vrot.slane %v2244_v1, 2  ;;  %2735 = vpush %v2228_v35 }
 0xb0a   :  { %v2246_v8 = vadd.f32 %v2245_v21, %v2244_v1  ;;  %v4631_v1 = vld [vmem:[#allocation48_spill] sm:$0xff] }
 0xb0c   :  { %v2247_v30 = vrot.slane %v2246_v8, 1 }
 0xb0e   :  { %v2255_v3 = vpop.permute.xlu0 %2254  ;;  %v2248_v40 = vadd.f32 %v2247_v30, %v2246_v8 }
 0xb0f   :  { %v2259_v60 = vsel %vm1240_vm12, %v2255_v3, 0.0 }
 0xb10   :  { %v2260_v10 = vadd.f32 %v2259_v60, %v2258_v15  ;;  %2737 = vpush %v2248_v40 }
 0xb12   :  { %2261 = vadd.xlane.f32.xlu2 %v2260_v10 }
 0xb16   :  { %v2273_v13 = vpop.permute.xlu0 %2272 }
 0xb17   :  { %v2278_v43 = vsel %vm1238_vm11, %v2273_v13, 0.0 }
 0xb1b   :  { %v2275_v56 = vpop.permute.xlu1 %2274 }
 0xb1c   :  { %v2279_v27 = vsel %vm1240_vm12, %v2275_v56, 0.0 }
 0xb1d   :  { %v2280_v45 = vadd.f32 %v2279_v27, %v2278_v43 }
 0xb1f   :  { %2281 = vadd.xlane.f32.xlu0 %v2280_v45 }
 0xb23   :  { %v2295_v22 = vpop.permute.xlu1 %2294 }
 0xb24   :  { %v2299_v57 = vsel %vm1240_vm12, %v2295_v22, 0.0 }
 0xb2a   :  { %2292 = vrot.lane.b32.xlu2 %v4622_v0, %s3033_s21 }
 0xb32   :  { %2312 = vrot.lane.b32.xlu2 %v4623_v9, %s3033_s21 }
 0xb33   :  { %2314 = vrot.lane.b32.xlu0 %v4599_v28, %s3033_s21  ;;  %v4628_v28 = vld [vmem:[#allocation37_spill] sm:$0xff] }
 0xb3b   :  { %2332 = vrot.lane.b32.xlu0 %v4624_v48, %s3033_s21 }
 0xb43   :  { %2334 = vrot.lane.b32.xlu0 %v4600_v12, %s3033_s21 }
 0xb4b   :  { %2352 = vrot.lane.b32.xlu0 %v4625_v59, %s3033_s21 }
 0xb53   :  { %2372 = vrot.lane.b32.xlu0 %v4626_v7, %s3033_s21 }
 0xb5b   :  { %2392 = vrot.lane.b32.xlu0 %v4627_v32, %s3033_s21 }
 0xb63   :  { %2394 = vrot.lane.b32.xlu0 %v4603_v25, %s3033_s21 }
 0xb6b   :  { %2414 = vrot.lane.b32.xlu0 %v4604_v58, %s3033_s21 }
 0xb73   :  { %2452 = vrot.lane.b32.xlu0 %v4628_v28, %s3033_s21 }
 0xb7b   :  { %2474 = vrot.lane.b32.xlu0 %v4607_v19, %s3033_s21 }
 0xb85   :  { %v2262_v12 = vpop.xlane.xlu2 %2261 }
 0xb86   :  { %v2263_v53 = vrot.slane %v2262_v12, 4 }
 0xb88   :  { %v2264_v5 = vadd.f32 %v2263_v53, %v2262_v12 }
 0xb8a   :  { %v2265_v39 = vrot.slane %v2264_v5, 2 }
 0xb8c   :  { %v2266_v26 = vadd.f32 %v2265_v39, %v2264_v5 }
 0xb8d   :  { %v2293_v62 = vpop.permute.xlu2 %2292 }
 0xb8e   :  { %v2298_v25 = vsel %vm1238_vm11, %v2293_v62, 0.0  ;;  %v2267_v37 = vrot.slane %v2266_v26, 1 }
 0xb8f   :  { %v2300_v11 = vadd.f32 %v2299_v57, %v2298_v25 }
 0xb90   :  { %v2268_v58 = vadd.f32 %v2267_v37, %v2266_v26 }
 0xb91   :  { %2301 = vadd.xlane.f32.xlu1 %v2300_v11 }
 0xb92   :  { %2739 = vpush %v2268_v58  ;;  %v2282_v24 = vpop.xlane.xlu0 %2281 }
 0xb93   :  { %v2283_v50 = vrot.slane %v2282_v24, 4 }
 0xb95   :  { %v2284_v4 = vadd.f32 %v2283_v50, %v2282_v24  ;;  %v2313_v55 = vpop.permute.xlu2 %2312 }
 0xb96   :  { %v2318_v51 = vsel %vm1238_vm11, %v2313_v55, 0.0 }
 0xb97   :  { %v2285_v19 = vrot.slane %v2284_v4, 2 }
 0xb99   :  { %v2286_v41 = vadd.f32 %v2285_v19, %v2284_v4 }
 0xb9b   :  { %v2287_v16 = vrot.slane %v2286_v41, 1 }
 0xb9d   :  { %v2288_v44 = vadd.f32 %v2287_v16, %v2286_v41 }
 0xb9f   :  { %2741 = vpush %v2288_v44 }
 0xba5   :  { %v2315_v2 = vpop.permute.xlu0 %2314 }
 0xba6   :  { %v2319_v14 = vsel %vm1240_vm12, %v2315_v2, 0.0 }
 0xba7   :  { %v2320_v29 = vadd.f32 %v2319_v14, %v2318_v51 }
 0xba9   :  { %2321 = vadd.xlane.f32.xlu2 %v2320_v29 }
 0xbad   :  { %v2333_v34 = vpop.permute.xlu0 %2332 }
 0xbae   :  { %v2338_v46 = vsel %vm1238_vm11, %v2333_v34, 0.0 }
 0xbb5   :  { %v2335_v6 = vpop.permute.xlu0 %2334 }
 0xbb6   :  { %v2339_v42 = vsel %vm1240_vm12, %v2335_v6, 0.0 }
 0xbb7   :  { %v2340_v23 = vadd.f32 %v2339_v42, %v2338_v46 }
 0xbb9   :  { %2341 = vadd.xlane.f32.xlu1 %v2340_v23 }
 0xbbd   :  { %v2353_v36 = vpop.permute.xlu0 %2352 }
 0xbbe   :  { %v2358_v53 = vsel %vm1238_vm11, %v2353_v36, 0.0 }
 0xbc1   :  { %2374 = vrot.lane.b32.xlu2 %v4602_v17, %s3033_s21  ;;  %v4630_v17 = vld [vmem:[#allocation46_spill] sm:$0xff] }
 0xbc5   :  { %v2373_v52 = vpop.permute.xlu0 %2372 }
 0xbc6   :  { %v2378_v56 = vsel %vm1238_vm11, %v2373_v52, 0.0 }
 0xbc9   :  { %2432 = vrot.lane.b32.xlu2 %v4629_v63, %s3033_s21 }
 0xbcd   :  { %v2393_v61 = vpop.permute.xlu0 %2392 }
 0xbce   :  { %v2398_v20 = vsel %vm1238_vm11, %v2393_v61, 0.0 }
 0xbd1   :  { %2454 = vrot.lane.b32.xlu2 %v4606_v47, %s3033_s21 }
 0xbd2   :  { %2354 = vrot.lane.b32.xlu1 %v4601_v18, %s3033_s21 }
 0xbd5   :  { %v2395_v31 = vpop.permute.xlu0 %2394 }
 0xbd6   :  { %v2399_v33 = vsel %vm1240_vm12, %v2395_v31, 0.0 }
 0xbd7   :  { %v2400_v49 = vadd.f32 %v2399_v33, %v2398_v20 }
 0xbd9   :  { %2401 = vadd.xlane.f32.xlu0 %v2400_v49 }
 0xbda   :  { %2412 = vrot.lane.b32.xlu1 %v4630_v17, %s3033_s21 }
 0xbdd   :  { %v2415_v39 = vpop.permute.xlu0 %2414 }
 0xbde   :  { %v2419_v57 = vsel %vm1240_vm12, %v2415_v39, 0.0 }
 0xbe2   :  { %2434 = vrot.lane.b32.xlu1 %v4605_v54, %s3033_s21 }
 0xbe5   :  { %v2453_v11 = vpop.permute.xlu0 %2452 }
 0xbe6   :  { %v2458_v4 = vsel %vm1238_vm11, %v2453_v11, 0.0 }
 0xbea   :  { %2472 = vrot.lane.b32.xlu1 %v4631_v1, %s3033_s21  ;;  %s2650_s21 = spop %2649 }
 0xbeb   :  { %s2652_s20 = spop %2651 }
 0xbec   :  { %s2654_s25 = spop %2653  ;;  %s1271_s28 = sadd.f32 %s2652_s20, %s2650_s21 }
 0xbed   :  { %v2475_v55 = vpop.permute.xlu0 %2474  ;;  %s2656_s4 = spop %2655 }
 0xbee   :  { %v2479_v51 = vsel %vm1240_vm12, %v2475_v55, 0.0  ;;  %s2658_s29 = spop %2657  ;;  %s1290_s8 = sadd.f32 %s2654_s25, %s1271_s28 }
 0xbef   :  { %s4352_s14 = spop %2659 }
 0xbf0   :  { %s2662_s17 = spop %2661  ;;  %s1309_s0 = sadd.f32 %s2656_s4, %s1290_s8 }
 0xbf1   :  { %s4354_s22 = spop %2663 }
 0xbf2   :  { %s4356_s16 = spop %2665  ;;  %s1328_s26 = sadd.f32 %s2658_s29, %s1309_s0 }
 0xbf3   :  { %s4358_s5 = spop %2667 }
 0xbf4   :  { %s4360_s23 = spop %2669  ;;  %s1347_s18 = sadd.f32 %s4352_s14, %s1328_s26 }
 0xbf5   :  { %s4363_s9 = spop %2671 }
 0xbf6   :  { %s4365_s3 = spop %2673  ;;  %s1366_s6 = sadd.f32 %s2662_s17, %s1347_s18 }
 0xbf7   :  { %s4367_s27 = spop %2675 }
 0xbf8   :  { %s4369_s2 = spop %2677  ;;  %s1385_s12 = sadd.f32 %s4354_s22, %s1366_s6 }
 0xbf9   :  { %s4371_s24 = spop %2679 }
 0xbfa   :  { %s4374_s30 = spop %2681  ;;  %s1404_s19 = sadd.f32 %s4356_s16, %s1385_s12 }
 0xbfb   :  { %4632 = sst [smem:[#allocation63_spill]] %s4374_s30  ;;  %s4376_s1 = spop %2683 }
 0xbfc   :  { %4633 = sst [smem:[#allocation62_spill]] %s4376_s1  ;;  %s4379_s10 = spop %2685 }
 0xbfd   :  { %4634 = sst [smem:[#allocation64_spill]] %s4379_s10  ;;  %s4381_s7 = spop %2687 }
 0xbfe   :  { %s4383_s13 = spop %2689  ;;  %s1423_s11 = sadd.f32 %s4358_s5, %s1404_s19 }
 0xbff   :  { %s4385_s15 = spop %2691 }
 0xc00   :  { %s4388_s21 = spop %2693  ;;  %s1442_s28 = sadd.f32 %s4360_s23, %s1423_s11 }
 0xc01   :  { %s4390_s20 = spop %2695 }
 0xc02   :  { %s4392_s25 = spop %2697  ;;  %s1461_s17 = sadd.f32 %s4363_s9, %s1442_s28 }
 0xc03   :  { %s4395_s4 = spop %2699  ;;  %s1649_s28 = sadd.f32 %s4383_s13, %s4381_s7 }
 0xc04   :  { %v2302_v47 = vpop.xlane.xlu1 %2301  ;;  %s4397_s29 = spop %2701  ;;  %s1480_s5 = sadd.f32 %s4365_s3, %s1461_s17 }
 0xc05   :  { %v2303_v35 = vrot.slane %v2302_v47, 4  ;;  %s4399_s8 = spop %2703  ;;  %s1676_s3 = sadd.f32 %s4385_s15, %s1649_s28 }
 0xc06   :  { %s4401_s14 = spop %2705  ;;  %s1499_s6 = sadd.f32 %s4367_s27, %s1480_s5 }
 0xc07   :  { %v2304_v21 = vadd.f32 %v2303_v35, %v2302_v47  ;;  %s4404_s0 = spop %2707 }
 0xc08   :  { %s4406_s22 = spop %2709  ;;  %s4427_s1 = sadd.f32 %s4369_s2, %s1499_s6 }
 0xc09   :  { %v2305_v18 = vrot.slane %v2304_v21, 2  ;;  %s4408_s16 = spop %2711 }
 0xc0a   :  { %s4410_s26 = spop %2713 }
 0xc0b   :  { %v2306_v8 = vadd.f32 %v2305_v18, %v2304_v21  ;;  %4635 = sst [smem:[#allocation65_spill]] %s4410_s26  ;;  %s4413_s23 = spop %2715 }
 0xc0c   :  { %4636 = sst [smem:[#allocation66_spill]] %s4413_s23  ;;  %s4415_s18 = spop %2717 }
 0xc0d   :  { %v2307_v38 = vrot.slane %v2306_v8, 1  ;;  %4637 = sst [smem:[#allocation67_spill]] %s4415_s18  ;;  %s4417_s9 = spop %2719 }
 0xc0e   :  { %4638 = sst [smem:[#allocation68_spill]] %s4417_s9  ;;  %s4420_s12 = spop %2721 }
 0xc0f   :  { %v2308_v30 = vadd.f32 %v2307_v38, %v2306_v8  ;;  %4639 = sst [smem:[#allocation69_spill]] %s4420_s12  ;;  %s4422_s19 = spop %2723 }
 0xc10   :  { %4640 = sst [smem:[#allocation70_spill]] %s4422_s19  ;;  %s2726_s11 = spop %2725 }
 0xc11   :  { %2743 = vpush %v2308_v30  ;;  %s2728_s10 = spop %2727  ;;  %s1703_s18 = sadd.f32 %s4388_s21, %s1676_s3 }
 0xc12   :  { %s2730_s17 = spop %2729  ;;  %s2150_s23 = sadd.f32 %s2728_s10, %s2726_s11 }
 0xc13   :  { %s2732_s9 = spop %2731  ;;  %s1730_s19 = sadd.f32 %s4390_s20, %s1703_s18 }
 0xc14   :  { %s2170_s27 = sadd.f32 %s2730_s17, %s2150_s23  ;;  %s2734_s12 = spop %2733 }
 0xc15   :  { %s2736_s26 = spop %2735  ;;  %s1757_s2 = sadd.f32 %s4392_s25, %s1730_s19 }
 0xc16   :  { %s2190_s30 = sadd.f32 %s2732_s9, %s2170_s27  ;;  %s2738_s13 = spop %2737 }
 0xc17   :  { %s1784_s15 = sadd.f32 %s4395_s4, %s1757_s2  ;;  %s2740_s28 = spop %2739 }
 0xc18   :  { %s2210_s7 = sadd.f32 %s2734_s12, %s2190_s30  ;;  %s2742_s11 = spop %2741 }
 0xc19   :  { %s1811_s21 = sadd.f32 %s4397_s29, %s1784_s15 }
 0xc1a   :  { %s2230_s6 = sadd.f32 %s2736_s26, %s2210_s7 }
 0xc1b   :  { %s4641_s23 = sld [smem:[#allocation65_spill]] }
 0xc1c   :  { %v2322_v3 = vpop.xlane.xlu2 %2321  ;;  %s2250_s10 = sadd.f32 %s2738_s13, %s2230_s6 }
 0xc1d   :  { %v2323_v40 = vrot.slane %v2322_v3, 4  ;;  %s4642_s9 = sld [smem:[#allocation63_spill]] }
 0xc1e   :  { %s2270_s3 = sadd.f32 %s2740_s28, %s2250_s10 }
 0xc1f   :  { %v2324_v15 = vadd.f32 %v2323_v40, %v2322_v3  ;;  %s1838_s17 = sadd.f32 %s4399_s8, %s1811_s21 }
 0xc20   :  { %s4643_s20 = sld [smem:[#allocation66_spill]] }
 0xc21   :  { %v2325_v60 = vrot.slane %v2324_v15, 2  ;;  %s2290_s30 = sadd.f32 %s2742_s11, %s2270_s3 }
 0xc22   :  { %s1865_s12 = sadd.f32 %s4401_s14, %s1838_s17 }
 0xc23   :  { %v2326_v10 = vadd.f32 %v2325_v60, %v2324_v15  ;;  %s4644_s25 = sld [smem:[#allocation62_spill]] }
 0xc24   :  { %v2375_v13 = vpop.permute.xlu2 %2374  ;;  %s4645_s27 = sld [smem:[#allocation67_spill]] }
 0xc25   :  { %v2379_v54 = vsel %vm1240_vm12, %v2375_v13, 0.0  ;;  %v2327_v43 = vrot.slane %v2326_v10, 1  ;;  %s1892_s4 = sadd.f32 %s4404_s0, %s1865_s12 }
 0xc26   :  { %v2380_v27 = vadd.f32 %v2379_v54, %v2378_v56  ;;  %s4646_s13 = sld [smem:[#allocation68_spill]] }
 0xc27   :  { %v2328_v45 = vadd.f32 %v2327_v43, %v2326_v10  ;;  %s1919_s29 = sadd.f32 %s4406_s22, %s1892_s4 }
 0xc28   :  { %2381 = vadd.xlane.f32.xlu1 %v2380_v27  ;;  %s4647_s28 = sld [smem:[#allocation69_spill]] }
 0xc29   :  { %2745 = vpush %v2328_v45  ;;  %s1946_s10 = sadd.f32 %s4408_s16, %s1919_s29 }
 0xc2a   :  { %s4648_s8 = sld [smem:[#allocation70_spill]] }
 0xc2b   :  { %s1973_s21 = sadd.f32 %s4641_s23, %s1946_s10 }
 0xc2c   :  { %v2342_v0 = vpop.xlane.xlu1 %2341  ;;  %v2433_v22 = vpop.permute.xlu2 %2432  ;;  %s4649_s3 = sadd.f32 %s4371_s24, %s4427_s1 }
 0xc2d   :  { %v2343_v9 = vrot.slane %v2342_v0, 4  ;;  %v2438_v19 = vsel %vm1238_vm11, %v2433_v22, 0.0  ;;  %s4650_s11 = sld [smem:[#allocation64_spill]] }
 0xc2e   :  { %s1556_s14 = sadd.f32 %s4642_s9, %s4649_s3 }
 0xc2f   :  { %v2344_v48 = vadd.f32 %v2343_v9, %v2342_v0  ;;  %s2000_s17 = sadd.f32 %s4643_s20, %s1973_s21 }
 0xc30   :  { %s1575_s0 = sadd.f32 %s4644_s25, %s1556_s14 }
 0xc31   :  { %v2345_v59 = vrot.slane %v2344_v48, 2  ;;  %s4651_s3 = sld [smem:[#allocation71_spill]] }
 0xc33   :  { %v2346_v7 = vadd.f32 %v2345_v59, %v2344_v48 }
 0xc34   :  { %v2455_v58 = vpop.permute.xlu2 %2454 }
 0xc35   :  { %v2347_v32 = vrot.slane %v2346_v7, 1  ;;  %v2459_v24 = vsel %vm1240_vm12, %v2455_v58, 0.0 }
 0xc36   :  { %v2460_v16 = vadd.f32 %v2459_v24, %v2458_v4 }
 0xc37   :  { %v2348_v28 = vadd.f32 %v2347_v32, %v2346_v7 }
 0xc39   :  { %2747 = vpush %v2348_v28 }
 0xc42   :  { %s2744_s18 = spop %2743 }
 0xc43   :  { %s2310_s26 = sadd.f32 %s2744_s18, %s2290_s30 }
 0xc44   :  { %v2355_v12 = vpop.permute.xlu1 %2354 }
 0xc45   :  { %v2359_v5 = vsel %vm1240_vm12, %v2355_v12, 0.0 }
 0xc46   :  { %v2360_v26 = vadd.f32 %v2359_v5, %v2358_v53 }
 0xc48   :  { %2361 = vadd.xlane.f32.xlu2 %v2360_v26 }
 0xc4c   :  { %v2413_v62 = vpop.permute.xlu1 %2412  ;;  %v2402_v6 = vpop.xlane.xlu0 %2401 }
 0xc4d   :  { %v2418_v25 = vsel %vm1238_vm11, %v2413_v62, 0.0  ;;  %v2403_v42 = vrot.slane %v2402_v6, 4 }
 0xc4e   :  { %v2420_v37 = vadd.f32 %v2419_v57, %v2418_v25 }
 0xc4f   :  { %v2404_v36 = vadd.f32 %v2403_v42, %v2402_v6 }
 0xc50   :  { %2421 = vadd.xlane.f32.xlu2 %v2420_v37 }
 0xc51   :  { %v2405_v61 = vrot.slane %v2404_v36, 2 }
 0xc53   :  { %v2406_v17 = vadd.f32 %v2405_v61, %v2404_v36 }
 0xc54   :  { %v2435_v50 = vpop.permute.xlu1 %2434 }
 0xc55   :  { %v2439_v41 = vsel %vm1240_vm12, %v2435_v50, 0.0  ;;  %v2407_v8 = vrot.slane %v2406_v17, 1 }
 0xc56   :  { %v2440_v44 = vadd.f32 %v2439_v41, %v2438_v19 }
 0xc57   :  { %v2408_v15 = vadd.f32 %v2407_v8, %v2406_v17 }
 0xc58   :  { %2441 = vadd.xlane.f32.xlu1 %v2440_v44  ;;  %2461 = vadd.xlane.f32.xlu2 %v2460_v16 }
 0xc5a   :  { %s2746_s19 = spop %2745 }
 0xc5b   :  { %s2330_s2 = sadd.f32 %s2746_s19, %s2310_s26 }
 0xc5c   :  { %v2473_v2 = vpop.permute.xlu1 %2472  ;;  %s2027_s19 = sadd.f32 %s4645_s27, %s2000_s17  ;;  %s2503_s27 = sshll.u32 %s4651_s3, 4  ;;  %s2504_s27 = int_to_ptr.hbm [resolvable:$true] %s2503_s27 }
 0xc5d   :  { %v2478_v14 = vsel %vm1238_vm11, %v2473_v2, 0.0 }
 0xc5e   :  { %v2480_v29 = vadd.f32 %v2479_v51, %v2478_v14  ;;  %s2054_s22 = sadd.f32 %s4646_s13, %s2027_s19 }
 0xc60   :  { %2481 = vadd.xlane.f32.xlu0 %v2480_v29  ;;  %s2081_s16 = sadd.f32 %s4647_s28, %s2054_s22  ;;  %s3034_s28 = smov [#allocation7]  }
 0xc6a   :  { %s2748_s7 = spop %2747 }
 0xc6b   :  { %s2350_s15 = sadd.f32 %s2748_s7, %s2330_s2 }
 0xc9b   :  { %v2382_v34 = vpop.xlane.xlu1 %2381 }
 0xc9c   :  { %v2383_v46 = vrot.slane %v2382_v34, 4 }
 0xc9e   :  { %v2384_v23 = vadd.f32 %v2383_v46, %v2382_v34 }
 0xca0   :  { %v2385_v52 = vrot.slane %v2384_v23, 2 }
 0xca2   :  { %v2386_v33 = vadd.f32 %v2385_v52, %v2384_v23 }
 0xca4   :  { %v2387_v35 = vrot.slane %v2386_v33, 1 }
 0xca6   :  { %v2388_v3 = vadd.f32 %v2387_v35, %v2386_v33 }
 0xcbb   :  { %v2362_v63 = vpop.xlane.xlu2 %2361 }
 0xcbc   :  { %v2363_v31 = vrot.slane %v2362_v63, 4 }
 0xcbe   :  { %v2364_v20 = vadd.f32 %v2363_v31, %v2362_v63 }
 0xcc0   :  { %v2365_v49 = vrot.slane %v2364_v20, 2 }
 0xcc2   :  { %v2366_v1 = vadd.f32 %v2365_v49, %v2364_v20 }
 0xcc3   :  { %v2422_v47 = vpop.xlane.xlu2 %2421 }
 0xcc4   :  { %v2423_v21 = vrot.slane %v2422_v47, 4  ;;  %v2367_v18 = vrot.slane %v2366_v1, 1 }
 0xcc6   :  { %v2424_v38 = vadd.f32 %v2423_v21, %v2422_v47  ;;  %v2368_v30 = vadd.f32 %v2367_v18, %v2366_v1 }
 0xcc8   :  { %v2425_v40 = vrot.slane %v2424_v38, 2  ;;  %2749 = vpush %v2368_v30 }
 0xcc9   :  { %2751 = vpush %v2388_v3 }
 0xcca   :  { %2753 = vpush %v2408_v15  ;;  %v2426_v60 = vadd.f32 %v2425_v40, %v2424_v38 }
 0xccb   :  { %v2442_v10 = vpop.xlane.xlu1 %2441  ;;  %v2462_v13 = vpop.xlane.xlu2 %2461 }
 0xccc   :  { %v2443_v56 = vrot.slane %v2442_v10, 4  ;;  %v2463_v54 = vrot.slane %v2462_v13, 4  ;;  %v2427_v43 = vrot.slane %v2426_v60, 1 }
 0xcce   :  { %v2444_v27 = vadd.f32 %v2443_v56, %v2442_v10  ;;  %v2464_v45 = vadd.f32 %v2463_v54, %v2462_v13  ;;  %v2428_v0 = vadd.f32 %v2427_v43, %v2426_v60 }
 0xcd0   :  { %v2445_v9 = vrot.slane %v2444_v27, 2  ;;  %v2465_v48 = vrot.slane %v2464_v45, 2  ;;  %2755 = vpush %v2428_v0 }
 0xcd2   :  { %v2446_v59 = vadd.f32 %v2445_v9, %v2444_v27  ;;  %v2466_v7 = vadd.f32 %v2465_v48, %v2464_v45 }
 0xcd3   :  { %v2482_v32 = vpop.xlane.xlu0 %2481 }
 0xcd4   :  { %v2483_v28 = vrot.slane %v2482_v32, 4  ;;  %v2447_v12 = vrot.slane %v2446_v59, 1  ;;  %v2467_v53 = vrot.slane %v2466_v7, 1 }
 0xcd6   :  { %v2484_v5 = vadd.f32 %v2483_v28, %v2482_v32  ;;  %v2448_v39 = vadd.f32 %v2447_v12, %v2446_v59  ;;  %v2468_v22 = vadd.f32 %v2467_v53, %v2466_v7 }
 0xcd8   :  { %v2485_v26 = vrot.slane %v2484_v5, 2  ;;  %2757 = vpush %v2448_v39 }
 0xcd9   :  { %2759 = vpush %v2468_v22 }
 0xcda   :  { %v2486_v62 = vadd.f32 %v2485_v26, %v2484_v5 }
 0xcdc   :  { %v2487_v57 = vrot.slane %v2486_v62, 1 }
 0xcde   :  { %v2488_v25 = vadd.f32 %v2487_v57, %v2486_v62 }
 0xce0   :  { %2761 = vpush %v2488_v25 }
 0xcf9   :  { %s2750_s6 = spop %2749 }
 0xcfa   :  { %s2370_s5 = sadd.f32 %s2750_s6, %s2350_s15  ;;  %s2752_s18 = spop %2751 }
 0xcfb   :  { %s2754_s12 = spop %2753  ;;  %s2108_s6 = sadd.f32 %s4648_s8, %s2081_s16 }
 0xcfc   :  { %s2390_s30 = sadd.f32 %s2752_s18, %s2370_s5 }
 0xcfd   :  { %s1594_s15 = sadd.f32 %s4650_s11, %s1575_s0  ;;  %s2109_s1 = smul.f32 0.0069444445, %s2108_s6 }
 0xcfe   :  { %s2410_s4 = sadd.f32 %s2754_s12, %s2390_s30 }
 0xcff   :  { %s1595_s20 = smul.f32 0.0069444445, %s1594_s15 }
 0xd01   :  { %s2756_s26 = spop %2755  ;;  %s2110_s14 = sadd.f32 %s2109_s1, %s1595_s20 }
 0xd02   :  { %s2430_s7 = sadd.f32 %s2756_s26, %s2410_s4 }
 0xd09   :  { %s2758_s2 = spop %2757 }
 0xd0a   :  { %s2450_s29 = sadd.f32 %s2758_s2, %s2430_s7  ;;  %s2760_s10 = spop %2759 }
 0xd0c   :  { %s2470_s23 = sadd.f32 %s2760_s10, %s2450_s29 }
 0xd11   :  { %s2762_s24 = spop %2761 }
 0xd12   :  { %s2490_s9 = sadd.f32 %s2762_s24, %s2470_s23 }
 0xd14   :  { %s2491_s21 = smul.f32 0.0069444445, %s2490_s9 }
 0xd16   :  { %s2492_s17 = smul.f32 2.0, %s2491_s21 }
 0xd18   :  { %s2493_s13 = ssub.f32 %s2110_s14, %s2492_s17 }
 0xd1a   :  { %2497 = sst [smem:[#allocation7 + $0x1]] %s2493_s13 }
 0xd1b   :  { %2506 = dma.smem_to_hbm %s3034_s28, 16, %s2504_s27, [#allocation4]  }
 0xd1c   :  { %3025 = dma.done.wait [#allocation4], 16  }
 0xd1d   :  { %3026 = vsyncadd [#allocation4], 4294967280 }
 0xd1e   :  { %2511 = sfence }
 0xd1f   :  { %2512 = vsyncpa [#allocation3], 1 }
 0xd20   :  { %2513 = vsyncpa [#allocation6], 1 }
 0xd21   :  { %2514 = vsyncpa [#allocation4], 1 }

</bundles_post_ra>
